<compile_context>
chip_gen: v6e
topology: v6e:2x2x1
jax: 0.10.0
libtpu: 0.0.40
codegen_flags: <defaults>
</compile_context>

<pallas_src>
import functools
import math

import numpy as np
import jax
import jax.numpy as jnp
from jax.experimental import pallas as pl
from jax.experimental.pallas import tpu as pltpu


# ----------------------------- fused decoder-layer kernel -----------------------------

def _decoder_layer_kernel(num_heads,
                          x_ref, enc_ref, dkb_ref, ekb_ref,
                          wqkv1_ref, bqkv1_ref, wo1_ref, bo1_ref,
                          wq2_ref, bq2_ref, wkv2_ref, bkv2_ref, wo2_ref, bo2_ref,
                          w1_ref, b1_ref, w2_ref, b2_ref,
                          s1_ref, t1_ref, s2_ref, t2_ref, s3_ref, t3_ref,
                          out_ref, attn1_ref, attn2_ref):
    """One batch element of a full DecoderLayer (eval mode)."""
    f32, bf16 = jnp.float32, jnp.bfloat16
    NEG = jnp.float32(-1e30)

    x = x_ref[0]                      # (T, E) bf16
    enc = enc_ref[0]                  # (S, E) bf16
    T, E = x.shape
    S = enc.shape[0]
    dh = E // num_heads
    scale = 1.0 / math.sqrt(dh)

    def nt_dot(a, b):
        # (M, K) x (N, K) -> (M, N); contraction on last dims, no explicit transpose.
        return jax.lax.dot_general(a, b, (((1,), (1,)), ((), ())),
                                   preferred_element_type=f32)

    def attention(q, k, v, bias, wo_t, bo):
        # q (Tq, E), k/v (Tk, E) in f32; bias (Tq, Tk) in f32.
        qs = (q * scale).astype(bf16)            # fold 1/sqrt(dh) into q once
        kb = k.astype(bf16)
        vb = v.astype(bf16)
        ctx_parts = []
        attn_sum = jnp.zeros(bias.shape, f32)
        for h in range(num_heads):               # static unroll over heads
            lo = h * dh
            hi = lo + dh
            s = nt_dot(qs[:, lo:hi], kb[:, lo:hi]) + bias
            s = s - jnp.max(s, axis=-1, keepdims=True)
            p = jnp.exp(s)
            p = p * pl.reciprocal(jnp.sum(p, axis=-1, keepdims=True), approx=True)
            attn_sum = attn_sum + p
            ctx_parts.append(jnp.dot(p.astype(bf16), vb[:, lo:hi],
                                     preferred_element_type=f32))
        # Concatenate head contexts, then ONE (Tq,E)@(E,E) output projection.
        ctx = jnp.concatenate(ctx_parts, axis=-1).astype(bf16)
        out = jnp.dot(ctx, wo_t, preferred_element_type=f32) + bo
        return out, attn_sum * (1.0 / num_heads)   # head-averaged attn weights

    # Build masks in-kernel from tiny per-batch key-bias vectors.
    row = jax.lax.broadcasted_iota(jnp.int32, (T, T), 0)
    col = jax.lax.broadcasted_iota(jnp.int32, (T, T), 1)
    bias_self = jnp.where(col > row, NEG, jnp.float32(0.0)) + dkb_ref[0]   # (T, T)
    bias_cross = jnp.broadcast_to(ekb_ref[0], (T, S))                      # (T, S)

    # ---- block 1: self-attention with fused QKV projection ----
    qkv = jnp.dot(x, wqkv1_ref[...], preferred_element_type=f32) + bqkv1_ref[...]
    a1, attn1 = attention(qkv[:, :E], qkv[:, E:2 * E], qkv[:, 2 * E:],
                          bias_self, wo1_ref[...], bo1_ref[...])
    q1 = (x.astype(f32) + a1) * s1_ref[...] + t1_ref[...]      # residual + BN1 affine

    # ---- block 2: cross-attention with fused KV projection of encoder output ----
    q1b = q1.astype(bf16)
    q2 = jnp.dot(q1b, wq2_ref[...], preferred_element_type=f32) + bq2_ref[...]
    kv2 = jnp.dot(enc, wkv2_ref[...], preferred_element_type=f32) + bkv2_ref[...]
    a2, attn2 = attention(q2, kv2[:, :E], kv2[:, E:],
                          bias_cross, wo2_ref[...], bo2_ref[...])
    m2 = (q1 + a2) * s2_ref[...] + t2_ref[...]                 # residual + BN2 affine

    # ---- block 3: FFN  relu(relu(x W1 + b1) W2 + b2) + residual + BN3 ----
    m2b = m2.astype(bf16)
    h1 = jnp.maximum(jnp.dot(m2b, w1_ref[...], preferred_element_type=f32)
                     + b1_ref[...], 0.0)
    y = jnp.maximum(jnp.dot(h1.astype(bf16), w2_ref[...], preferred_element_type=f32)
                    + b2_ref[...], 0.0)
    out = (y + m2) * s3_ref[...] + t3_ref[...]

    out_ref[0] = out
    attn1_ref[0] = attn1
    attn2_ref[0] = attn2


# ----------------------------- wrapper -----------------------------

def decoder_layer_pallas(x_bf16, enc_bf16, dkb, ekb, lp, num_heads):
    B, T, E = x_bf16.shape
    S = enc_bf16.shape[1]
    F = lp["w1_t"].shape[1]

    batched = lambda shp: pl.BlockSpec(shp, lambda b: (b, 0, 0))
    shared = lambda shp: pl.BlockSpec(shp, lambda b, _s=shp: (0,) * len(_s))

    kern = functools.partial(_decoder_layer_kernel, num_heads)
    out, attn1, attn2 = pl.pallas_call(
        kern,
        grid=(B,),
        in_specs=[
            # per-batch activations + tiny key-padding bias vectors
            batched((1, T, E)), batched((1, S, E)),
            batched((1, 1, T)), batched((1, 1, S)),
            # mha1 (fused QKV)
            shared((E, 3 * E)), shared((1, 3 * E)), shared((E, E)), shared((1, E)),
            # mha2 (Q + fused KV)
            shared((E, E)), shared((1, E)), shared((E, 2 * E)), shared((1, 2 * E)),
            shared((E, E)), shared((1, E)),
            # FFN
            shared((E, F)), shared((1, F)), shared((F, E)), shared((1, E)),
            # BN1 / BN2 / BN3 fused scale+shift
            shared((1, E)), shared((1, E)), shared((1, E)), shared((1, E)),
            shared((1, E)), shared((1, E)),
        ],
        out_specs=(batched((1, T, E)), batched((1, T, T)), batched((1, T, S))),
        out_shape=(jax.ShapeDtypeStruct((B, T, E), jnp.float32),
                   jax.ShapeDtypeStruct((B, T, T), jnp.float32),
                   jax.ShapeDtypeStruct((B, T, S), jnp.float32)),
        compiler_params=pltpu.CompilerParams(dimension_semantics=("parallel",)),
    )(x_bf16, enc_bf16, dkb, ekb,
      lp["wqkv1_t"], lp["bqkv1"], lp["wo1_t"], lp["bo1"],
      lp["wq2_t"], lp["bq2"], lp["wkv2_t"], lp["bkv2"], lp["wo2_t"], lp["bo2"],
      lp["w1_t"], lp["b1"], lp["w2_t"], lp["b2"],
      lp["bn1_scale"], lp["bn1_shift"], lp["bn2_scale"], lp["bn2_shift"],
      lp["bn3_scale"], lp["bn3_shift"])
    return out, attn1, attn2


# ----------------------------- params (host-side prepared) -----------------------------

def positional_encoding(positions, d_model):
    position = np.arange(positions)[:, None]
    k = np.arange(d_model)[None, :]
    i = k // 2
    angle_rates = 1.0 / np.power(10000, 2 * i / np.float32(d_model))
    angle_rads = position * angle_rates
    angle_rads[:, 0::2] = np.sin(angle_rads[:, 0::2])
    angle_rads[:, 1::2] = np.cos(angle_rads[:, 1::2])
    return jnp.asarray(angle_rads[None, ...], dtype=jnp.float32)   # (1, pos, d_model)


def _init_mha(key, E):
    ks = jax.random.split(key, 8)
    w = lambda k, shp, s: jax.random.normal(k, shp, jnp.float32) * s
    return dict(wq=w(ks[0], (E, E), 0.1), wk=w(ks[1], (E, E), 0.1),
                wv=w(ks[2], (E, E), 0.1), wo=w(ks[3], (E, E), 0.1),
                bq=w(ks[4], (E,), 0.01), bk=w(ks[5], (E,), 0.01),
                bv=w(ks[6], (E,), 0.01), bo=w(ks[7], (E,), 0.01))


def _prepare_self_mha(p, E):
    wqkv_t = jnp.concatenate([p["wq"], p["wk"], p["wv"]], axis=0).T     # (E, 3E)
    bqkv = jnp.concatenate([p["bq"], p["bk"], p["bv"]]).reshape(1, 3 * E)
    return dict(wqkv1_t=wqkv_t.astype(jnp.bfloat16),
                bqkv1=bqkv.astype(jnp.float32),
                wo1_t=p["wo"].T.astype(jnp.bfloat16),
                bo1=p["bo"].reshape(1, E).astype(jnp.float32))


def _prepare_cross_mha(p, E):
    wkv_t = jnp.concatenate([p["wk"], p["wv"]], axis=0).T               # (E, 2E)
    bkv = jnp.concatenate([p["bk"], p["bv"]]).reshape(1, 2 * E)
    return dict(wq2_t=p["wq"].T.astype(jnp.bfloat16),
                bq2=p["bq"].reshape(1, E).astype(jnp.float32),
                wkv2_t=wkv_t.astype(jnp.bfloat16),
                bkv2=bkv.astype(jnp.float32),
                wo2_t=p["wo"].T.astype(jnp.bfloat16),
                bo2=p["bo"].reshape(1, E).astype(jnp.float32))


def _bn_scale_shift(gamma, beta, mean, var, eps):
    scale = gamma / jnp.sqrt(var + eps)
    shift = beta - mean * scale
    return (scale.reshape(1, -1).astype(jnp.float32),
            shift.reshape(1, -1).astype(jnp.float32))


def init_params(key, num_layers, E, F, vocab, max_pos, layernorm_eps=1e-6):
    keys = jax.random.split(key, 1 + num_layers)
    emb = jax.random.normal(keys[0], (vocab, E), jnp.float32) * 0.1
    emb = emb.at[0].set(0.0)                                   # padding_idx=0
    layers = []
    for li in range(num_layers):
        lk = jax.random.split(keys[1 + li], 9)
        w = lambda k, shp, s: jax.random.normal(k, shp, jnp.float32) * s
        lp = {}
        lp.update(_prepare_self_mha(_init_mha(lk[0], E), E))
        lp.update(_prepare_cross_mha(_init_mha(lk[1], E), E))
        lp["w1_t"] = w(lk[2], (F, E), 0.1).T.astype(jnp.bfloat16)   # (E, F)
        lp["b1"] = w(lk[3], (F,), 0.01).reshape(1, F)
        lp["w2_t"] = w(lk[4], (E, F), 0.1).T.astype(jnp.bfloat16)   # (F, E)
        lp["b2"] = w(lk[5], (E,), 0.01).reshape(1, E)
        for name, bk in (("bn1", lk[6]), ("bn2", lk[7]), ("bn3", lk[8])):
            k1, k2 = jax.random.split(bk)
            gamma = 1.0 + 0.05 * jax.random.normal(k1, (E,), jnp.float32)
            beta = 0.05 * jax.random.normal(k2, (E,), jnp.float32)
            mean = jnp.zeros((E,), jnp.float32)      # eval-mode running stats
            var = jnp.ones((E,), jnp.float32)
            sc, sh = _bn_scale_shift(gamma, beta, mean, var, layernorm_eps)
            lp[f"{name}_scale"] = sc
            lp[f"{name}_shift"] = sh
        layers.append(lp)
    return dict(embedding=emb,
                pos_encoding=positional_encoding(max_pos, E),
                layers=layers)


# ----------------------------- forward -----------------------------

def decoder_forward(params, tokens, enc_input, enc_output, num_heads):
    B, T = tokens.shape
    S = enc_input.shape[1]
    E = params["embedding"].shape[1]
    NEG = jnp.float32(-1e30)

    # Tiny per-batch key-padding bias vectors; causal mask is built in-kernel.
    dkb = jnp.where(tokens == 0, NEG, 0.0).astype(jnp.float32).reshape(B, 1, T)
    ekb = jnp.where(enc_input == 0, NEG, 0.0).astype(jnp.float32).reshape(B, 1, S)

    x = params["embedding"][tokens]                            # (B, T, E)
    x = x * jnp.float32(math.sqrt(E)) + params["pos_encoding"][:, :T, :]
    # Dropout: eval mode -> identity.

    enc_bf16 = enc_output.astype(jnp.bfloat16)
    attention_weights = {}
    for i, lp in enumerate(params["layers"]):
        x_bf16 = x.astype(jnp.bfloat16)
        x, w1, w2 = decoder_layer_pallas(x_bf16, enc_bf16, dkb, ekb, lp, num_heads)
        attention_weights[f"decoder_layer{i + 1}_block1_self_att"] = w1
        attention_weights[f"decoder_layer{i + 1}_block2_decenc_att"] = w2
    return x, attention_weights


# ----------------------------- demo -----------------------------

if __name__ == "__main__":
    num_layers, E, H, F = 2, 128, 4, 256      # E, F multiples of 128 -> lane-dense
    vocab, max_pos = 50, 16
    B, T, S = 2, 8, 8

    key = jax.random.PRNGKey(0)
    k_params, k_tok, k_enc, k_encout = jax.random.split(key, 4)

    params = init_params(k_params, num_layers, E, F, vocab, max_pos)

    tokens = jax.random.randint(k_tok, (B, T), 1, vocab)
    tokens = tokens.at[0, T - 2:].set(0)          # trailing padding in sequence 0
    enc_input = jax.random.randint(k_enc, (B, S), 1, vocab)
    enc_input = enc_input.at[1, S - 3:].set(0)    # trailing padding in encoder seq 1
    enc_output = jax.random.normal(k_encout, (B, S, E), jnp.float32) * 0.5

    fwd = jax.jit(decoder_forward, static_argnums=(4,))
    out, attn = fwd(params, tokens, enc_input, enc_output, H)
    jax.block_until_ready(out)
    for v in attn.values():
        jax.block_until_ready(v)

    assert out.shape == (B, T, E)
    assert len(attn) == 2 * num_layers
    assert attn["decoder_layer1_block1_self_att"].shape == (B, T, T)
    assert attn["decoder_layer1_block2_decenc_att"].shape == (B, T, S)
    assert bool(np.all(np.isfinite(np.asarray(out))))
    print("KERNEL_OK")
</pallas_src>

<mosaic_0001>
module attributes {stable_mosaic.version = 11 : i64} {
  func.func @_decoder_layer_kernel(%arg0: i32, %arg1: memref<1x8x128xbf16, #tpu.memory_space<vmem>>, %arg2: memref<1x8x128xbf16, #tpu.memory_space<vmem>>, %arg3: memref<1x1x8xf32, #tpu.memory_space<vmem>>, %arg4: memref<1x1x8xf32, #tpu.memory_space<vmem>>, %arg5: memref<128x384xbf16, #tpu.memory_space<vmem>>, %arg6: memref<1x384xf32, #tpu.memory_space<vmem>>, %arg7: memref<128x128xbf16, #tpu.memory_space<vmem>>, %arg8: memref<1x128xf32, #tpu.memory_space<vmem>>, %arg9: memref<128x128xbf16, #tpu.memory_space<vmem>>, %arg10: memref<1x128xf32, #tpu.memory_space<vmem>>, %arg11: memref<128x256xbf16, #tpu.memory_space<vmem>>, %arg12: memref<1x256xf32, #tpu.memory_space<vmem>>, %arg13: memref<128x128xbf16, #tpu.memory_space<vmem>>, %arg14: memref<1x128xf32, #tpu.memory_space<vmem>>, %arg15: memref<128x256xbf16, #tpu.memory_space<vmem>>, %arg16: memref<1x256xf32, #tpu.memory_space<vmem>>, %arg17: memref<256x128xbf16, #tpu.memory_space<vmem>>, %arg18: memref<1x128xf32, #tpu.memory_space<vmem>>, %arg19: memref<1x128xf32, #tpu.memory_space<vmem>>, %arg20: memref<1x128xf32, #tpu.memory_space<vmem>>, %arg21: memref<1x128xf32, #tpu.memory_space<vmem>>, %arg22: memref<1x128xf32, #tpu.memory_space<vmem>>, %arg23: memref<1x128xf32, #tpu.memory_space<vmem>>, %arg24: memref<1x128xf32, #tpu.memory_space<vmem>>, %arg25: memref<1x8x128xf32, #tpu.memory_space<vmem>>, %arg26: memref<1x8x8xf32, #tpu.memory_space<vmem>>, %arg27: memref<1x8x8xf32, #tpu.memory_space<vmem>>) attributes {dimension_semantics = [#tpu.dimension_semantics<parallel>], iteration_bounds = array<i64: 2>, scalar_prefetch = 0 : i64, scratch_operands = 0 : i64, tpu.core_type = #tpu.core_type<tc>, window_params = [{transform_indices = @transform_0, window_bounds = array<i64: 1, 8, 128>}, {transform_indices = @transform_1, window_bounds = array<i64: 1, 8, 128>}, {transform_indices = @transform_2, window_bounds = array<i64: 1, 1, 8>}, {transform_indices = @transform_3, window_bounds = array<i64: 1, 1, 8>}, {pipeline_mode = #tpu.pipeline_mode<synchronous>, transform_indices = @transform_4, window_bounds = array<i64: 128, 384>}, {pipeline_mode = #tpu.pipeline_mode<synchronous>, transform_indices = @transform_5, window_bounds = array<i64: 1, 384>}, {pipeline_mode = #tpu.pipeline_mode<synchronous>, transform_indices = @transform_6, window_bounds = array<i64: 128, 128>}, {pipeline_mode = #tpu.pipeline_mode<synchronous>, transform_indices = @transform_7, window_bounds = array<i64: 1, 128>}, {pipeline_mode = #tpu.pipeline_mode<synchronous>, transform_indices = @transform_8, window_bounds = array<i64: 128, 128>}, {pipeline_mode = #tpu.pipeline_mode<synchronous>, transform_indices = @transform_9, window_bounds = array<i64: 1, 128>}, {pipeline_mode = #tpu.pipeline_mode<synchronous>, transform_indices = @transform_10, window_bounds = array<i64: 128, 256>}, {pipeline_mode = #tpu.pipeline_mode<synchronous>, transform_indices = @transform_11, window_bounds = array<i64: 1, 256>}, {pipeline_mode = #tpu.pipeline_mode<synchronous>, transform_indices = @transform_12, window_bounds = array<i64: 128, 128>}, {pipeline_mode = #tpu.pipeline_mode<synchronous>, transform_indices = @transform_13, window_bounds = array<i64: 1, 128>}, {pipeline_mode = #tpu.pipeline_mode<synchronous>, transform_indices = @transform_14, window_bounds = array<i64: 128, 256>}, {pipeline_mode = #tpu.pipeline_mode<synchronous>, transform_indices = @transform_15, window_bounds = array<i64: 1, 256>}, {pipeline_mode = #tpu.pipeline_mode<synchronous>, transform_indices = @transform_16, window_bounds = array<i64: 256, 128>}, {pipeline_mode = #tpu.pipeline_mode<synchronous>, transform_indices = @transform_17, window_bounds = array<i64: 1, 128>}, {pipeline_mode = #tpu.pipeline_mode<synchronous>, transform_indices = @transform_18, window_bounds = array<i64: 1, 128>}, {pipeline_mode = #tpu.pipeline_mode<synchronous>, transform_indices = @transform_19, window_bounds = array<i64: 1, 128>}, {pipeline_mode = #tpu.pipeline_mode<synchronous>, transform_indices = @transform_20, window_bounds = array<i64: 1, 128>}, {pipeline_mode = #tpu.pipeline_mode<synchronous>, transform_indices = @transform_21, window_bounds = array<i64: 1, 128>}, {pipeline_mode = #tpu.pipeline_mode<synchronous>, transform_indices = @transform_22, window_bounds = array<i64: 1, 128>}, {pipeline_mode = #tpu.pipeline_mode<synchronous>, transform_indices = @transform_23, window_bounds = array<i64: 1, 128>}, {transform_indices = @transform_24, window_bounds = array<i64: 1, 8, 128>}, {transform_indices = @transform_25, window_bounds = array<i64: 1, 8, 8>}, {transform_indices = @transform_26, window_bounds = array<i64: 1, 8, 8>}]} {
    %c0 = arith.constant 0 : index
    %c0_0 = arith.constant 0 : index
    %c0_1 = arith.constant 0 : index
    %0 = vector.load %arg1[%c0, %c0_0, %c0_1] : memref<1x8x128xbf16, #tpu.memory_space<vmem>>, vector<1x8x128xbf16>
    %1 = vector.shape_cast %0 : vector<1x8x128xbf16> to vector<8x128xbf16>
    %c0_2 = arith.constant 0 : index
    %c0_3 = arith.constant 0 : index
    %c0_4 = arith.constant 0 : index
    %2 = vector.load %arg2[%c0_2, %c0_3, %c0_4] : memref<1x8x128xbf16, #tpu.memory_space<vmem>>, vector<1x8x128xbf16>
    %3 = vector.shape_cast %2 : vector<1x8x128xbf16> to vector<8x128xbf16>
    %4 = tpu.iota {dimensions = array<i32: 0>} : vector<8x8xi32>
    %5 = tpu.iota {dimensions = array<i32: 1>} : vector<8x8xi32>
    %6 = arith.cmpi sgt, %5, %4 : vector<8x8xi32>
    %cst = arith.constant -1.000000e+30 : f32
    %cst_5 = arith.constant 0.000000e+00 : f32
    %7 = vector.broadcast %cst : f32 to vector<8x8xf32>
    %8 = vector.broadcast %cst_5 : f32 to vector<8x8xf32>
    %9 = arith.select %6, %7, %8 : vector<8x8xi1>, vector<8x8xf32>
    %c0_6 = arith.constant 0 : index
    %c0_7 = arith.constant 0 : index
    %c0_8 = arith.constant 0 : index
    %10 = vector.load %arg3[%c0_6, %c0_7, %c0_8] : memref<1x1x8xf32, #tpu.memory_space<vmem>>, vector<1x1x8xf32>
    %11 = vector.shape_cast %10 : vector<1x1x8xf32> to vector<1x8xf32>
    %12 = vector.broadcast %11 : vector<1x8xf32> to vector<8x8xf32>
    %13 = arith.addf %9, %12 : vector<8x8xf32>
    %c0_9 = arith.constant 0 : index
    %c0_10 = arith.constant 0 : index
    %c0_11 = arith.constant 0 : index
    %14 = vector.load %arg4[%c0_9, %c0_10, %c0_11] : memref<1x1x8xf32, #tpu.memory_space<vmem>>, vector<1x1x8xf32>
    %15 = vector.shape_cast %14 : vector<1x1x8xf32> to vector<1x8xf32>
    %16 = vector.shape_cast %15 : vector<1x8xf32> to vector<1x8xf32>
    %17 = vector.broadcast %16 : vector<1x8xf32> to vector<8x8xf32>
    %c0_12 = arith.constant 0 : index
    %c0_13 = arith.constant 0 : index
    %18 = vector.load %arg5[%c0_12, %c0_13] : memref<128x384xbf16, #tpu.memory_space<vmem>>, vector<128x384xbf16>
    %cst_14 = arith.constant dense<0.000000e+00> : vector<8x384xf32>
    %19 = tpu.matmul %1, %18, %cst_14 {dimension_numbers = #tpu.dot_dimension_numbers<[1], [0], [0], [1], [0, 0, 1, 1], [], []>} : vector<8x128xbf16>, vector<128x384xbf16>, vector<8x384xf32> -> vector<8x384xf32>
    %c0_15 = arith.constant 0 : index
    %c0_16 = arith.constant 0 : index
    %20 = vector.load %arg6[%c0_15, %c0_16] : memref<1x384xf32, #tpu.memory_space<vmem>>, vector<1x384xf32>
    %21 = vector.broadcast %20 : vector<1x384xf32> to vector<8x384xf32>
    %22 = arith.addf %19, %21 : vector<8x384xf32>
    %23 = vector.extract_strided_slice %22 {offsets = [0, 0], sizes = [8, 128], strides = [1, 1]} : vector<8x384xf32> to vector<8x128xf32>
    %24 = vector.extract_strided_slice %22 {offsets = [0, 128], sizes = [8, 128], strides = [1, 1]} : vector<8x384xf32> to vector<8x128xf32>
    %25 = vector.extract_strided_slice %22 {offsets = [0, 256], sizes = [8, 128], strides = [1, 1]} : vector<8x384xf32> to vector<8x128xf32>
    %c0_17 = arith.constant 0 : index
    %c0_18 = arith.constant 0 : index
    %26 = vector.load %arg7[%c0_17, %c0_18] : memref<128x128xbf16, #tpu.memory_space<vmem>>, vector<128x128xbf16>
    %c0_19 = arith.constant 0 : index
    %c0_20 = arith.constant 0 : index
    %27 = vector.load %arg8[%c0_19, %c0_20] : memref<1x128xf32, #tpu.memory_space<vmem>>, vector<1x128xf32>
    %cst_21 = arith.constant 0.176776692 : f32
    %28 = vector.broadcast %cst_21 : f32 to vector<8x128xf32>
    %29 = arith.mulf %23, %28 : vector<8x128xf32>
    %30 = arith.truncf %29 : vector<8x128xf32> to vector<8x128xbf16>
    %31 = arith.truncf %24 : vector<8x128xf32> to vector<8x128xbf16>
    %32 = arith.truncf %25 : vector<8x128xf32> to vector<8x128xbf16>
    %cst_22 = arith.constant 0.000000e+00 : f32
    %33 = vector.broadcast %cst_22 : f32 to vector<8x8xf32>
    %34 = vector.extract_strided_slice %30 {offsets = [0, 0], sizes = [8, 32], strides = [1, 1]} : vector<8x128xbf16> to vector<8x32xbf16>
    %35 = vector.extract_strided_slice %31 {offsets = [0, 0], sizes = [8, 32], strides = [1, 1]} : vector<8x128xbf16> to vector<8x32xbf16>
    %cst_23 = arith.constant dense<0.000000e+00> : vector<8x8xf32>
    %36 = tpu.matmul %34, %35, %cst_23 {dimension_numbers = #tpu.dot_dimension_numbers<[1], [1], [0], [0], [0, 0, 1, 0], [], []>} : vector<8x32xbf16>, vector<8x32xbf16>, vector<8x8xf32> -> vector<8x8xf32>
    %37 = arith.addf %36, %13 : vector<8x8xf32>
    %cst_24 = arith.constant dense<0xFF800000> : vector<8xf32>
    %38 = vector.multi_reduction <maximumf>, %37, %cst_24 [1] : vector<8x8xf32> to vector<8xf32>
    %39 = vector.shape_cast %38 : vector<8xf32> to vector<8x1xf32>
    %40 = vector.broadcast %39 : vector<8x1xf32> to vector<8x8xf32>
    %41 = arith.subf %37, %40 : vector<8x8xf32>
    %42 = math.exp %41 : vector<8x8xf32>
    %cst_25 = arith.constant dense<0.000000e+00> : vector<8xf32>
    %43 = vector.multi_reduction <add>, %42, %cst_25 [1] : vector<8x8xf32> to vector<8xf32>
    %44 = vector.shape_cast %43 : vector<8xf32> to vector<8x1xf32>
    %45 = tpu.reciprocal %44 {approx = true} : vector<8x1xf32> -> vector<8x1xf32>
    %46 = vector.broadcast %45 : vector<8x1xf32> to vector<8x8xf32>
    %47 = arith.mulf %42, %46 : vector<8x8xf32>
    %48 = arith.addf %33, %47 : vector<8x8xf32>
    %49 = arith.truncf %47 : vector<8x8xf32> to vector<8x8xbf16>
    %50 = vector.extract_strided_slice %32 {offsets = [0, 0], sizes = [8, 32], strides = [1, 1]} : vector<8x128xbf16> to vector<8x32xbf16>
    %cst_26 = arith.constant dense<0.000000e+00> : vector<8x32xf32>
    %51 = tpu.matmul %49, %50, %cst_26 {dimension_numbers = #tpu.dot_dimension_numbers<[1], [0], [0], [1], [0, 0, 1, 1], [], []>} : vector<8x8xbf16>, vector<8x32xbf16>, vector<8x32xf32> -> vector<8x32xf32>
    %52 = vector.extract_strided_slice %30 {offsets = [0, 32], sizes = [8, 32], strides = [1, 1]} : vector<8x128xbf16> to vector<8x32xbf16>
    %53 = vector.extract_strided_slice %31 {offsets = [0, 32], sizes = [8, 32], strides = [1, 1]} : vector<8x128xbf16> to vector<8x32xbf16>
    %cst_27 = arith.constant dense<0.000000e+00> : vector<8x8xf32>
    %54 = tpu.matmul %52, %53, %cst_27 {dimension_numbers = #tpu.dot_dimension_numbers<[1], [1], [0], [0], [0, 0, 1, 0], [], []>} : vector<8x32xbf16>, vector<8x32xbf16>, vector<8x8xf32> -> vector<8x8xf32>
    %55 = arith.addf %54, %13 : vector<8x8xf32>
    %cst_28 = arith.constant dense<0xFF800000> : vector<8xf32>
    %56 = vector.multi_reduction <maximumf>, %55, %cst_28 [1] : vector<8x8xf32> to vector<8xf32>
    %57 = vector.shape_cast %56 : vector<8xf32> to vector<8x1xf32>
    %58 = vector.broadcast %57 : vector<8x1xf32> to vector<8x8xf32>
    %59 = arith.subf %55, %58 : vector<8x8xf32>
    %60 = math.exp %59 : vector<8x8xf32>
    %cst_29 = arith.constant dense<0.000000e+00> : vector<8xf32>
    %61 = vector.multi_reduction <add>, %60, %cst_29 [1] : vector<8x8xf32> to vector<8xf32>
    %62 = vector.shape_cast %61 : vector<8xf32> to vector<8x1xf32>
    %63 = tpu.reciprocal %62 {approx = true} : vector<8x1xf32> -> vector<8x1xf32>
    %64 = vector.broadcast %63 : vector<8x1xf32> to vector<8x8xf32>
    %65 = arith.mulf %60, %64 : vector<8x8xf32>
    %66 = arith.addf %48, %65 : vector<8x8xf32>
    %67 = arith.truncf %65 : vector<8x8xf32> to vector<8x8xbf16>
    %68 = vector.extract_strided_slice %32 {offsets = [0, 32], sizes = [8, 32], strides = [1, 1]} : vector<8x128xbf16> to vector<8x32xbf16>
    %cst_30 = arith.constant dense<0.000000e+00> : vector<8x32xf32>
    %69 = tpu.matmul %67, %68, %cst_30 {dimension_numbers = #tpu.dot_dimension_numbers<[1], [0], [0], [1], [0, 0, 1, 1], [], []>} : vector<8x8xbf16>, vector<8x32xbf16>, vector<8x32xf32> -> vector<8x32xf32>
    %70 = vector.extract_strided_slice %30 {offsets = [0, 64], sizes = [8, 32], strides = [1, 1]} : vector<8x128xbf16> to vector<8x32xbf16>
    %71 = vector.extract_strided_slice %31 {offsets = [0, 64], sizes = [8, 32], strides = [1, 1]} : vector<8x128xbf16> to vector<8x32xbf16>
    %cst_31 = arith.constant dense<0.000000e+00> : vector<8x8xf32>
    %72 = tpu.matmul %70, %71, %cst_31 {dimension_numbers = #tpu.dot_dimension_numbers<[1], [1], [0], [0], [0, 0, 1, 0], [], []>} : vector<8x32xbf16>, vector<8x32xbf16>, vector<8x8xf32> -> vector<8x8xf32>
    %73 = arith.addf %72, %13 : vector<8x8xf32>
    %cst_32 = arith.constant dense<0xFF800000> : vector<8xf32>
    %74 = vector.multi_reduction <maximumf>, %73, %cst_32 [1] : vector<8x8xf32> to vector<8xf32>
    %75 = vector.shape_cast %74 : vector<8xf32> to vector<8x1xf32>
    %76 = vector.broadcast %75 : vector<8x1xf32> to vector<8x8xf32>
    %77 = arith.subf %73, %76 : vector<8x8xf32>
    %78 = math.exp %77 : vector<8x8xf32>
    %cst_33 = arith.constant dense<0.000000e+00> : vector<8xf32>
    %79 = vector.multi_reduction <add>, %78, %cst_33 [1] : vector<8x8xf32> to vector<8xf32>
    %80 = vector.shape_cast %79 : vector<8xf32> to vector<8x1xf32>
    %81 = tpu.reciprocal %80 {approx = true} : vector<8x1xf32> -> vector<8x1xf32>
    %82 = vector.broadcast %81 : vector<8x1xf32> to vector<8x8xf32>
    %83 = arith.mulf %78, %82 : vector<8x8xf32>
    %84 = arith.addf %66, %83 : vector<8x8xf32>
    %85 = arith.truncf %83 : vector<8x8xf32> to vector<8x8xbf16>
    %86 = vector.extract_strided_slice %32 {offsets = [0, 64], sizes = [8, 32], strides = [1, 1]} : vector<8x128xbf16> to vector<8x32xbf16>
    %cst_34 = arith.constant dense<0.000000e+00> : vector<8x32xf32>
    %87 = tpu.matmul %85, %86, %cst_34 {dimension_numbers = #tpu.dot_dimension_numbers<[1], [0], [0], [1], [0, 0, 1, 1], [], []>} : vector<8x8xbf16>, vector<8x32xbf16>, vector<8x32xf32> -> vector<8x32xf32>
    %88 = vector.extract_strided_slice %30 {offsets = [0, 96], sizes = [8, 32], strides = [1, 1]} : vector<8x128xbf16> to vector<8x32xbf16>
    %89 = vector.extract_strided_slice %31 {offsets = [0, 96], sizes = [8, 32], strides = [1, 1]} : vector<8x128xbf16> to vector<8x32xbf16>
    %cst_35 = arith.constant dense<0.000000e+00> : vector<8x8xf32>
    %90 = tpu.matmul %88, %89, %cst_35 {dimension_numbers = #tpu.dot_dimension_numbers<[1], [1], [0], [0], [0, 0, 1, 0], [], []>} : vector<8x32xbf16>, vector<8x32xbf16>, vector<8x8xf32> -> vector<8x8xf32>
    %91 = arith.addf %90, %13 : vector<8x8xf32>
    %cst_36 = arith.constant dense<0xFF800000> : vector<8xf32>
    %92 = vector.multi_reduction <maximumf>, %91, %cst_36 [1] : vector<8x8xf32> to vector<8xf32>
    %93 = vector.shape_cast %92 : vector<8xf32> to vector<8x1xf32>
    %94 = vector.broadcast %93 : vector<8x1xf32> to vector<8x8xf32>
    %95 = arith.subf %91, %94 : vector<8x8xf32>
    %96 = math.exp %95 : vector<8x8xf32>
    %cst_37 = arith.constant dense<0.000000e+00> : vector<8xf32>
    %97 = vector.multi_reduction <add>, %96, %cst_37 [1] : vector<8x8xf32> to vector<8xf32>
    %98 = vector.shape_cast %97 : vector<8xf32> to vector<8x1xf32>
    %99 = tpu.reciprocal %98 {approx = true} : vector<8x1xf32> -> vector<8x1xf32>
    %100 = vector.broadcast %99 : vector<8x1xf32> to vector<8x8xf32>
    %101 = arith.mulf %96, %100 : vector<8x8xf32>
    %102 = arith.addf %84, %101 : vector<8x8xf32>
    %103 = arith.truncf %101 : vector<8x8xf32> to vector<8x8xbf16>
    %104 = vector.extract_strided_slice %32 {offsets = [0, 96], sizes = [8, 32], strides = [1, 1]} : vector<8x128xbf16> to vector<8x32xbf16>
    %cst_38 = arith.constant dense<0.000000e+00> : vector<8x32xf32>
    %105 = tpu.matmul %103, %104, %cst_38 {dimension_numbers = #tpu.dot_dimension_numbers<[1], [0], [0], [1], [0, 0, 1, 1], [], []>} : vector<8x8xbf16>, vector<8x32xbf16>, vector<8x32xf32> -> vector<8x32xf32>
    %106 = tpu.concatenate %51, %69, %87, %105 in 1 : vector<8x32xf32>, vector<8x32xf32>, vector<8x32xf32>, vector<8x32xf32> -> vector<8x128xf32>
    %107 = arith.truncf %106 : vector<8x128xf32> to vector<8x128xbf16>
    %cst_39 = arith.constant dense<0.000000e+00> : vector<8x128xf32>
    %108 = tpu.matmul %107, %26, %cst_39 {dimension_numbers = #tpu.dot_dimension_numbers<[1], [0], [0], [1], [0, 0, 1, 1], [], []>} : vector<8x128xbf16>, vector<128x128xbf16>, vector<8x128xf32> -> vector<8x128xf32>
    %109 = vector.broadcast %27 : vector<1x128xf32> to vector<8x128xf32>
    %110 = arith.addf %108, %109 : vector<8x128xf32>
    %cst_40 = arith.constant 2.500000e-01 : f32
    %111 = vector.broadcast %cst_40 : f32 to vector<8x8xf32>
    %112 = arith.mulf %102, %111 : vector<8x8xf32>
    %113 = arith.extf %1 : vector<8x128xbf16> to vector<8x128xf32>
    %114 = arith.addf %113, %110 : vector<8x128xf32>
    %c0_41 = arith.constant 0 : index
    %c0_42 = arith.constant 0 : index
    %115 = vector.load %arg19[%c0_41, %c0_42] : memref<1x128xf32, #tpu.memory_space<vmem>>, vector<1x128xf32>
    %116 = vector.broadcast %115 : vector<1x128xf32> to vector<8x128xf32>
    %117 = arith.mulf %114, %116 : vector<8x128xf32>
    %c0_43 = arith.constant 0 : index
    %c0_44 = arith.constant 0 : index
    %118 = vector.load %arg20[%c0_43, %c0_44] : memref<1x128xf32, #tpu.memory_space<vmem>>, vector<1x128xf32>
    %119 = vector.broadcast %118 : vector<1x128xf32> to vector<8x128xf32>
    %120 = arith.addf %117, %119 : vector<8x128xf32>
    %121 = arith.truncf %120 : vector<8x128xf32> to vector<8x128xbf16>
    %c0_45 = arith.constant 0 : index
    %c0_46 = arith.constant 0 : index
    %122 = vector.load %arg9[%c0_45, %c0_46] : memref<128x128xbf16, #tpu.memory_space<vmem>>, vector<128x128xbf16>
    %cst_47 = arith.constant dense<0.000000e+00> : vector<8x128xf32>
    %123 = tpu.matmul %121, %122, %cst_47 {dimension_numbers = #tpu.dot_dimension_numbers<[1], [0], [0], [1], [0, 0, 1, 1], [], []>} : vector<8x128xbf16>, vector<128x128xbf16>, vector<8x128xf32> -> vector<8x128xf32>
    %c0_48 = arith.constant 0 : index
    %c0_49 = arith.constant 0 : index
    %124 = vector.load %arg10[%c0_48, %c0_49] : memref<1x128xf32, #tpu.memory_space<vmem>>, vector<1x128xf32>
    %125 = vector.broadcast %124 : vector<1x128xf32> to vector<8x128xf32>
    %126 = arith.addf %123, %125 : vector<8x128xf32>
    %c0_50 = arith.constant 0 : index
    %c0_51 = arith.constant 0 : index
    %127 = vector.load %arg11[%c0_50, %c0_51] : memref<128x256xbf16, #tpu.memory_space<vmem>>, vector<128x256xbf16>
    %cst_52 = arith.constant dense<0.000000e+00> : vector<8x256xf32>
    %128 = tpu.matmul %3, %127, %cst_52 {dimension_numbers = #tpu.dot_dimension_numbers<[1], [0], [0], [1], [0, 0, 1, 1], [], []>} : vector<8x128xbf16>, vector<128x256xbf16>, vector<8x256xf32> -> vector<8x256xf32>
    %c0_53 = arith.constant 0 : index
    %c0_54 = arith.constant 0 : index
    %129 = vector.load %arg12[%c0_53, %c0_54] : memref<1x256xf32, #tpu.memory_space<vmem>>, vector<1x256xf32>
    %130 = vector.broadcast %129 : vector<1x256xf32> to vector<8x256xf32>
    %131 = arith.addf %128, %130 : vector<8x256xf32>
    %132 = vector.extract_strided_slice %131 {offsets = [0, 0], sizes = [8, 128], strides = [1, 1]} : vector<8x256xf32> to vector<8x128xf32>
    %133 = vector.extract_strided_slice %131 {offsets = [0, 128], sizes = [8, 128], strides = [1, 1]} : vector<8x256xf32> to vector<8x128xf32>
    %c0_55 = arith.constant 0 : index
    %c0_56 = arith.constant 0 : index
    %134 = vector.load %arg13[%c0_55, %c0_56] : memref<128x128xbf16, #tpu.memory_space<vmem>>, vector<128x128xbf16>
    %c0_57 = arith.constant 0 : index
    %c0_58 = arith.constant 0 : index
    %135 = vector.load %arg14[%c0_57, %c0_58] : memref<1x128xf32, #tpu.memory_space<vmem>>, vector<1x128xf32>
    %cst_59 = arith.constant 0.176776692 : f32
    %136 = vector.broadcast %cst_59 : f32 to vector<8x128xf32>
    %137 = arith.mulf %126, %136 : vector<8x128xf32>
    %138 = arith.truncf %137 : vector<8x128xf32> to vector<8x128xbf16>
    %139 = arith.truncf %132 : vector<8x128xf32> to vector<8x128xbf16>
    %140 = arith.truncf %133 : vector<8x128xf32> to vector<8x128xbf16>
    %cst_60 = arith.constant 0.000000e+00 : f32
    %141 = vector.broadcast %cst_60 : f32 to vector<8x8xf32>
    %142 = vector.extract_strided_slice %138 {offsets = [0, 0], sizes = [8, 32], strides = [1, 1]} : vector<8x128xbf16> to vector<8x32xbf16>
    %143 = vector.extract_strided_slice %139 {offsets = [0, 0], sizes = [8, 32], strides = [1, 1]} : vector<8x128xbf16> to vector<8x32xbf16>
    %cst_61 = arith.constant dense<0.000000e+00> : vector<8x8xf32>
    %144 = tpu.matmul %142, %143, %cst_61 {dimension_numbers = #tpu.dot_dimension_numbers<[1], [1], [0], [0], [0, 0, 1, 0], [], []>} : vector<8x32xbf16>, vector<8x32xbf16>, vector<8x8xf32> -> vector<8x8xf32>
    %145 = arith.addf %144, %17 : vector<8x8xf32>
    %cst_62 = arith.constant dense<0xFF800000> : vector<8xf32>
    %146 = vector.multi_reduction <maximumf>, %145, %cst_62 [1] : vector<8x8xf32> to vector<8xf32>
    %147 = vector.shape_cast %146 : vector<8xf32> to vector<8x1xf32>
    %148 = vector.broadcast %147 : vector<8x1xf32> to vector<8x8xf32>
    %149 = arith.subf %145, %148 : vector<8x8xf32>
    %150 = math.exp %149 : vector<8x8xf32>
    %cst_63 = arith.constant dense<0.000000e+00> : vector<8xf32>
    %151 = vector.multi_reduction <add>, %150, %cst_63 [1] : vector<8x8xf32> to vector<8xf32>
    %152 = vector.shape_cast %151 : vector<8xf32> to vector<8x1xf32>
    %153 = tpu.reciprocal %152 {approx = true} : vector<8x1xf32> -> vector<8x1xf32>
    %154 = vector.broadcast %153 : vector<8x1xf32> to vector<8x8xf32>
    %155 = arith.mulf %150, %154 : vector<8x8xf32>
    %156 = arith.addf %141, %155 : vector<8x8xf32>
    %157 = arith.truncf %155 : vector<8x8xf32> to vector<8x8xbf16>
    %158 = vector.extract_strided_slice %140 {offsets = [0, 0], sizes = [8, 32], strides = [1, 1]} : vector<8x128xbf16> to vector<8x32xbf16>
    %cst_64 = arith.constant dense<0.000000e+00> : vector<8x32xf32>
    %159 = tpu.matmul %157, %158, %cst_64 {dimension_numbers = #tpu.dot_dimension_numbers<[1], [0], [0], [1], [0, 0, 1, 1], [], []>} : vector<8x8xbf16>, vector<8x32xbf16>, vector<8x32xf32> -> vector<8x32xf32>
    %160 = vector.extract_strided_slice %138 {offsets = [0, 32], sizes = [8, 32], strides = [1, 1]} : vector<8x128xbf16> to vector<8x32xbf16>
    %161 = vector.extract_strided_slice %139 {offsets = [0, 32], sizes = [8, 32], strides = [1, 1]} : vector<8x128xbf16> to vector<8x32xbf16>
    %cst_65 = arith.constant dense<0.000000e+00> : vector<8x8xf32>
    %162 = tpu.matmul %160, %161, %cst_65 {dimension_numbers = #tpu.dot_dimension_numbers<[1], [1], [0], [0], [0, 0, 1, 0], [], []>} : vector<8x32xbf16>, vector<8x32xbf16>, vector<8x8xf32> -> vector<8x8xf32>
    %163 = arith.addf %162, %17 : vector<8x8xf32>
    %cst_66 = arith.constant dense<0xFF800000> : vector<8xf32>
    %164 = vector.multi_reduction <maximumf>, %163, %cst_66 [1] : vector<8x8xf32> to vector<8xf32>
    %165 = vector.shape_cast %164 : vector<8xf32> to vector<8x1xf32>
    %166 = vector.broadcast %165 : vector<8x1xf32> to vector<8x8xf32>
    %167 = arith.subf %163, %166 : vector<8x8xf32>
    %168 = math.exp %167 : vector<8x8xf32>
    %cst_67 = arith.constant dense<0.000000e+00> : vector<8xf32>
    %169 = vector.multi_reduction <add>, %168, %cst_67 [1] : vector<8x8xf32> to vector<8xf32>
    %170 = vector.shape_cast %169 : vector<8xf32> to vector<8x1xf32>
    %171 = tpu.reciprocal %170 {approx = true} : vector<8x1xf32> -> vector<8x1xf32>
    %172 = vector.broadcast %171 : vector<8x1xf32> to vector<8x8xf32>
    %173 = arith.mulf %168, %172 : vector<8x8xf32>
    %174 = arith.addf %156, %173 : vector<8x8xf32>
    %175 = arith.truncf %173 : vector<8x8xf32> to vector<8x8xbf16>
    %176 = vector.extract_strided_slice %140 {offsets = [0, 32], sizes = [8, 32], strides = [1, 1]} : vector<8x128xbf16> to vector<8x32xbf16>
    %cst_68 = arith.constant dense<0.000000e+00> : vector<8x32xf32>
    %177 = tpu.matmul %175, %176, %cst_68 {dimension_numbers = #tpu.dot_dimension_numbers<[1], [0], [0], [1], [0, 0, 1, 1], [], []>} : vector<8x8xbf16>, vector<8x32xbf16>, vector<8x32xf32> -> vector<8x32xf32>
    %178 = vector.extract_strided_slice %138 {offsets = [0, 64], sizes = [8, 32], strides = [1, 1]} : vector<8x128xbf16> to vector<8x32xbf16>
    %179 = vector.extract_strided_slice %139 {offsets = [0, 64], sizes = [8, 32], strides = [1, 1]} : vector<8x128xbf16> to vector<8x32xbf16>
    %cst_69 = arith.constant dense<0.000000e+00> : vector<8x8xf32>
    %180 = tpu.matmul %178, %179, %cst_69 {dimension_numbers = #tpu.dot_dimension_numbers<[1], [1], [0], [0], [0, 0, 1, 0], [], []>} : vector<8x32xbf16>, vector<8x32xbf16>, vector<8x8xf32> -> vector<8x8xf32>
    %181 = arith.addf %180, %17 : vector<8x8xf32>
    %cst_70 = arith.constant dense<0xFF800000> : vector<8xf32>
    %182 = vector.multi_reduction <maximumf>, %181, %cst_70 [1] : vector<8x8xf32> to vector<8xf32>
    %183 = vector.shape_cast %182 : vector<8xf32> to vector<8x1xf32>
    %184 = vector.broadcast %183 : vector<8x1xf32> to vector<8x8xf32>
    %185 = arith.subf %181, %184 : vector<8x8xf32>
    %186 = math.exp %185 : vector<8x8xf32>
    %cst_71 = arith.constant dense<0.000000e+00> : vector<8xf32>
    %187 = vector.multi_reduction <add>, %186, %cst_71 [1] : vector<8x8xf32> to vector<8xf32>
    %188 = vector.shape_cast %187 : vector<8xf32> to vector<8x1xf32>
    %189 = tpu.reciprocal %188 {approx = true} : vector<8x1xf32> -> vector<8x1xf32>
    %190 = vector.broadcast %189 : vector<8x1xf32> to vector<8x8xf32>
    %191 = arith.mulf %186, %190 : vector<8x8xf32>
    %192 = arith.addf %174, %191 : vector<8x8xf32>
    %193 = arith.truncf %191 : vector<8x8xf32> to vector<8x8xbf16>
    %194 = vector.extract_strided_slice %140 {offsets = [0, 64], sizes = [8, 32], strides = [1, 1]} : vector<8x128xbf16> to vector<8x32xbf16>
    %cst_72 = arith.constant dense<0.000000e+00> : vector<8x32xf32>
    %195 = tpu.matmul %193, %194, %cst_72 {dimension_numbers = #tpu.dot_dimension_numbers<[1], [0], [0], [1], [0, 0, 1, 1], [], []>} : vector<8x8xbf16>, vector<8x32xbf16>, vector<8x32xf32> -> vector<8x32xf32>
    %196 = vector.extract_strided_slice %138 {offsets = [0, 96], sizes = [8, 32], strides = [1, 1]} : vector<8x128xbf16> to vector<8x32xbf16>
    %197 = vector.extract_strided_slice %139 {offsets = [0, 96], sizes = [8, 32], strides = [1, 1]} : vector<8x128xbf16> to vector<8x32xbf16>
    %cst_73 = arith.constant dense<0.000000e+00> : vector<8x8xf32>
    %198 = tpu.matmul %196, %197, %cst_73 {dimension_numbers = #tpu.dot_dimension_numbers<[1], [1], [0], [0], [0, 0, 1, 0], [], []>} : vector<8x32xbf16>, vector<8x32xbf16>, vector<8x8xf32> -> vector<8x8xf32>
    %199 = arith.addf %198, %17 : vector<8x8xf32>
    %cst_74 = arith.constant dense<0xFF800000> : vector<8xf32>
    %200 = vector.multi_reduction <maximumf>, %199, %cst_74 [1] : vector<8x8xf32> to vector<8xf32>
    %201 = vector.shape_cast %200 : vector<8xf32> to vector<8x1xf32>
    %202 = vector.broadcast %201 : vector<8x1xf32> to vector<8x8xf32>
    %203 = arith.subf %199, %202 : vector<8x8xf32>
    %204 = math.exp %203 : vector<8x8xf32>
    %cst_75 = arith.constant dense<0.000000e+00> : vector<8xf32>
    %205 = vector.multi_reduction <add>, %204, %cst_75 [1] : vector<8x8xf32> to vector<8xf32>
    %206 = vector.shape_cast %205 : vector<8xf32> to vector<8x1xf32>
    %207 = tpu.reciprocal %206 {approx = true} : vector<8x1xf32> -> vector<8x1xf32>
    %208 = vector.broadcast %207 : vector<8x1xf32> to vector<8x8xf32>
    %209 = arith.mulf %204, %208 : vector<8x8xf32>
    %210 = arith.addf %192, %209 : vector<8x8xf32>
    %211 = arith.truncf %209 : vector<8x8xf32> to vector<8x8xbf16>
    %212 = vector.extract_strided_slice %140 {offsets = [0, 96], sizes = [8, 32], strides = [1, 1]} : vector<8x128xbf16> to vector<8x32xbf16>
    %cst_76 = arith.constant dense<0.000000e+00> : vector<8x32xf32>
    %213 = tpu.matmul %211, %212, %cst_76 {dimension_numbers = #tpu.dot_dimension_numbers<[1], [0], [0], [1], [0, 0, 1, 1], [], []>} : vector<8x8xbf16>, vector<8x32xbf16>, vector<8x32xf32> -> vector<8x32xf32>
    %214 = tpu.concatenate %159, %177, %195, %213 in 1 : vector<8x32xf32>, vector<8x32xf32>, vector<8x32xf32>, vector<8x32xf32> -> vector<8x128xf32>
    %215 = arith.truncf %214 : vector<8x128xf32> to vector<8x128xbf16>
    %cst_77 = arith.constant dense<0.000000e+00> : vector<8x128xf32>
    %216 = tpu.matmul %215, %134, %cst_77 {dimension_numbers = #tpu.dot_dimension_numbers<[1], [0], [0], [1], [0, 0, 1, 1], [], []>} : vector<8x128xbf16>, vector<128x128xbf16>, vector<8x128xf32> -> vector<8x128xf32>
    %217 = vector.broadcast %135 : vector<1x128xf32> to vector<8x128xf32>
    %218 = arith.addf %216, %217 : vector<8x128xf32>
    %cst_78 = arith.constant 2.500000e-01 : f32
    %219 = vector.broadcast %cst_78 : f32 to vector<8x8xf32>
    %220 = arith.mulf %210, %219 : vector<8x8xf32>
    %221 = arith.addf %120, %218 : vector<8x128xf32>
    %c0_79 = arith.constant 0 : index
    %c0_80 = arith.constant 0 : index
    %222 = vector.load %arg21[%c0_79, %c0_80] : memref<1x128xf32, #tpu.memory_space<vmem>>, vector<1x128xf32>
    %223 = vector.broadcast %222 : vector<1x128xf32> to vector<8x128xf32>
    %224 = arith.mulf %221, %223 : vector<8x128xf32>
    %c0_81 = arith.constant 0 : index
    %c0_82 = arith.constant 0 : index
    %225 = vector.load %arg22[%c0_81, %c0_82] : memref<1x128xf32, #tpu.memory_space<vmem>>, vector<1x128xf32>
    %226 = vector.broadcast %225 : vector<1x128xf32> to vector<8x128xf32>
    %227 = arith.addf %224, %226 : vector<8x128xf32>
    %228 = arith.truncf %227 : vector<8x128xf32> to vector<8x128xbf16>
    %c0_83 = arith.constant 0 : index
    %c0_84 = arith.constant 0 : index
    %229 = vector.load %arg15[%c0_83, %c0_84] : memref<128x256xbf16, #tpu.memory_space<vmem>>, vector<128x256xbf16>
    %cst_85 = arith.constant dense<0.000000e+00> : vector<8x256xf32>
    %230 = tpu.matmul %228, %229, %cst_85 {dimension_numbers = #tpu.dot_dimension_numbers<[1], [0], [0], [1], [0, 0, 1, 1], [], []>} : vector<8x128xbf16>, vector<128x256xbf16>, vector<8x256xf32> -> vector<8x256xf32>
    %c0_86 = arith.constant 0 : index
    %c0_87 = arith.constant 0 : index
    %231 = vector.load %arg16[%c0_86, %c0_87] : memref<1x256xf32, #tpu.memory_space<vmem>>, vector<1x256xf32>
    %232 = vector.broadcast %231 : vector<1x256xf32> to vector<8x256xf32>
    %233 = arith.addf %230, %232 : vector<8x256xf32>
    %cst_88 = arith.constant 0.000000e+00 : f32
    %234 = vector.broadcast %cst_88 : f32 to vector<8x256xf32>
    %235 = arith.maximumf %233, %234 : vector<8x256xf32>
    %236 = arith.truncf %235 : vector<8x256xf32> to vector<8x256xbf16>
    %c0_89 = arith.constant 0 : index
    %c0_90 = arith.constant 0 : index
    %237 = vector.load %arg17[%c0_89, %c0_90] : memref<256x128xbf16, #tpu.memory_space<vmem>>, vector<256x128xbf16>
    %cst_91 = arith.constant dense<0.000000e+00> : vector<8x128xf32>
    %238 = tpu.matmul %236, %237, %cst_91 {dimension_numbers = #tpu.dot_dimension_numbers<[1], [0], [0], [1], [0, 0, 1, 1], [], []>} : vector<8x256xbf16>, vector<256x128xbf16>, vector<8x128xf32> -> vector<8x128xf32>
    %c0_92 = arith.constant 0 : index
    %c0_93 = arith.constant 0 : index
    %239 = vector.load %arg18[%c0_92, %c0_93] : memref<1x128xf32, #tpu.memory_space<vmem>>, vector<1x128xf32>
    %240 = vector.broadcast %239 : vector<1x128xf32> to vector<8x128xf32>
    %241 = arith.addf %238, %240 : vector<8x128xf32>
    %cst_94 = arith.constant 0.000000e+00 : f32
    %242 = vector.broadcast %cst_94 : f32 to vector<8x128xf32>
    %243 = arith.maximumf %241, %242 : vector<8x128xf32>
    %244 = arith.addf %243, %227 : vector<8x128xf32>
    %c0_95 = arith.constant 0 : index
    %c0_96 = arith.constant 0 : index
    %245 = vector.load %arg23[%c0_95, %c0_96] : memref<1x128xf32, #tpu.memory_space<vmem>>, vector<1x128xf32>
    %246 = vector.broadcast %245 : vector<1x128xf32> to vector<8x128xf32>
    %247 = arith.mulf %244, %246 : vector<8x128xf32>
    %c0_97 = arith.constant 0 : index
    %c0_98 = arith.constant 0 : index
    %248 = vector.load %arg24[%c0_97, %c0_98] : memref<1x128xf32, #tpu.memory_space<vmem>>, vector<1x128xf32>
    %249 = vector.broadcast %248 : vector<1x128xf32> to vector<8x128xf32>
    %250 = arith.addf %247, %249 : vector<8x128xf32>
    %c0_99 = arith.constant 0 : index
    %c0_100 = arith.constant 0 : index
    %c0_101 = arith.constant 0 : index
    %251 = vector.load %arg25[%c0_99, %c0_100, %c0_101] : memref<1x8x128xf32, #tpu.memory_space<vmem>>, vector<1x8x128xf32>
    %252 = vector.shape_cast %251 : vector<1x8x128xf32> to vector<8x128xf32>
    %253 = vector.shape_cast %250 : vector<8x128xf32> to vector<1x8x128xf32>
    tpu.vector_store %arg25[%c0_99, %c0_100, %c0_101], %253 {strides = array<i32>} : memref<1x8x128xf32, #tpu.memory_space<vmem>>, vector<1x8x128xf32>,
    %c0_102 = arith.constant 0 : index
    %c0_103 = arith.constant 0 : index
    %c0_104 = arith.constant 0 : index
    %254 = vector.load %arg26[%c0_102, %c0_103, %c0_104] : memref<1x8x8xf32, #tpu.memory_space<vmem>>, vector<1x8x8xf32>
    %255 = vector.shape_cast %254 : vector<1x8x8xf32> to vector<8x8xf32>
    %256 = vector.shape_cast %112 : vector<8x8xf32> to vector<1x8x8xf32>
    tpu.vector_store %arg26[%c0_102, %c0_103, %c0_104], %256 {strides = array<i32>} : memref<1x8x8xf32, #tpu.memory_space<vmem>>, vector<1x8x8xf32>,
    %c0_105 = arith.constant 0 : index
    %c0_106 = arith.constant 0 : index
    %c0_107 = arith.constant 0 : index
    %257 = vector.load %arg27[%c0_105, %c0_106, %c0_107] : memref<1x8x8xf32, #tpu.memory_space<vmem>>, vector<1x8x8xf32>
    %258 = vector.shape_cast %257 : vector<1x8x8xf32> to vector<8x8xf32>
    %259 = vector.shape_cast %220 : vector<8x8xf32> to vector<1x8x8xf32>
    tpu.vector_store %arg27[%c0_105, %c0_106, %c0_107], %259 {strides = array<i32>} : memref<1x8x8xf32, #tpu.memory_space<vmem>>, vector<1x8x8xf32>,
    return
  }
  func.func @transform_0(%arg0: i32) -> (i32, i32, i32) {
    %c0_i32 = arith.constant 0 : i32
    %c0_i32_0 = arith.constant 0 : i32
    %c0_i32_1 = arith.constant 0 : i32
    return %arg0, %c0_i32, %c0_i32_0 : i32, i32, i32
  }
  func.func @transform_1(%arg0: i32) -> (i32, i32, i32) {
    %c0_i32 = arith.constant 0 : i32
    %c0_i32_0 = arith.constant 0 : i32
    %c0_i32_1 = arith.constant 0 : i32
    return %arg0, %c0_i32, %c0_i32_0 : i32, i32, i32
  }
  func.func @transform_2(%arg0: i32) -> (i32, i32, i32) {
    %c0_i32 = arith.constant 0 : i32
    %c0_i32_0 = arith.constant 0 : i32
    %c0_i32_1 = arith.constant 0 : i32
    return %arg0, %c0_i32, %c0_i32_0 : i32, i32, i32
  }
  func.func @transform_3(%arg0: i32) -> (i32, i32, i32) {
    %c0_i32 = arith.constant 0 : i32
    %c0_i32_0 = arith.constant 0 : i32
    %c0_i32_1 = arith.constant 0 : i32
    return %arg0, %c0_i32, %c0_i32_0 : i32, i32, i32
  }
  func.func @transform_4(%arg0: i32) -> (i32, i32) {
    %c0_i32 = arith.constant 0 : i32
    %c0_i32_0 = arith.constant 0 : i32
    %c0_i32_1 = arith.constant 0 : i32
    return %c0_i32, %c0_i32_0 : i32, i32
  }
  func.func @transform_5(%arg0: i32) -> (i32, i32) {
    %c0_i32 = arith.constant 0 : i32
    %c0_i32_0 = arith.constant 0 : i32
    %c0_i32_1 = arith.constant 0 : i32
    return %c0_i32, %c0_i32_0 : i32, i32
  }
  func.func @transform_6(%arg0: i32) -> (i32, i32) {
    %c0_i32 = arith.constant 0 : i32
    %c0_i32_0 = arith.constant 0 : i32
    %c0_i32_1 = arith.constant 0 : i32
    return %c0_i32, %c0_i32_0 : i32, i32
  }
  func.func @transform_7(%arg0: i32) -> (i32, i32) {
    %c0_i32 = arith.constant 0 : i32
    %c0_i32_0 = arith.constant 0 : i32
    %c0_i32_1 = arith.constant 0 : i32
    return %c0_i32, %c0_i32_0 : i32, i32
  }
  func.func @transform_8(%arg0: i32) -> (i32, i32) {
    %c0_i32 = arith.constant 0 : i32
    %c0_i32_0 = arith.constant 0 : i32
    %c0_i32_1 = arith.constant 0 : i32
    return %c0_i32, %c0_i32_0 : i32, i32
  }
  func.func @transform_9(%arg0: i32) -> (i32, i32) {
    %c0_i32 = arith.constant 0 : i32
    %c0_i32_0 = arith.constant 0 : i32
    %c0_i32_1 = arith.constant 0 : i32
    return %c0_i32, %c0_i32_0 : i32, i32
  }
  func.func @transform_10(%arg0: i32) -> (i32, i32) {
    %c0_i32 = arith.constant 0 : i32
    %c0_i32_0 = arith.constant 0 : i32
    %c0_i32_1 = arith.constant 0 : i32
    return %c0_i32, %c0_i32_0 : i32, i32
  }
  func.func @transform_11(%arg0: i32) -> (i32, i32) {
    %c0_i32 = arith.constant 0 : i32
    %c0_i32_0 = arith.constant 0 : i32
    %c0_i32_1 = arith.constant 0 : i32
    return %c0_i32, %c0_i32_0 : i32, i32
  }
  func.func @transform_12(%arg0: i32) -> (i32, i32) {
    %c0_i32 = arith.constant 0 : i32
    %c0_i32_0 = arith.constant 0 : i32
    %c0_i32_1 = arith.constant 0 : i32
    return %c0_i32, %c0_i32_0 : i32, i32
  }
  func.func @transform_13(%arg0: i32) -> (i32, i32) {
    %c0_i32 = arith.constant 0 : i32
    %c0_i32_0 = arith.constant 0 : i32
    %c0_i32_1 = arith.constant 0 : i32
    return %c0_i32, %c0_i32_0 : i32, i32
  }
  func.func @transform_14(%arg0: i32) -> (i32, i32) {
    %c0_i32 = arith.constant 0 : i32
    %c0_i32_0 = arith.constant 0 : i32
    %c0_i32_1 = arith.constant 0 : i32
    return %c0_i32, %c0_i32_0 : i32, i32
  }
  func.func @transform_15(%arg0: i32) -> (i32, i32) {
    %c0_i32 = arith.constant 0 : i32
    %c0_i32_0 = arith.constant 0 : i32
    %c0_i32_1 = arith.constant 0 : i32
    return %c0_i32, %c0_i32_0 : i32, i32
  }
  func.func @transform_16(%arg0: i32) -> (i32, i32) {
    %c0_i32 = arith.constant 0 : i32
    %c0_i32_0 = arith.constant 0 : i32
    %c0_i32_1 = arith.constant 0 : i32
    return %c0_i32, %c0_i32_0 : i32, i32
  }
  func.func @transform_17(%arg0: i32) -> (i32, i32) {
    %c0_i32 = arith.constant 0 : i32
    %c0_i32_0 = arith.constant 0 : i32
    %c0_i32_1 = arith.constant 0 : i32
    return %c0_i32, %c0_i32_0 : i32, i32
  }
  func.func @transform_18(%arg0: i32) -> (i32, i32) {
    %c0_i32 = arith.constant 0 : i32
    %c0_i32_0 = arith.constant 0 : i32
    %c0_i32_1 = arith.constant 0 : i32
    return %c0_i32, %c0_i32_0 : i32, i32
  }
  func.func @transform_19(%arg0: i32) -> (i32, i32) {
    %c0_i32 = arith.constant 0 : i32
    %c0_i32_0 = arith.constant 0 : i32
    %c0_i32_1 = arith.constant 0 : i32
    return %c0_i32, %c0_i32_0 : i32, i32
  }
  func.func @transform_20(%arg0: i32) -> (i32, i32) {
    %c0_i32 = arith.constant 0 : i32
    %c0_i32_0 = arith.constant 0 : i32
    %c0_i32_1 = arith.constant 0 : i32
    return %c0_i32, %c0_i32_0 : i32, i32
  }
  func.func @transform_21(%arg0: i32) -> (i32, i32) {
    %c0_i32 = arith.constant 0 : i32
    %c0_i32_0 = arith.constant 0 : i32
    %c0_i32_1 = arith.constant 0 : i32
    return %c0_i32, %c0_i32_0 : i32, i32
  }
  func.func @transform_22(%arg0: i32) -> (i32, i32) {
    %c0_i32 = arith.constant 0 : i32
    %c0_i32_0 = arith.constant 0 : i32
    %c0_i32_1 = arith.constant 0 : i32
    return %c0_i32, %c0_i32_0 : i32, i32
  }
  func.func @transform_23(%arg0: i32) -> (i32, i32) {
    %c0_i32 = arith.constant 0 : i32
    %c0_i32_0 = arith.constant 0 : i32
    %c0_i32_1 = arith.constant 0 : i32
    return %c0_i32, %c0_i32_0 : i32, i32
  }
  func.func @transform_24(%arg0: i32) -> (i32, i32, i32) {
    %c0_i32 = arith.constant 0 : i32
    %c0_i32_0 = arith.constant 0 : i32
    %c0_i32_1 = arith.constant 0 : i32
    return %arg0, %c0_i32, %c0_i32_0 : i32, i32, i32
  }
  func.func @transform_25(%arg0: i32) -> (i32, i32, i32) {
    %c0_i32 = arith.constant 0 : i32
    %c0_i32_0 = arith.constant 0 : i32
    %c0_i32_1 = arith.constant 0 : i32
    return %arg0, %c0_i32, %c0_i32_0 : i32, i32, i32
  }
  func.func @transform_26(%arg0: i32) -> (i32, i32, i32) {
    %c0_i32 = arith.constant 0 : i32
    %c0_i32_0 = arith.constant 0 : i32
    %c0_i32_1 = arith.constant 0 : i32
    return %arg0, %c0_i32, %c0_i32_0 : i32, i32, i32
  }
}

module attributes {stable_mosaic.version = 11 : i64} {
  func.func @_decoder_layer_kernel(%arg0: i32, %arg1: memref<1x8x128xbf16, #tpu.memory_space<vmem>>, %arg2: memref<1x8x128xbf16, #tpu.memory_space<vmem>>, %arg3: memref<1x1x8xf32, #tpu.memory_space<vmem>>, %arg4: memref<1x1x8xf32, #tpu.memory_space<vmem>>, %arg5: memref<128x384xbf16, #tpu.memory_space<vmem>>, %arg6: memref<1x384xf32, #tpu.memory_space<vmem>>, %arg7: memref<128x128xbf16, #tpu.memory_space<vmem>>, %arg8: memref<1x128xf32, #tpu.memory_space<vmem>>, %arg9: memref<128x128xbf16, #tpu.memory_space<vmem>>, %arg10: memref<1x128xf32, #tpu.memory_space<vmem>>, %arg11: memref<128x256xbf16, #tpu.memory_space<vmem>>, %arg12: memref<1x256xf32, #tpu.memory_space<vmem>>, %arg13: memref<128x128xbf16, #tpu.memory_space<vmem>>, %arg14: memref<1x128xf32, #tpu.memory_space<vmem>>, %arg15: memref<128x256xbf16, #tpu.memory_space<vmem>>, %arg16: memref<1x256xf32, #tpu.memory_space<vmem>>, %arg17: memref<256x128xbf16, #tpu.memory_space<vmem>>, %arg18: memref<1x128xf32, #tpu.memory_space<vmem>>, %arg19: memref<1x128xf32, #tpu.memory_space<vmem>>, %arg20: memref<1x128xf32, #tpu.memory_space<vmem>>, %arg21: memref<1x128xf32, #tpu.memory_space<vmem>>, %arg22: memref<1x128xf32, #tpu.memory_space<vmem>>, %arg23: memref<1x128xf32, #tpu.memory_space<vmem>>, %arg24: memref<1x128xf32, #tpu.memory_space<vmem>>, %arg25: memref<1x8x128xf32, #tpu.memory_space<vmem>>, %arg26: memref<1x8x8xf32, #tpu.memory_space<vmem>>, %arg27: memref<1x8x8xf32, #tpu.memory_space<vmem>>) attributes {dimension_semantics = [#tpu.dimension_semantics<parallel>], iteration_bounds = array<i64: 2>, scalar_prefetch = 0 : i64, scratch_operands = 0 : i64, tpu.core_type = #tpu.core_type<tc>, window_params = [{transform_indices = @transform_0, window_bounds = array<i64: 1, 8, 128>}, {transform_indices = @transform_1, window_bounds = array<i64: 1, 8, 128>}, {transform_indices = @transform_2, window_bounds = array<i64: 1, 1, 8>}, {transform_indices = @transform_3, window_bounds = array<i64: 1, 1, 8>}, {pipeline_mode = #tpu.pipeline_mode<synchronous>, transform_indices = @transform_4, window_bounds = array<i64: 128, 384>}, {pipeline_mode = #tpu.pipeline_mode<synchronous>, transform_indices = @transform_5, window_bounds = array<i64: 1, 384>}, {pipeline_mode = #tpu.pipeline_mode<synchronous>, transform_indices = @transform_6, window_bounds = array<i64: 128, 128>}, {pipeline_mode = #tpu.pipeline_mode<synchronous>, transform_indices = @transform_7, window_bounds = array<i64: 1, 128>}, {pipeline_mode = #tpu.pipeline_mode<synchronous>, transform_indices = @transform_8, window_bounds = array<i64: 128, 128>}, {pipeline_mode = #tpu.pipeline_mode<synchronous>, transform_indices = @transform_9, window_bounds = array<i64: 1, 128>}, {pipeline_mode = #tpu.pipeline_mode<synchronous>, transform_indices = @transform_10, window_bounds = array<i64: 128, 256>}, {pipeline_mode = #tpu.pipeline_mode<synchronous>, transform_indices = @transform_11, window_bounds = array<i64: 1, 256>}, {pipeline_mode = #tpu.pipeline_mode<synchronous>, transform_indices = @transform_12, window_bounds = array<i64: 128, 128>}, {pipeline_mode = #tpu.pipeline_mode<synchronous>, transform_indices = @transform_13, window_bounds = array<i64: 1, 128>}, {pipeline_mode = #tpu.pipeline_mode<synchronous>, transform_indices = @transform_14, window_bounds = array<i64: 128, 256>}, {pipeline_mode = #tpu.pipeline_mode<synchronous>, transform_indices = @transform_15, window_bounds = array<i64: 1, 256>}, {pipeline_mode = #tpu.pipeline_mode<synchronous>, transform_indices = @transform_16, window_bounds = array<i64: 256, 128>}, {pipeline_mode = #tpu.pipeline_mode<synchronous>, transform_indices = @transform_17, window_bounds = array<i64: 1, 128>}, {pipeline_mode = #tpu.pipeline_mode<synchronous>, transform_indices = @transform_18, window_bounds = array<i64: 1, 128>}, {pipeline_mode = #tpu.pipeline_mode<synchronous>, transform_indices = @transform_19, window_bounds = array<i64: 1, 128>}, {pipeline_mode = #tpu.pipeline_mode<synchronous>, transform_indices = @transform_20, window_bounds = array<i64: 1, 128>}, {pipeline_mode = #tpu.pipeline_mode<synchronous>, transform_indices = @transform_21, window_bounds = array<i64: 1, 128>}, {pipeline_mode = #tpu.pipeline_mode<synchronous>, transform_indices = @transform_22, window_bounds = array<i64: 1, 128>}, {pipeline_mode = #tpu.pipeline_mode<synchronous>, transform_indices = @transform_23, window_bounds = array<i64: 1, 128>}, {transform_indices = @transform_24, window_bounds = array<i64: 1, 8, 128>}, {transform_indices = @transform_25, window_bounds = array<i64: 1, 8, 8>}, {transform_indices = @transform_26, window_bounds = array<i64: 1, 8, 8>}]} {
    %c0 = arith.constant 0 : index
    %c0_0 = arith.constant 0 : index
    %c0_1 = arith.constant 0 : index
    %0 = vector.load %arg1[%c0, %c0_0, %c0_1] : memref<1x8x128xbf16, #tpu.memory_space<vmem>>, vector<1x8x128xbf16>
    %1 = vector.shape_cast %0 : vector<1x8x128xbf16> to vector<8x128xbf16>
    %c0_2 = arith.constant 0 : index
    %c0_3 = arith.constant 0 : index
    %c0_4 = arith.constant 0 : index
    %2 = vector.load %arg2[%c0_2, %c0_3, %c0_4] : memref<1x8x128xbf16, #tpu.memory_space<vmem>>, vector<1x8x128xbf16>
    %3 = vector.shape_cast %2 : vector<1x8x128xbf16> to vector<8x128xbf16>
    %4 = tpu.iota {dimensions = array<i32: 0>} : vector<8x8xi32>
    %5 = tpu.iota {dimensions = array<i32: 1>} : vector<8x8xi32>
    %6 = arith.cmpi sgt, %5, %4 : vector<8x8xi32>
    %cst = arith.constant -1.000000e+30 : f32
    %cst_5 = arith.constant 0.000000e+00 : f32
    %7 = vector.broadcast %cst : f32 to vector<8x8xf32>
    %8 = vector.broadcast %cst_5 : f32 to vector<8x8xf32>
    %9 = arith.select %6, %7, %8 : vector<8x8xi1>, vector<8x8xf32>
    %c0_6 = arith.constant 0 : index
    %c0_7 = arith.constant 0 : index
    %c0_8 = arith.constant 0 : index
    %10 = vector.load %arg3[%c0_6, %c0_7, %c0_8] : memref<1x1x8xf32, #tpu.memory_space<vmem>>, vector<1x1x8xf32>
    %11 = vector.shape_cast %10 : vector<1x1x8xf32> to vector<1x8xf32>
    %12 = vector.broadcast %11 : vector<1x8xf32> to vector<8x8xf32>
    %13 = arith.addf %9, %12 : vector<8x8xf32>
    %c0_9 = arith.constant 0 : index
    %c0_10 = arith.constant 0 : index
    %c0_11 = arith.constant 0 : index
    %14 = vector.load %arg4[%c0_9, %c0_10, %c0_11] : memref<1x1x8xf32, #tpu.memory_space<vmem>>, vector<1x1x8xf32>
    %15 = vector.shape_cast %14 : vector<1x1x8xf32> to vector<1x8xf32>
    %16 = vector.shape_cast %15 : vector<1x8xf32> to vector<1x8xf32>
    %17 = vector.broadcast %16 : vector<1x8xf32> to vector<8x8xf32>
    %c0_12 = arith.constant 0 : index
    %c0_13 = arith.constant 0 : index
    %18 = vector.load %arg5[%c0_12, %c0_13] : memref<128x384xbf16, #tpu.memory_space<vmem>>, vector<128x384xbf16>
    %cst_14 = arith.constant dense<0.000000e+00> : vector<8x384xf32>
    %19 = tpu.matmul %1, %18, %cst_14 {dimension_numbers = #tpu.dot_dimension_numbers<[1], [0], [0], [1], [0, 0, 1, 1], [], []>} : vector<8x128xbf16>, vector<128x384xbf16>, vector<8x384xf32> -> vector<8x384xf32>
    %c0_15 = arith.constant 0 : index
    %c0_16 = arith.constant 0 : index
    %20 = vector.load %arg6[%c0_15, %c0_16] : memref<1x384xf32, #tpu.memory_space<vmem>>, vector<1x384xf32>
    %21 = vector.broadcast %20 : vector<1x384xf32> to vector<8x384xf32>
    %22 = arith.addf %19, %21 : vector<8x384xf32>
    %23 = vector.extract_strided_slice %22 {offsets = [0, 0], sizes = [8, 128], strides = [1, 1]} : vector<8x384xf32> to vector<8x128xf32>
    %24 = vector.extract_strided_slice %22 {offsets = [0, 128], sizes = [8, 128], strides = [1, 1]} : vector<8x384xf32> to vector<8x128xf32>
    %25 = vector.extract_strided_slice %22 {offsets = [0, 256], sizes = [8, 128], strides = [1, 1]} : vector<8x384xf32> to vector<8x128xf32>
    %c0_17 = arith.constant 0 : index
    %c0_18 = arith.constant 0 : index
    %26 = vector.load %arg7[%c0_17, %c0_18] : memref<128x128xbf16, #tpu.memory_space<vmem>>, vector<128x128xbf16>
    %c0_19 = arith.constant 0 : index
    %c0_20 = arith.constant 0 : index
    %27 = vector.load %arg8[%c0_19, %c0_20] : memref<1x128xf32, #tpu.memory_space<vmem>>, vector<1x128xf32>
    %cst_21 = arith.constant 0.176776692 : f32
    %28 = vector.broadcast %cst_21 : f32 to vector<8x128xf32>
    %29 = arith.mulf %23, %28 : vector<8x128xf32>
    %30 = arith.truncf %29 : vector<8x128xf32> to vector<8x128xbf16>
    %31 = arith.truncf %24 : vector<8x128xf32> to vector<8x128xbf16>
    %32 = arith.truncf %25 : vector<8x128xf32> to vector<8x128xbf16>
    %cst_22 = arith.constant 0.000000e+00 : f32
    %33 = vector.broadcast %cst_22 : f32 to vector<8x8xf32>
    %34 = vector.extract_strided_slice %30 {offsets = [0, 0], sizes = [8, 32], strides = [1, 1]} : vector<8x128xbf16> to vector<8x32xbf16>
    %35 = vector.extract_strided_slice %31 {offsets = [0, 0], sizes = [8, 32], strides = [1, 1]} : vector<8x128xbf16> to vector<8x32xbf16>
    %cst_23 = arith.constant dense<0.000000e+00> : vector<8x8xf32>
    %36 = tpu.matmul %34, %35, %cst_23 {dimension_numbers = #tpu.dot_dimension_numbers<[1], [1], [0], [0], [0, 0, 1, 0], [], []>} : vector<8x32xbf16>, vector<8x32xbf16>, vector<8x8xf32> -> vector<8x8xf32>
    %37 = arith.addf %36, %13 : vector<8x8xf32>
    %cst_24 = arith.constant dense<0xFF800000> : vector<8xf32>
    %38 = vector.multi_reduction <maximumf>, %37, %cst_24 [1] : vector<8x8xf32> to vector<8xf32>
    %39 = vector.shape_cast %38 : vector<8xf32> to vector<8x1xf32>
    %40 = vector.broadcast %39 : vector<8x1xf32> to vector<8x8xf32>
    %41 = arith.subf %37, %40 : vector<8x8xf32>
    %42 = math.exp %41 : vector<8x8xf32>
    %cst_25 = arith.constant dense<0.000000e+00> : vector<8xf32>
    %43 = vector.multi_reduction <add>, %42, %cst_25 [1] : vector<8x8xf32> to vector<8xf32>
    %44 = vector.shape_cast %43 : vector<8xf32> to vector<8x1xf32>
    %45 = tpu.reciprocal %44 {approx = true} : vector<8x1xf32> -> vector<8x1xf32>
    %46 = vector.broadcast %45 : vector<8x1xf32> to vector<8x8xf32>
    %47 = arith.mulf %42, %46 : vector<8x8xf32>
    %48 = arith.addf %33, %47 : vector<8x8xf32>
    %49 = arith.truncf %47 : vector<8x8xf32> to vector<8x8xbf16>
    %50 = vector.extract_strided_slice %32 {offsets = [0, 0], sizes = [8, 32], strides = [1, 1]} : vector<8x128xbf16> to vector<8x32xbf16>
    %cst_26 = arith.constant dense<0.000000e+00> : vector<8x32xf32>
    %51 = tpu.matmul %49, %50, %cst_26 {dimension_numbers = #tpu.dot_dimension_numbers<[1], [0], [0], [1], [0, 0, 1, 1], [], []>} : vector<8x8xbf16>, vector<8x32xbf16>, vector<8x32xf32> -> vector<8x32xf32>
    %52 = vector.extract_strided_slice %30 {offsets = [0, 32], sizes = [8, 32], strides = [1, 1]} : vector<8x128xbf16> to vector<8x32xbf16>
    %53 = vector.extract_strided_slice %31 {offsets = [0, 32], sizes = [8, 32], strides = [1, 1]} : vector<8x128xbf16> to vector<8x32xbf16>
    %cst_27 = arith.constant dense<0.000000e+00> : vector<8x8xf32>
    %54 = tpu.matmul %52, %53, %cst_27 {dimension_numbers = #tpu.dot_dimension_numbers<[1], [1], [0], [0], [0, 0, 1, 0], [], []>} : vector<8x32xbf16>, vector<8x32xbf16>, vector<8x8xf32> -> vector<8x8xf32>
    %55 = arith.addf %54, %13 : vector<8x8xf32>
    %cst_28 = arith.constant dense<0xFF800000> : vector<8xf32>
    %56 = vector.multi_reduction <maximumf>, %55, %cst_28 [1] : vector<8x8xf32> to vector<8xf32>
    %57 = vector.shape_cast %56 : vector<8xf32> to vector<8x1xf32>
    %58 = vector.broadcast %57 : vector<8x1xf32> to vector<8x8xf32>
    %59 = arith.subf %55, %58 : vector<8x8xf32>
    %60 = math.exp %59 : vector<8x8xf32>
    %cst_29 = arith.constant dense<0.000000e+00> : vector<8xf32>
    %61 = vector.multi_reduction <add>, %60, %cst_29 [1] : vector<8x8xf32> to vector<8xf32>
    %62 = vector.shape_cast %61 : vector<8xf32> to vector<8x1xf32>
    %63 = tpu.reciprocal %62 {approx = true} : vector<8x1xf32> -> vector<8x1xf32>
    %64 = vector.broadcast %63 : vector<8x1xf32> to vector<8x8xf32>
    %65 = arith.mulf %60, %64 : vector<8x8xf32>
    %66 = arith.addf %48, %65 : vector<8x8xf32>
    %67 = arith.truncf %65 : vector<8x8xf32> to vector<8x8xbf16>
    %68 = vector.extract_strided_slice %32 {offsets = [0, 32], sizes = [8, 32], strides = [1, 1]} : vector<8x128xbf16> to vector<8x32xbf16>
    %cst_30 = arith.constant dense<0.000000e+00> : vector<8x32xf32>
    %69 = tpu.matmul %67, %68, %cst_30 {dimension_numbers = #tpu.dot_dimension_numbers<[1], [0], [0], [1], [0, 0, 1, 1], [], []>} : vector<8x8xbf16>, vector<8x32xbf16>, vector<8x32xf32> -> vector<8x32xf32>
    %70 = vector.extract_strided_slice %30 {offsets = [0, 64], sizes = [8, 32], strides = [1, 1]} : vector<8x128xbf16> to vector<8x32xbf16>
    %71 = vector.extract_strided_slice %31 {offsets = [0, 64], sizes = [8, 32], strides = [1, 1]} : vector<8x128xbf16> to vector<8x32xbf16>
    %cst_31 = arith.constant dense<0.000000e+00> : vector<8x8xf32>
    %72 = tpu.matmul %70, %71, %cst_31 {dimension_numbers = #tpu.dot_dimension_numbers<[1], [1], [0], [0], [0, 0, 1, 0], [], []>} : vector<8x32xbf16>, vector<8x32xbf16>, vector<8x8xf32> -> vector<8x8xf32>
    %73 = arith.addf %72, %13 : vector<8x8xf32>
    %cst_32 = arith.constant dense<0xFF800000> : vector<8xf32>
    %74 = vector.multi_reduction <maximumf>, %73, %cst_32 [1] : vector<8x8xf32> to vector<8xf32>
    %75 = vector.shape_cast %74 : vector<8xf32> to vector<8x1xf32>
    %76 = vector.broadcast %75 : vector<8x1xf32> to vector<8x8xf32>
    %77 = arith.subf %73, %76 : vector<8x8xf32>
    %78 = math.exp %77 : vector<8x8xf32>
    %cst_33 = arith.constant dense<0.000000e+00> : vector<8xf32>
    %79 = vector.multi_reduction <add>, %78, %cst_33 [1] : vector<8x8xf32> to vector<8xf32>
    %80 = vector.shape_cast %79 : vector<8xf32> to vector<8x1xf32>
    %81 = tpu.reciprocal %80 {approx = true} : vector<8x1xf32> -> vector<8x1xf32>
    %82 = vector.broadcast %81 : vector<8x1xf32> to vector<8x8xf32>
    %83 = arith.mulf %78, %82 : vector<8x8xf32>
    %84 = arith.addf %66, %83 : vector<8x8xf32>
    %85 = arith.truncf %83 : vector<8x8xf32> to vector<8x8xbf16>
    %86 = vector.extract_strided_slice %32 {offsets = [0, 64], sizes = [8, 32], strides = [1, 1]} : vector<8x128xbf16> to vector<8x32xbf16>
    %cst_34 = arith.constant dense<0.000000e+00> : vector<8x32xf32>
    %87 = tpu.matmul %85, %86, %cst_34 {dimension_numbers = #tpu.dot_dimension_numbers<[1], [0], [0], [1], [0, 0, 1, 1], [], []>} : vector<8x8xbf16>, vector<8x32xbf16>, vector<8x32xf32> -> vector<8x32xf32>
    %88 = vector.extract_strided_slice %30 {offsets = [0, 96], sizes = [8, 32], strides = [1, 1]} : vector<8x128xbf16> to vector<8x32xbf16>
    %89 = vector.extract_strided_slice %31 {offsets = [0, 96], sizes = [8, 32], strides = [1, 1]} : vector<8x128xbf16> to vector<8x32xbf16>
    %cst_35 = arith.constant dense<0.000000e+00> : vector<8x8xf32>
    %90 = tpu.matmul %88, %89, %cst_35 {dimension_numbers = #tpu.dot_dimension_numbers<[1], [1], [0], [0], [0, 0, 1, 0], [], []>} : vector<8x32xbf16>, vector<8x32xbf16>, vector<8x8xf32> -> vector<8x8xf32>
    %91 = arith.addf %90, %13 : vector<8x8xf32>
    %cst_36 = arith.constant dense<0xFF800000> : vector<8xf32>
    %92 = vector.multi_reduction <maximumf>, %91, %cst_36 [1] : vector<8x8xf32> to vector<8xf32>
    %93 = vector.shape_cast %92 : vector<8xf32> to vector<8x1xf32>
    %94 = vector.broadcast %93 : vector<8x1xf32> to vector<8x8xf32>
    %95 = arith.subf %91, %94 : vector<8x8xf32>
    %96 = math.exp %95 : vector<8x8xf32>
    %cst_37 = arith.constant dense<0.000000e+00> : vector<8xf32>
    %97 = vector.multi_reduction <add>, %96, %cst_37 [1] : vector<8x8xf32> to vector<8xf32>
    %98 = vector.shape_cast %97 : vector<8xf32> to vector<8x1xf32>
    %99 = tpu.reciprocal %98 {approx = true} : vector<8x1xf32> -> vector<8x1xf32>
    %100 = vector.broadcast %99 : vector<8x1xf32> to vector<8x8xf32>
    %101 = arith.mulf %96, %100 : vector<8x8xf32>
    %102 = arith.addf %84, %101 : vector<8x8xf32>
    %103 = arith.truncf %101 : vector<8x8xf32> to vector<8x8xbf16>
    %104 = vector.extract_strided_slice %32 {offsets = [0, 96], sizes = [8, 32], strides = [1, 1]} : vector<8x128xbf16> to vector<8x32xbf16>
    %cst_38 = arith.constant dense<0.000000e+00> : vector<8x32xf32>
    %105 = tpu.matmul %103, %104, %cst_38 {dimension_numbers = #tpu.dot_dimension_numbers<[1], [0], [0], [1], [0, 0, 1, 1], [], []>} : vector<8x8xbf16>, vector<8x32xbf16>, vector<8x32xf32> -> vector<8x32xf32>
    %106 = tpu.concatenate %51, %69, %87, %105 in 1 : vector<8x32xf32>, vector<8x32xf32>, vector<8x32xf32>, vector<8x32xf32> -> vector<8x128xf32>
    %107 = arith.truncf %106 : vector<8x128xf32> to vector<8x128xbf16>
    %cst_39 = arith.constant dense<0.000000e+00> : vector<8x128xf32>
    %108 = tpu.matmul %107, %26, %cst_39 {dimension_numbers = #tpu.dot_dimension_numbers<[1], [0], [0], [1], [0, 0, 1, 1], [], []>} : vector<8x128xbf16>, vector<128x128xbf16>, vector<8x128xf32> -> vector<8x128xf32>
    %109 = vector.broadcast %27 : vector<1x128xf32> to vector<8x128xf32>
    %110 = arith.addf %108, %109 : vector<8x128xf32>
    %cst_40 = arith.constant 2.500000e-01 : f32
    %111 = vector.broadcast %cst_40 : f32 to vector<8x8xf32>
    %112 = arith.mulf %102, %111 : vector<8x8xf32>
    %113 = arith.extf %1 : vector<8x128xbf16> to vector<8x128xf32>
    %114 = arith.addf %113, %110 : vector<8x128xf32>
    %c0_41 = arith.constant 0 : index
    %c0_42 = arith.constant 0 : index
    %115 = vector.load %arg19[%c0_41, %c0_42] : memref<1x128xf32, #tpu.memory_space<vmem>>, vector<1x128xf32>
    %116 = vector.broadcast %115 : vector<1x128xf32> to vector<8x128xf32>
    %117 = arith.mulf %114, %116 : vector<8x128xf32>
    %c0_43 = arith.constant 0 : index
    %c0_44 = arith.constant 0 : index
    %118 = vector.load %arg20[%c0_43, %c0_44] : memref<1x128xf32, #tpu.memory_space<vmem>>, vector<1x128xf32>
    %119 = vector.broadcast %118 : vector<1x128xf32> to vector<8x128xf32>
    %120 = arith.addf %117, %119 : vector<8x128xf32>
    %121 = arith.truncf %120 : vector<8x128xf32> to vector<8x128xbf16>
    %c0_45 = arith.constant 0 : index
    %c0_46 = arith.constant 0 : index
    %122 = vector.load %arg9[%c0_45, %c0_46] : memref<128x128xbf16, #tpu.memory_space<vmem>>, vector<128x128xbf16>
    %cst_47 = arith.constant dense<0.000000e+00> : vector<8x128xf32>
    %123 = tpu.matmul %121, %122, %cst_47 {dimension_numbers = #tpu.dot_dimension_numbers<[1], [0], [0], [1], [0, 0, 1, 1], [], []>} : vector<8x128xbf16>, vector<128x128xbf16>, vector<8x128xf32> -> vector<8x128xf32>
    %c0_48 = arith.constant 0 : index
    %c0_49 = arith.constant 0 : index
    %124 = vector.load %arg10[%c0_48, %c0_49] : memref<1x128xf32, #tpu.memory_space<vmem>>, vector<1x128xf32>
    %125 = vector.broadcast %124 : vector<1x128xf32> to vector<8x128xf32>
    %126 = arith.addf %123, %125 : vector<8x128xf32>
    %c0_50 = arith.constant 0 : index
    %c0_51 = arith.constant 0 : index
    %127 = vector.load %arg11[%c0_50, %c0_51] : memref<128x256xbf16, #tpu.memory_space<vmem>>, vector<128x256xbf16>
    %cst_52 = arith.constant dense<0.000000e+00> : vector<8x256xf32>
    %128 = tpu.matmul %3, %127, %cst_52 {dimension_numbers = #tpu.dot_dimension_numbers<[1], [0], [0], [1], [0, 0, 1, 1], [], []>} : vector<8x128xbf16>, vector<128x256xbf16>, vector<8x256xf32> -> vector<8x256xf32>
    %c0_53 = arith.constant 0 : index
    %c0_54 = arith.constant 0 : index
    %129 = vector.load %arg12[%c0_53, %c0_54] : memref<1x256xf32, #tpu.memory_space<vmem>>, vector<1x256xf32>
    %130 = vector.broadcast %129 : vector<1x256xf32> to vector<8x256xf32>
    %131 = arith.addf %128, %130 : vector<8x256xf32>
    %132 = vector.extract_strided_slice %131 {offsets = [0, 0], sizes = [8, 128], strides = [1, 1]} : vector<8x256xf32> to vector<8x128xf32>
    %133 = vector.extract_strided_slice %131 {offsets = [0, 128], sizes = [8, 128], strides = [1, 1]} : vector<8x256xf32> to vector<8x128xf32>
    %c0_55 = arith.constant 0 : index
    %c0_56 = arith.constant 0 : index
    %134 = vector.load %arg13[%c0_55, %c0_56] : memref<128x128xbf16, #tpu.memory_space<vmem>>, vector<128x128xbf16>
    %c0_57 = arith.constant 0 : index
    %c0_58 = arith.constant 0 : index
    %135 = vector.load %arg14[%c0_57, %c0_58] : memref<1x128xf32, #tpu.memory_space<vmem>>, vector<1x128xf32>
    %cst_59 = arith.constant 0.176776692 : f32
    %136 = vector.broadcast %cst_59 : f32 to vector<8x128xf32>
    %137 = arith.mulf %126, %136 : vector<8x128xf32>
    %138 = arith.truncf %137 : vector<8x128xf32> to vector<8x128xbf16>
    %139 = arith.truncf %132 : vector<8x128xf32> to vector<8x128xbf16>
    %140 = arith.truncf %133 : vector<8x128xf32> to vector<8x128xbf16>
    %cst_60 = arith.constant 0.000000e+00 : f32
    %141 = vector.broadcast %cst_60 : f32 to vector<8x8xf32>
    %142 = vector.extract_strided_slice %138 {offsets = [0, 0], sizes = [8, 32], strides = [1, 1]} : vector<8x128xbf16> to vector<8x32xbf16>
    %143 = vector.extract_strided_slice %139 {offsets = [0, 0], sizes = [8, 32], strides = [1, 1]} : vector<8x128xbf16> to vector<8x32xbf16>
    %cst_61 = arith.constant dense<0.000000e+00> : vector<8x8xf32>
    %144 = tpu.matmul %142, %143, %cst_61 {dimension_numbers = #tpu.dot_dimension_numbers<[1], [1], [0], [0], [0, 0, 1, 0], [], []>} : vector<8x32xbf16>, vector<8x32xbf16>, vector<8x8xf32> -> vector<8x8xf32>
    %145 = arith.addf %144, %17 : vector<8x8xf32>
    %cst_62 = arith.constant dense<0xFF800000> : vector<8xf32>
    %146 = vector.multi_reduction <maximumf>, %145, %cst_62 [1] : vector<8x8xf32> to vector<8xf32>
    %147 = vector.shape_cast %146 : vector<8xf32> to vector<8x1xf32>
    %148 = vector.broadcast %147 : vector<8x1xf32> to vector<8x8xf32>
    %149 = arith.subf %145, %148 : vector<8x8xf32>
    %150 = math.exp %149 : vector<8x8xf32>
    %cst_63 = arith.constant dense<0.000000e+00> : vector<8xf32>
    %151 = vector.multi_reduction <add>, %150, %cst_63 [1] : vector<8x8xf32> to vector<8xf32>
    %152 = vector.shape_cast %151 : vector<8xf32> to vector<8x1xf32>
    %153 = tpu.reciprocal %152 {approx = true} : vector<8x1xf32> -> vector<8x1xf32>
    %154 = vector.broadcast %153 : vector<8x1xf32> to vector<8x8xf32>
    %155 = arith.mulf %150, %154 : vector<8x8xf32>
    %156 = arith.addf %141, %155 : vector<8x8xf32>
    %157 = arith.truncf %155 : vector<8x8xf32> to vector<8x8xbf16>
    %158 = vector.extract_strided_slice %140 {offsets = [0, 0], sizes = [8, 32], strides = [1, 1]} : vector<8x128xbf16> to vector<8x32xbf16>
    %cst_64 = arith.constant dense<0.000000e+00> : vector<8x32xf32>
    %159 = tpu.matmul %157, %158, %cst_64 {dimension_numbers = #tpu.dot_dimension_numbers<[1], [0], [0], [1], [0, 0, 1, 1], [], []>} : vector<8x8xbf16>, vector<8x32xbf16>, vector<8x32xf32> -> vector<8x32xf32>
    %160 = vector.extract_strided_slice %138 {offsets = [0, 32], sizes = [8, 32], strides = [1, 1]} : vector<8x128xbf16> to vector<8x32xbf16>
    %161 = vector.extract_strided_slice %139 {offsets = [0, 32], sizes = [8, 32], strides = [1, 1]} : vector<8x128xbf16> to vector<8x32xbf16>
    %cst_65 = arith.constant dense<0.000000e+00> : vector<8x8xf32>
    %162 = tpu.matmul %160, %161, %cst_65 {dimension_numbers = #tpu.dot_dimension_numbers<[1], [1], [0], [0], [0, 0, 1, 0], [], []>} : vector<8x32xbf16>, vector<8x32xbf16>, vector<8x8xf32> -> vector<8x8xf32>
    %163 = arith.addf %162, %17 : vector<8x8xf32>
    %cst_66 = arith.constant dense<0xFF800000> : vector<8xf32>
    %164 = vector.multi_reduction <maximumf>, %163, %cst_66 [1] : vector<8x8xf32> to vector<8xf32>
    %165 = vector.shape_cast %164 : vector<8xf32> to vector<8x1xf32>
    %166 = vector.broadcast %165 : vector<8x1xf32> to vector<8x8xf32>
    %167 = arith.subf %163, %166 : vector<8x8xf32>
    %168 = math.exp %167 : vector<8x8xf32>
    %cst_67 = arith.constant dense<0.000000e+00> : vector<8xf32>
    %169 = vector.multi_reduction <add>, %168, %cst_67 [1] : vector<8x8xf32> to vector<8xf32>
    %170 = vector.shape_cast %169 : vector<8xf32> to vector<8x1xf32>
    %171 = tpu.reciprocal %170 {approx = true} : vector<8x1xf32> -> vector<8x1xf32>
    %172 = vector.broadcast %171 : vector<8x1xf32> to vector<8x8xf32>
    %173 = arith.mulf %168, %172 : vector<8x8xf32>
    %174 = arith.addf %156, %173 : vector<8x8xf32>
    %175 = arith.truncf %173 : vector<8x8xf32> to vector<8x8xbf16>
    %176 = vector.extract_strided_slice %140 {offsets = [0, 32], sizes = [8, 32], strides = [1, 1]} : vector<8x128xbf16> to vector<8x32xbf16>
    %cst_68 = arith.constant dense<0.000000e+00> : vector<8x32xf32>
    %177 = tpu.matmul %175, %176, %cst_68 {dimension_numbers = #tpu.dot_dimension_numbers<[1], [0], [0], [1], [0, 0, 1, 1], [], []>} : vector<8x8xbf16>, vector<8x32xbf16>, vector<8x32xf32> -> vector<8x32xf32>
    %178 = vector.extract_strided_slice %138 {offsets = [0, 64], sizes = [8, 32], strides = [1, 1]} : vector<8x128xbf16> to vector<8x32xbf16>
    %179 = vector.extract_strided_slice %139 {offsets = [0, 64], sizes = [8, 32], strides = [1, 1]} : vector<8x128xbf16> to vector<8x32xbf16>
    %cst_69 = arith.constant dense<0.000000e+00> : vector<8x8xf32>
    %180 = tpu.matmul %178, %179, %cst_69 {dimension_numbers = #tpu.dot_dimension_numbers<[1], [1], [0], [0], [0, 0, 1, 0], [], []>} : vector<8x32xbf16>, vector<8x32xbf16>, vector<8x8xf32> -> vector<8x8xf32>
    %181 = arith.addf %180, %17 : vector<8x8xf32>
    %cst_70 = arith.constant dense<0xFF800000> : vector<8xf32>
    %182 = vector.multi_reduction <maximumf>, %181, %cst_70 [1] : vector<8x8xf32> to vector<8xf32>
    %183 = vector.shape_cast %182 : vector<8xf32> to vector<8x1xf32>
    %184 = vector.broadcast %183 : vector<8x1xf32> to vector<8x8xf32>
    %185 = arith.subf %181, %184 : vector<8x8xf32>
    %186 = math.exp %185 : vector<8x8xf32>
    %cst_71 = arith.constant dense<0.000000e+00> : vector<8xf32>
    %187 = vector.multi_reduction <add>, %186, %cst_71 [1] : vector<8x8xf32> to vector<8xf32>
    %188 = vector.shape_cast %187 : vector<8xf32> to vector<8x1xf32>
    %189 = tpu.reciprocal %188 {approx = true} : vector<8x1xf32> -> vector<8x1xf32>
    %190 = vector.broadcast %189 : vector<8x1xf32> to vector<8x8xf32>
    %191 = arith.mulf %186, %190 : vector<8x8xf32>
    %192 = arith.addf %174, %191 : vector<8x8xf32>
    %193 = arith.truncf %191 : vector<8x8xf32> to vector<8x8xbf16>
    %194 = vector.extract_strided_slice %140 {offsets = [0, 64], sizes = [8, 32], strides = [1, 1]} : vector<8x128xbf16> to vector<8x32xbf16>
    %cst_72 = arith.constant dense<0.000000e+00> : vector<8x32xf32>
    %195 = tpu.matmul %193, %194, %cst_72 {dimension_numbers = #tpu.dot_dimension_numbers<[1], [0], [0], [1], [0, 0, 1, 1], [], []>} : vector<8x8xbf16>, vector<8x32xbf16>, vector<8x32xf32> -> vector<8x32xf32>
    %196 = vector.extract_strided_slice %138 {offsets = [0, 96], sizes = [8, 32], strides = [1, 1]} : vector<8x128xbf16> to vector<8x32xbf16>
    %197 = vector.extract_strided_slice %139 {offsets = [0, 96], sizes = [8, 32], strides = [1, 1]} : vector<8x128xbf16> to vector<8x32xbf16>
    %cst_73 = arith.constant dense<0.000000e+00> : vector<8x8xf32>
    %198 = tpu.matmul %196, %197, %cst_73 {dimension_numbers = #tpu.dot_dimension_numbers<[1], [1], [0], [0], [0, 0, 1, 0], [], []>} : vector<8x32xbf16>, vector<8x32xbf16>, vector<8x8xf32> -> vector<8x8xf32>
    %199 = arith.addf %198, %17 : vector<8x8xf32>
    %cst_74 = arith.constant dense<0xFF800000> : vector<8xf32>
    %200 = vector.multi_reduction <maximumf>, %199, %cst_74 [1] : vector<8x8xf32> to vector<8xf32>
    %201 = vector.shape_cast %200 : vector<8xf32> to vector<8x1xf32>
    %202 = vector.broadcast %201 : vector<8x1xf32> to vector<8x8xf32>
    %203 = arith.subf %199, %202 : vector<8x8xf32>
    %204 = math.exp %203 : vector<8x8xf32>
    %cst_75 = arith.constant dense<0.000000e+00> : vector<8xf32>
    %205 = vector.multi_reduction <add>, %204, %cst_75 [1] : vector<8x8xf32> to vector<8xf32>
    %206 = vector.shape_cast %205 : vector<8xf32> to vector<8x1xf32>
    %207 = tpu.reciprocal %206 {approx = true} : vector<8x1xf32> -> vector<8x1xf32>
    %208 = vector.broadcast %207 : vector<8x1xf32> to vector<8x8xf32>
    %209 = arith.mulf %204, %208 : vector<8x8xf32>
    %210 = arith.addf %192, %209 : vector<8x8xf32>
    %211 = arith.truncf %209 : vector<8x8xf32> to vector<8x8xbf16>
    %212 = vector.extract_strided_slice %140 {offsets = [0, 96], sizes = [8, 32], strides = [1, 1]} : vector<8x128xbf16> to vector<8x32xbf16>
    %cst_76 = arith.constant dense<0.000000e+00> : vector<8x32xf32>
    %213 = tpu.matmul %211, %212, %cst_76 {dimension_numbers = #tpu.dot_dimension_numbers<[1], [0], [0], [1], [0, 0, 1, 1], [], []>} : vector<8x8xbf16>, vector<8x32xbf16>, vector<8x32xf32> -> vector<8x32xf32>
    %214 = tpu.concatenate %159, %177, %195, %213 in 1 : vector<8x32xf32>, vector<8x32xf32>, vector<8x32xf32>, vector<8x32xf32> -> vector<8x128xf32>
    %215 = arith.truncf %214 : vector<8x128xf32> to vector<8x128xbf16>
    %cst_77 = arith.constant dense<0.000000e+00> : vector<8x128xf32>
    %216 = tpu.matmul %215, %134, %cst_77 {dimension_numbers = #tpu.dot_dimension_numbers<[1], [0], [0], [1], [0, 0, 1, 1], [], []>} : vector<8x128xbf16>, vector<128x128xbf16>, vector<8x128xf32> -> vector<8x128xf32>
    %217 = vector.broadcast %135 : vector<1x128xf32> to vector<8x128xf32>
    %218 = arith.addf %216, %217 : vector<8x128xf32>
    %cst_78 = arith.constant 2.500000e-01 : f32
    %219 = vector.broadcast %cst_78 : f32 to vector<8x8xf32>
    %220 = arith.mulf %210, %219 : vector<8x8xf32>
    %221 = arith.addf %120, %218 : vector<8x128xf32>
    %c0_79 = arith.constant 0 : index
    %c0_80 = arith.constant 0 : index
    %222 = vector.load %arg21[%c0_79, %c0_80] : memref<1x128xf32, #tpu.memory_space<vmem>>, vector<1x128xf32>
    %223 = vector.broadcast %222 : vector<1x128xf32> to vector<8x128xf32>
    %224 = arith.mulf %221, %223 : vector<8x128xf32>
    %c0_81 = arith.constant 0 : index
    %c0_82 = arith.constant 0 : index
    %225 = vector.load %arg22[%c0_81, %c0_82] : memref<1x128xf32, #tpu.memory_space<vmem>>, vector<1x128xf32>
    %226 = vector.broadcast %225 : vector<1x128xf32> to vector<8x128xf32>
    %227 = arith.addf %224, %226 : vector<8x128xf32>
    %228 = arith.truncf %227 : vector<8x128xf32> to vector<8x128xbf16>
    %c0_83 = arith.constant 0 : index
    %c0_84 = arith.constant 0 : index
    %229 = vector.load %arg15[%c0_83, %c0_84] : memref<128x256xbf16, #tpu.memory_space<vmem>>, vector<128x256xbf16>
    %cst_85 = arith.constant dense<0.000000e+00> : vector<8x256xf32>
    %230 = tpu.matmul %228, %229, %cst_85 {dimension_numbers = #tpu.dot_dimension_numbers<[1], [0], [0], [1], [0, 0, 1, 1], [], []>} : vector<8x128xbf16>, vector<128x256xbf16>, vector<8x256xf32> -> vector<8x256xf32>
    %c0_86 = arith.constant 0 : index
    %c0_87 = arith.constant 0 : index
    %231 = vector.load %arg16[%c0_86, %c0_87] : memref<1x256xf32, #tpu.memory_space<vmem>>, vector<1x256xf32>
    %232 = vector.broadcast %231 : vector<1x256xf32> to vector<8x256xf32>
    %233 = arith.addf %230, %232 : vector<8x256xf32>
    %cst_88 = arith.constant 0.000000e+00 : f32
    %234 = vector.broadcast %cst_88 : f32 to vector<8x256xf32>
    %235 = arith.maximumf %233, %234 : vector<8x256xf32>
    %236 = arith.truncf %235 : vector<8x256xf32> to vector<8x256xbf16>
    %c0_89 = arith.constant 0 : index
    %c0_90 = arith.constant 0 : index
    %237 = vector.load %arg17[%c0_89, %c0_90] : memref<256x128xbf16, #tpu.memory_space<vmem>>, vector<256x128xbf16>
    %cst_91 = arith.constant dense<0.000000e+00> : vector<8x128xf32>
    %238 = tpu.matmul %236, %237, %cst_91 {dimension_numbers = #tpu.dot_dimension_numbers<[1], [0], [0], [1], [0, 0, 1, 1], [], []>} : vector<8x256xbf16>, vector<256x128xbf16>, vector<8x128xf32> -> vector<8x128xf32>
    %c0_92 = arith.constant 0 : index
    %c0_93 = arith.constant 0 : index
    %239 = vector.load %arg18[%c0_92, %c0_93] : memref<1x128xf32, #tpu.memory_space<vmem>>, vector<1x128xf32>
    %240 = vector.broadcast %239 : vector<1x128xf32> to vector<8x128xf32>
    %241 = arith.addf %238, %240 : vector<8x128xf32>
    %cst_94 = arith.constant 0.000000e+00 : f32
    %242 = vector.broadcast %cst_94 : f32 to vector<8x128xf32>
    %243 = arith.maximumf %241, %242 : vector<8x128xf32>
    %244 = arith.addf %243, %227 : vector<8x128xf32>
    %c0_95 = arith.constant 0 : index
    %c0_96 = arith.constant 0 : index
    %245 = vector.load %arg23[%c0_95, %c0_96] : memref<1x128xf32, #tpu.memory_space<vmem>>, vector<1x128xf32>
    %246 = vector.broadcast %245 : vector<1x128xf32> to vector<8x128xf32>
    %247 = arith.mulf %244, %246 : vector<8x128xf32>
    %c0_97 = arith.constant 0 : index
    %c0_98 = arith.constant 0 : index
    %248 = vector.load %arg24[%c0_97, %c0_98] : memref<1x128xf32, #tpu.memory_space<vmem>>, vector<1x128xf32>
    %249 = vector.broadcast %248 : vector<1x128xf32> to vector<8x128xf32>
    %250 = arith.addf %247, %249 : vector<8x128xf32>
    %c0_99 = arith.constant 0 : index
    %c0_100 = arith.constant 0 : index
    %c0_101 = arith.constant 0 : index
    %251 = vector.load %arg25[%c0_99, %c0_100, %c0_101] : memref<1x8x128xf32, #tpu.memory_space<vmem>>, vector<1x8x128xf32>
    %252 = vector.shape_cast %251 : vector<1x8x128xf32> to vector<8x128xf32>
    %253 = vector.shape_cast %250 : vector<8x128xf32> to vector<1x8x128xf32>
    tpu.vector_store %arg25[%c0_99, %c0_100, %c0_101], %253 {strides = array<i32>} : memref<1x8x128xf32, #tpu.memory_space<vmem>>, vector<1x8x128xf32>,
    %c0_102 = arith.constant 0 : index
    %c0_103 = arith.constant 0 : index
    %c0_104 = arith.constant 0 : index
    %254 = vector.load %arg26[%c0_102, %c0_103, %c0_104] : memref<1x8x8xf32, #tpu.memory_space<vmem>>, vector<1x8x8xf32>
    %255 = vector.shape_cast %254 : vector<1x8x8xf32> to vector<8x8xf32>
    %256 = vector.shape_cast %112 : vector<8x8xf32> to vector<1x8x8xf32>
    tpu.vector_store %arg26[%c0_102, %c0_103, %c0_104], %256 {strides = array<i32>} : memref<1x8x8xf32, #tpu.memory_space<vmem>>, vector<1x8x8xf32>,
    %c0_105 = arith.constant 0 : index
    %c0_106 = arith.constant 0 : index
    %c0_107 = arith.constant 0 : index
    %257 = vector.load %arg27[%c0_105, %c0_106, %c0_107] : memref<1x8x8xf32, #tpu.memory_space<vmem>>, vector<1x8x8xf32>
    %258 = vector.shape_cast %257 : vector<1x8x8xf32> to vector<8x8xf32>
    %259 = vector.shape_cast %220 : vector<8x8xf32> to vector<1x8x8xf32>
    tpu.vector_store %arg27[%c0_105, %c0_106, %c0_107], %259 {strides = array<i32>} : memref<1x8x8xf32, #tpu.memory_space<vmem>>, vector<1x8x8xf32>,
    return
  }
  func.func @transform_0(%arg0: i32) -> (i32, i32, i32) {
    %c0_i32 = arith.constant 0 : i32
    %c0_i32_0 = arith.constant 0 : i32
    %c0_i32_1 = arith.constant 0 : i32
    return %arg0, %c0_i32, %c0_i32_0 : i32, i32, i32
  }
  func.func @transform_1(%arg0: i32) -> (i32, i32, i32) {
    %c0_i32 = arith.constant 0 : i32
    %c0_i32_0 = arith.constant 0 : i32
    %c0_i32_1 = arith.constant 0 : i32
    return %arg0, %c0_i32, %c0_i32_0 : i32, i32, i32
  }
  func.func @transform_2(%arg0: i32) -> (i32, i32, i32) {
    %c0_i32 = arith.constant 0 : i32
    %c0_i32_0 = arith.constant 0 : i32
    %c0_i32_1 = arith.constant 0 : i32
    return %arg0, %c0_i32, %c0_i32_0 : i32, i32, i32
  }
  func.func @transform_3(%arg0: i32) -> (i32, i32, i32) {
    %c0_i32 = arith.constant 0 : i32
    %c0_i32_0 = arith.constant 0 : i32
    %c0_i32_1 = arith.constant 0 : i32
    return %arg0, %c0_i32, %c0_i32_0 : i32, i32, i32
  }
  func.func @transform_4(%arg0: i32) -> (i32, i32) {
    %c0_i32 = arith.constant 0 : i32
    %c0_i32_0 = arith.constant 0 : i32
    %c0_i32_1 = arith.constant 0 : i32
    return %c0_i32, %c0_i32_0 : i32, i32
  }
  func.func @transform_5(%arg0: i32) -> (i32, i32) {
    %c0_i32 = arith.constant 0 : i32
    %c0_i32_0 = arith.constant 0 : i32
    %c0_i32_1 = arith.constant 0 : i32
    return %c0_i32, %c0_i32_0 : i32, i32
  }
  func.func @transform_6(%arg0: i32) -> (i32, i32) {
    %c0_i32 = arith.constant 0 : i32
    %c0_i32_0 = arith.constant 0 : i32
    %c0_i32_1 = arith.constant 0 : i32
    return %c0_i32, %c0_i32_0 : i32, i32
  }
  func.func @transform_7(%arg0: i32) -> (i32, i32) {
    %c0_i32 = arith.constant 0 : i32
    %c0_i32_0 = arith.constant 0 : i32
    %c0_i32_1 = arith.constant 0 : i32
    return %c0_i32, %c0_i32_0 : i32, i32
  }
  func.func @transform_8(%arg0: i32) -> (i32, i32) {
    %c0_i32 = arith.constant 0 : i32
    %c0_i32_0 = arith.constant 0 : i32
    %c0_i32_1 = arith.constant 0 : i32
    return %c0_i32, %c0_i32_0 : i32, i32
  }
  func.func @transform_9(%arg0: i32) -> (i32, i32) {
    %c0_i32 = arith.constant 0 : i32
    %c0_i32_0 = arith.constant 0 : i32
    %c0_i32_1 = arith.constant 0 : i32
    return %c0_i32, %c0_i32_0 : i32, i32
  }
  func.func @transform_10(%arg0: i32) -> (i32, i32) {
    %c0_i32 = arith.constant 0 : i32
    %c0_i32_0 = arith.constant 0 : i32
    %c0_i32_1 = arith.constant 0 : i32
    return %c0_i32, %c0_i32_0 : i32, i32
  }
  func.func @transform_11(%arg0: i32) -> (i32, i32) {
    %c0_i32 = arith.constant 0 : i32
    %c0_i32_0 = arith.constant 0 : i32
    %c0_i32_1 = arith.constant 0 : i32
    return %c0_i32, %c0_i32_0 : i32, i32
  }
  func.func @transform_12(%arg0: i32) -> (i32, i32) {
    %c0_i32 = arith.constant 0 : i32
    %c0_i32_0 = arith.constant 0 : i32
    %c0_i32_1 = arith.constant 0 : i32
    return %c0_i32, %c0_i32_0 : i32, i32
  }
  func.func @transform_13(%arg0: i32) -> (i32, i32) {
    %c0_i32 = arith.constant 0 : i32
    %c0_i32_0 = arith.constant 0 : i32
    %c0_i32_1 = arith.constant 0 : i32
    return %c0_i32, %c0_i32_0 : i32, i32
  }
  func.func @transform_14(%arg0: i32) -> (i32, i32) {
    %c0_i32 = arith.constant 0 : i32
    %c0_i32_0 = arith.constant 0 : i32
    %c0_i32_1 = arith.constant 0 : i32
    return %c0_i32, %c0_i32_0 : i32, i32
  }
  func.func @transform_15(%arg0: i32) -> (i32, i32) {
    %c0_i32 = arith.constant 0 : i32
    %c0_i32_0 = arith.constant 0 : i32
    %c0_i32_1 = arith.constant 0 : i32
    return %c0_i32, %c0_i32_0 : i32, i32
  }
  func.func @transform_16(%arg0: i32) -> (i32, i32) {
    %c0_i32 = arith.constant 0 : i32
    %c0_i32_0 = arith.constant 0 : i32
    %c0_i32_1 = arith.constant 0 : i32
    return %c0_i32, %c0_i32_0 : i32, i32
  }
  func.func @transform_17(%arg0: i32) -> (i32, i32) {
    %c0_i32 = arith.constant 0 : i32
    %c0_i32_0 = arith.constant 0 : i32
    %c0_i32_1 = arith.constant 0 : i32
    return %c0_i32, %c0_i32_0 : i32, i32
  }
  func.func @transform_18(%arg0: i32) -> (i32, i32) {
    %c0_i32 = arith.constant 0 : i32
    %c0_i32_0 = arith.constant 0 : i32
    %c0_i32_1 = arith.constant 0 : i32
    return %c0_i32, %c0_i32_0 : i32, i32
  }
  func.func @transform_19(%arg0: i32) -> (i32, i32) {
    %c0_i32 = arith.constant 0 : i32
    %c0_i32_0 = arith.constant 0 : i32
    %c0_i32_1 = arith.constant 0 : i32
    return %c0_i32, %c0_i32_0 : i32, i32
  }
  func.func @transform_20(%arg0: i32) -> (i32, i32) {
    %c0_i32 = arith.constant 0 : i32
    %c0_i32_0 = arith.constant 0 : i32
    %c0_i32_1 = arith.constant 0 : i32
    return %c0_i32, %c0_i32_0 : i32, i32
  }
  func.func @transform_21(%arg0: i32) -> (i32, i32) {
    %c0_i32 = arith.constant 0 : i32
    %c0_i32_0 = arith.constant 0 : i32
    %c0_i32_1 = arith.constant 0 : i32
    return %c0_i32, %c0_i32_0 : i32, i32
  }
  func.func @transform_22(%arg0: i32) -> (i32, i32) {
    %c0_i32 = arith.constant 0 : i32
    %c0_i32_0 = arith.constant 0 : i32
    %c0_i32_1 = arith.constant 0 : i32
    return %c0_i32, %c0_i32_0 : i32, i32
  }
  func.func @transform_23(%arg0: i32) -> (i32, i32) {
    %c0_i32 = arith.constant 0 : i32
    %c0_i32_0 = arith.constant 0 : i32
    %c0_i32_1 = arith.constant 0 : i32
    return %c0_i32, %c0_i32_0 : i32, i32
  }
  func.func @transform_24(%arg0: i32) -> (i32, i32, i32) {
    %c0_i32 = arith.constant 0 : i32
    %c0_i32_0 = arith.constant 0 : i32
    %c0_i32_1 = arith.constant 0 : i32
    return %arg0, %c0_i32, %c0_i32_0 : i32, i32, i32
  }
  func.func @transform_25(%arg0: i32) -> (i32, i32, i32) {
    %c0_i32 = arith.constant 0 : i32
    %c0_i32_0 = arith.constant 0 : i32
    %c0_i32_1 = arith.constant 0 : i32
    return %arg0, %c0_i32, %c0_i32_0 : i32, i32, i32
  }
  func.func @transform_26(%arg0: i32) -> (i32, i32, i32) {
    %c0_i32 = arith.constant 0 : i32
    %c0_i32_0 = arith.constant 0 : i32
    %c0_i32_1 = arith.constant 0 : i32
    return %arg0, %c0_i32, %c0_i32_0 : i32, i32, i32
  }
}

</mosaic_0001>

<bundles_post_ra>
// kernel: decoder_forward.2
= control target key start
LH: loop header
LB: loop body
LE: loop exit
PB: predicated region body
PF: predicated region fallthrough
CT: control target
= control target key end

     0   :  { %s5725_s0 = inlined_call_operand.vmem [shape: bf16[2,8,128], index: 0, kind: input, shape index: {}]   ;;  %s5726_s1 = inlined_call_operand.vmem [shape: bf16[2,8,128], index: 1, kind: input, shape index: {}]   ;;  %s5727_s2 = inlined_call_operand.vmem [shape: f32[2,1,8], index: 2, kind: input, shape index: {}]   ;;  %s5728_s3 = inlined_call_operand.vmem [shape: f32[2,1,8], index: 3, kind: input, shape index: {}]   ;;  %s5729_s4 = inlined_call_operand.vmem [shape: bf16[128,384], index: 4, kind: input, shape index: {}]   ;;  %s5730_s5 = inlined_call_operand.vmem [shape: f32[1,384], index: 5, kind: input, shape index: {}]   ;;  %s5731_s6 = inlined_call_operand.vmem [shape: bf16[128,128], index: 6, kind: input, shape index: {}]   ;;  %s5732_s7 = inlined_call_operand.hbm [shape: f32[1,128], index: 7, kind: input, shape index: {}]   ;;  %s5733_s8 = inlined_call_operand.hbm [shape: bf16[128,128], index: 8, kind: input, shape index: {}]   ;;  %s5734_s9 = inlined_call_operand.hbm [shape: f32[1,128], index: 9, kind: input, shape index: {}]   ;;  %s5735_s10 = inlined_call_operand.hbm [shape: bf16[128,256], index: 10, kind: input, shape index: {}]   ;;  %s5736_s11 = inlined_call_operand.hbm [shape: f32[1,256], index: 11, kind: input, shape index: {}]   ;;  %s5737_s12 = inlined_call_operand.hbm [shape: bf16[128,128], index: 12, kind: input, shape index: {}]   ;;  %s5738_s13 = inlined_call_operand.hbm [shape: f32[1,128], index: 13, kind: input, shape index: {}]   ;;  %s5739_s14 = inlined_call_operand.hbm [shape: bf16[128,256], index: 14, kind: input, shape index: {}]   ;;  %s5740_s15 = inlined_call_operand.hbm [shape: f32[1,256], index: 15, kind: input, shape index: {}]   ;;  %s5741_s16 = inlined_call_operand.hbm [shape: bf16[256,128], index: 16, kind: input, shape index: {}]   ;;  %s5742_s17 = inlined_call_operand.hbm [shape: f32[1,128], index: 17, kind: input, shape index: {}]   ;;  %s5743_s18 = inlined_call_operand.hbm [shape: f32[1,128], index: 18, kind: input, shape index: {}]   ;;  %s5744_s19 = inlined_call_operand.hbm [shape: f32[1,128], index: 19, kind: input, shape index: {}]   ;;  %s5745_s20 = inlined_call_operand.hbm [shape: f32[1,128], index: 20, kind: input, shape index: {}]   ;;  %s5746_s21 = inlined_call_operand.hbm [shape: f32[1,128], index: 21, kind: input, shape index: {}]   ;;  %s5747_s22 = inlined_call_operand.hbm [shape: f32[1,128], index: 22, kind: input, shape index: {}]   ;;  %s5748_s23 = inlined_call_operand.hbm [shape: f32[1,128], index: 23, kind: input, shape index: {}]   ;;  %s5749_s24 = inlined_call_operand.vmem [shape: f32[2,8,128], index: 24, kind: output, shape index: {0}]   ;;  %s5750_s25 = inlined_call_operand.hbm [shape: f32[2,8,8], index: 25, kind: output, shape index: {1}]   ;;  %s5751_s26 = inlined_call_operand.hbm [shape: f32[2,8,8], index: 26, kind: output, shape index: {2}]  }
   0x1   :  { %5774 = sst [smem:[#allocation49_spill]] %s5725_s0 }
   0x2   :  { %5775 = sst [smem:[#allocation50_spill]] %s5726_s1 }
   0x3   :  { %5776 = sst [smem:[#allocation51_spill]] %s5727_s2 }
   0x4   :  { %5777 = sst [smem:[#allocation52_spill]] %s5728_s3 }
   0x5   :  { %5778 = sst [smem:[#allocation53_spill]] %s5729_s4 }
   0x6   :  { %5779 = sst [smem:[#allocation54_spill]] %s5730_s5 }
   0x7   :  { %5780 = sst [smem:[#allocation55_spill]] %s5731_s6 }
   0x8   :  { %5781 = sst [smem:[#allocation56_spill]] %s5732_s7 }
   0x9   :  { %5782 = sst [smem:[#allocation57_spill]] %s5733_s8 }
   0xa   :  { %5783 = sst [smem:[#allocation58_spill]] %s5734_s9 }
   0xb   :  { %5784 = sst [smem:[#allocation59_spill]] %s5735_s10 }
   0xc   :  { %5785 = sst [smem:[#allocation60_spill]] %s5736_s11 }
   0xd   :  { %5786 = sst [smem:[#allocation61_spill]] %s5737_s12 }
   0xe   :  { %5787 = sst [smem:[#allocation62_spill]] %s5738_s13 }
   0xf   :  { %5788 = sst [smem:[#allocation63_spill]] %s5739_s14 }
  0x10   :  { %5789 = sst [smem:[#allocation64_spill]] %s5749_s24 }
  0x11   :  { %5790 = sst [smem:[#allocation65_spill]] %s5751_s26 }
  0x12   :  { %32 = vsyncpa [#allocation3], 0 }
  0x13   :  { %33 = vsyncpa [#allocation6], 0 }
  0x14   :  { %34 = vsyncpa [#allocation9], 0 }
  0x15   :  { %35 = vsyncpa [#allocation12], 0 }
  0x16   :  { %36 = vsyncpa [#allocation15], 0 }
  0x17   :  { %37 = vsyncpa [#allocation18], 0 }
  0x18   :  { %38 = vsyncpa [#allocation21], 0 }
  0x19   :  { %39 = vsyncpa [#allocation24], 0 }
  0x1a   :  { %40 = vsyncpa [#allocation27], 0 }
  0x1b   :  { %41 = vsyncpa [#allocation4], 0 }
  0x1c   :  { %43 = vsyncpa [#allocation4 + $0x1], 0 }
  0x1d   :  { %44 = vsyncpa [#allocation31], 0 }
  0x1e   :  { %46 = vsyncpa [#allocation31 + $0x1], 0  ;;  %s5053_s27 = smov 0   ;;  %s5055_s3 = smov 0  }
  0x1f   :  { %s5057_s7 = smov 0   ;;  %s5059_s28 = smov 0  }
  0x20 LB: > { %5791 = sst [smem:[#allocation43_spill]] %s4875_s27  ;;  %s5074_s8 = sadd.s32 4294967295, %s4887_s28   ;;  %s4887_s28 = sphi %s5059_s28, %s5848_s28   ;;  %s4883_s7 = sphi %s5057_s7, %s5850_s7   ;;  %s4879_s3 = sphi %s5055_s3, %s5852_s3   ;;  %s4875_s27 = sphi %s5053_s27, %s5851_s27  }
  0x21   : > { %5792 = sst [smem:[#allocation44_spill]] %s4883_s7  ;;  %s3503_s4 = sadd.s32 4294967294, %s4887_s28  }
  0x22   : > { %5793 = sst [smem:[#allocation45_spill]] %s4887_s28  ;;  %s5078_s29 = sadd.s32 1, %s4887_s28  }
  0x23   : > { %5794 = sst [smem:[#allocation46_spill]] %s5078_s29  ;;  %s609_s0 = sadd.s32 1, %s4883_s7 }
  0x24   : > { %s606_s9 = ssub.s32 %s4887_s28, %s5078_s29  ;;  %p619_p0 = scmp.ne.s32.totalorder %s4883_s7, %s4879_s3 }
  0x25   : > { %p607_p1 = scmp.eq.s32.totalorder %s606_s9, 0  ;;  %p620_p2 = scmp.eq.s32.totalorder %s5074_s8, 1 }
  0x26   : > { %p625_p3 = scmp.ne.s32.totalorder %s4879_s3, %s4875_s27  ;;  %p626_p4 = scmp.eq.s32.totalorder %s3503_s4, 1 }
  0x27   : > { %s5089_s30 = scalar_select %p607_p1, %s4883_s7, %s609_s0  }
  0x28   : > { %p5091_p5 = por %p620_p2, %p619_p0  ;;  %p5095_p6 = por %p626_p4, %p625_p3 }
  0x29   : > { %5795 = sst [smem:[#allocation47_spill]] %s5089_s30  ;;  %p3504_p7 = scmp.ge.s32.totalorder %s4887_s28, 1 }
  0x2a   : > { %s5796_s2 = scalar_select %p5091_p5, 1, 0 }
  0x2b   : > { %s5797_s5 = scalar_select %p5095_p6, 1, 0 }
  0x2c   : > { %p659_p8 = scmp.lt.s32.totalorder %s4887_s28, 3  ;;  %p5765_p9 = scmp.eq.s32.totalorder %s5074_s8, 0 }
  0x2d   : > { %5798 = sst [smem:[#allocation48_spill]] %s5797_s5  ;;  %s4889_s6 = smov [#allocation5]  }
  0x2e   : > { %p5102_p10 = pnand %p3504_p7, %p659_p8  ;;  %s691_s1 = sshll.u32 %s4889_s6, 4  ;;  %s692_s1 = int_to_ptr.vmem [resolvable:$true] %s691_s1 }
  0x2f   : > { %s4890_s0 = smov [#allocation8]   ;;  %s4330_s7 = scalar_lea.vmem %s692_s1, 1024 }
  0x30   : > { %s5799_s10 = scalar_select %p5102_p10, 1, 0 }
  0x31   : > { %p4014_p11 = pneg %p5102_p10  ;;  %s715_s9 = sshll.u32 %s4890_s0, 4  ;;  %s716_s9 = int_to_ptr.vmem [resolvable:$true] %s715_s9 }
  0x32   : > { %p4331_p0 = scmp.ne.s32.totalorder %s692_s1, %s4330_s7  ;;  %p4338_p3 = scmp.lt.s32.totalorder %s692_s1, %s692_s1 }
  0x33   : > { %p5110_p12 = pnand %p5765_p9, %p4014_p11  ;;  %p4339_p4 = scmp.lt.s32.totalorder %s4330_s7, %s4330_s7 }
  0x35   : > { %p5116_p13 = pneg %p5110_p12  ;;  %p4340_p7 = por %p4339_p4, %p4338_p3 }
  0x37   : > { %p4333_p1 = pnand %p4331_p0, %p5116_p13 }
  0x39   : > { %p4334_p2 = pneg %p4333_p1 }
  0x3b   : > { %p4341_p8 = pnand %p4340_p7, %p4334_p2 }
  0x3d   : > { %4344 = shalt.err (!%p4341_p8)
}
  0x3e   : > { %s5760_s6 = smov 64   ;;  %s5762_s0 = smov 4  }
  0x3f   : > { %s5802_s27 = sld [smem:[#allocation57_spill]]  ;;  %s4356_s28 = scalar_lea.vmem %s716_s9, 2048 }
  0x40   : > { %p4357_p11 = scmp.ne.s32.totalorder %s716_s9, %s4356_s28  ;;  %p4364_p3 = scmp.lt.s32.totalorder %s716_s9, %s716_s9 }
  0x41   : > { %p4365_p2 = scmp.lt.s32.totalorder %s4356_s28, %s4356_s28 }
  0x42   : > { %p4359_p0 = pnand %p4357_p11, %p5116_p13 }
  0x43   : > { %p4366_p4 = por %p4365_p2, %p4364_p3 }
  0x44   : > { %p4360_p1 = pneg %p4359_p0 }
  0x45   : > { %4020 = dma.hbm_to_vmem [thread:$0]  (!%p5110_p12), %s5802_s27, 1024, %s692_s1, [#allocation6], %s5760_s6, %s5760_s6, %s5762_s0  }
  0x46   : > { %p4367_p7 = pnand %p4366_p4, %p4360_p1 }
  0x48   : > { %4370 = shalt.err (!%p4367_p7)
}
  0x49   : > { %s4893_s7 = smov 128   ;;  %s4894_s24 = smov 8  }
  0x4a   : > { %s5803_s5 = sld [smem:[#allocation59_spill]]  ;;  %s4895_s1 = smov [#allocation11]  }
  0x4b   : > { %s739_s6 = sshll.u32 %s4895_s1, 4  ;;  %s4896_s0 = smov [#allocation14]   ;;  %s740_s6 = int_to_ptr.vmem [resolvable:$true] %s739_s6 }
  0x4c   : > { %s763_s26 = sshll.u32 %s4896_s0, 4  ;;  %s4382_s28 = scalar_lea.vmem %s740_s6, 1024  ;;  %s764_s26 = int_to_ptr.vmem [resolvable:$true] %s763_s26 }
  0x4d   : > { %p4383_p8 = scmp.ne.s32.totalorder %s740_s6, %s4382_s28  ;;  %p4390_p1 = scmp.lt.s32.totalorder %s740_s6, %s740_s6 }
  0x4e   : > { %p4391_p3 = scmp.lt.s32.totalorder %s4382_s28, %s4382_s28 }
  0x4f   : > { %p4385_p11 = pnand %p4383_p8, %p5116_p13 }
  0x50   : > { %4026 = dma.hbm_to_vmem [thread:$0]  (!%p5110_p12), %s5803_s5, 2048, %s716_s9, [#allocation9], %s4893_s7, %s4893_s7, %s4894_s24  }
  0x51   : > { %p4386_p0 = pneg %p4385_p11  ;;  %p4392_p2 = por %p4391_p3, %p4390_p1 }
  0x53   : > { %p4393_p4 = pnand %p4392_p2, %p4386_p0 }
  0x55   : > { %4396 = shalt.err (!%p4393_p4)
}
  0x56   : > { %s5804_s29 = smov 4   ;;  %s5805_s9 = smov 64  }
  0x57   : > { %s5806_s12 = sld [smem:[#allocation61_spill]]  ;;  %s4408_s0 = scalar_lea.vmem %s764_s26, 2048 }
  0x58   : > { %p4409_p7 = scmp.ne.s32.totalorder %s764_s26, %s4408_s0  ;;  %p4416_p9 = scmp.lt.s32.totalorder %s764_s26, %s764_s26 }
  0x59   : > { %p4417_p6 = scmp.lt.s32.totalorder %s4408_s0, %s4408_s0 }
  0x5a   : > { %p4411_p8 = pnand %p4409_p7, %p5116_p13 }
  0x5b   : > { %p4418_p1 = por %p4417_p6, %p4416_p9 }
  0x5c   : > { %p4412_p11 = pneg %p4411_p8 }
  0x5d   : > { %4032 = dma.hbm_to_vmem [thread:$0]  (!%p5110_p12), %s5806_s12, 1024, %s740_s6, [#allocation12], %s5805_s9, %s5805_s9, %s5804_s29  }
  0x5e   : > { %p4419_p0 = pnand %p4418_p1, %p4412_p11 }
  0x60   : > { %4422 = shalt.err (!%p4419_p0)
}
  0x61   : > { %s5807_s14 = sld [smem:[#allocation63_spill]]  ;;  %s4897_s6 = smov [#allocation17]  }
  0x62   : > { %s787_s27 = sshll.u32 %s4897_s6, 4  ;;  %s4898_s5 = smov [#allocation20]   ;;  %s788_s27 = int_to_ptr.vmem [resolvable:$true] %s787_s27 }
  0x63   : > { %s812_s12 = sshll.u32 %s4898_s5, 4  ;;  %s4434_s0 = scalar_lea.vmem %s788_s27, 2048  ;;  %s813_s12 = int_to_ptr.vmem [resolvable:$true] %s812_s12 }
  0x64   : > { %p4435_p6 = scmp.ne.s32.totalorder %s788_s27, %s4434_s0  ;;  %p4442_p2 = scmp.lt.s32.totalorder %s788_s27, %s788_s27 }
  0x65   : > { %p4443_p4 = scmp.lt.s32.totalorder %s4434_s0, %s4434_s0 }
  0x66   : > { %p4437_p9 = pnand %p4435_p6, %p5116_p13 }
  0x67   : > { %4038 = dma.hbm_to_vmem [thread:$0]  (!%p5110_p12), %s5807_s14, 2048, %s764_s26, [#allocation15], %s4893_s7, %s4893_s7, %s4894_s24  }
  0x68   : > { %p4438_p3 = pneg %p4437_p9  ;;  %p4444_p7 = por %p4443_p4, %p4442_p2 }
  0x6a   : > { %p4445_p8 = pnand %p4444_p7, %p4438_p3 }
  0x6c   : > { %4448 = shalt.err (!%p4445_p8)
}
  0x6d   : > { %4044 = dma.hbm_to_vmem [thread:$0]  (!%p5110_p12), %s5741_s16, 2048, %s788_s27, [#allocation18], %s5805_s9, %s5805_s9, %s5804_s29  }
  0x6e   : > { %s4460_s7 = scalar_lea.vmem %s813_s12, 16  ;;  %s4467_s1 = scalar_lea.vmem %s813_s12, 32 }
  0x6f   : > { %p4461_p11 = scmp.ne.s32.totalorder %s813_s12, %s4460_s7  ;;  %p4468_p6 = scmp.lt.s32.totalorder %s813_s12, %s813_s12 }
  0x70   : > { %p4469_p9 = scmp.lt.s32.totalorder %s4467_s1, %s4460_s7 }
  0x71   : > { %p4463_p1 = pnand %p4461_p11, %p5116_p13 }
  0x72   : > { %p4470_p3 = por %p4469_p9, %p4468_p6 }
  0x73   : > { %p4464_p0 = pneg %p4463_p1 }
  0x75   : > { %p4471_p2 = pnand %p4470_p3, %p4464_p0 }
  0x77   : > { %4474 = shalt.err (!%p4471_p2)
}
  0x78   : > { %4050 = dma.hbm_to_vmem [thread:$0]  (!%p5110_p12), %s5743_s18, 16, %s813_s12, [#allocation21]  }
  0x79   : > { %s4899_s5 = smov [#allocation23]   ;;  %s4900_s9 = smov [#allocation26]  }
  0x7a   : > { %s834_s29 = sshll.u32 %s4899_s5, 4  ;;  %s856_s27 = sshll.u32 %s4900_s9, 4  ;;  %s835_s29 = int_to_ptr.vmem [resolvable:$true] %s834_s29  ;;  %s857_s27 = int_to_ptr.vmem [resolvable:$true] %s856_s27 }
  0x7b   : > { %s4486_s0 = scalar_lea.vmem %s835_s29, 16  ;;  %s4493_s24 = scalar_lea.vmem %s835_s29, 32 }
  0x7c   : > { %p4487_p4 = scmp.ne.s32.totalorder %s835_s29, %s4486_s0  ;;  %p4494_p11 = scmp.lt.s32.totalorder %s835_s29, %s835_s29 }
  0x7d   : > { %p4495_p1 = scmp.lt.s32.totalorder %s4493_s24, %s4486_s0 }
  0x7e   : > { %p4489_p7 = pnand %p4487_p4, %p5116_p13 }
  0x7f   : > { %p4496_p0 = por %p4495_p1, %p4494_p11 }
  0x80   : > { %p4490_p8 = pneg %p4489_p7 }
  0x82   : > { %p4497_p6 = pnand %p4496_p0, %p4490_p8 }
  0x84   : > { %4500 = shalt.err (!%p4497_p6)
}
  0x85   : > { %4056 = dma.hbm_to_vmem [thread:$0]  (!%p5110_p12), %s5745_s20, 16, %s835_s29, [#allocation24]  }
  0x86   : > { %s4512_s7 = scalar_lea.vmem %s857_s27, 16  ;;  %s4519_s1 = scalar_lea.vmem %s857_s27, 32 }
  0x87   : > { %p4513_p9 = scmp.ne.s32.totalorder %s857_s27, %s4512_s7  ;;  %p4520_p4 = scmp.lt.s32.totalorder %s857_s27, %s857_s27 }
  0x88   : > { %p4521_p7 = scmp.lt.s32.totalorder %s4519_s1, %s4512_s7 }
  0x89   : > { %p4515_p3 = pnand %p4513_p9, %p5116_p13 }
  0x8a   : > { %p4522_p5 = por %p4521_p7, %p4520_p4 }
  0x8b   : > { %p4516_p2 = pneg %p4515_p3 }
  0x8d   : > { %p4523_p10 = pnand %p4522_p5, %p4516_p2 }
  0x8f   : > { %4526 = shalt.err (!%p4523_p10)
}
  0x90   : > { %4062 = dma.hbm_to_vmem [thread:$0]  (!%p5110_p12), %s5747_s22, 16, %s857_s27, [#allocation27]  }
  0x91   : > { %s4901_s5 = smov [#allocation2]   ;;  %s4902_s9 = smov [#allocation7]  }
  0x92   : > { %s681_s29 = sshll.u32 %s4901_s5, 4  ;;  %s705_s0 = sshll.u32 %s4902_s9, 4  ;;  %s682_s29 = int_to_ptr.vmem [resolvable:$true] %s681_s29  ;;  %s706_s0 = int_to_ptr.vmem [resolvable:$true] %s705_s0 }
  0x93   : > { %s4538_s24 = scalar_lea.vmem %s682_s29, 16  ;;  %s4545_s12 = scalar_lea.vmem %s682_s29, 32 }
  0x94   : > { %p4539_p8 = scmp.ne.s32.totalorder %s682_s29, %s4538_s24  ;;  %p4546_p5 = scmp.lt.s32.totalorder %s682_s29, %s682_s29 }
  0x95   : > { %p4547_p10 = scmp.lt.s32.totalorder %s4545_s12, %s4538_s24 }
  0x96   : > { %p4541_p11 = pnand %p4539_p8, %p5116_p13 }
  0x97   : > { %p4548_p0 = por %p4547_p10, %p4546_p5 }
  0x98   : > { %p4542_p1 = pneg %p4541_p11 }
  0x9a   : > { %p4549_p6 = pnand %p4548_p0, %p4542_p1 }
  0x9c   : > { %4552 = shalt.err (!%p4549_p6)
}
  0x9d   : > { %s5808_s7 = sld [smem:[#allocation56_spill]]  ;;  %s4564_s1 = scalar_lea.vmem %s706_s0, 16 }
  0x9e   : > { %p4565_p9 = scmp.ne.s32.totalorder %s706_s0, %s4564_s1  ;;  %s4571_s28 = scalar_lea.vmem %s706_s0, 32 }
  0x9f   : > { %p4572_p4 = scmp.lt.s32.totalorder %s706_s0, %s706_s0  ;;  %p4573_p7 = scmp.lt.s32.totalorder %s4571_s28, %s4564_s1 }
  0xa0   : > { %p4567_p3 = pnand %p4565_p9, %p5116_p13 }
  0xa1   : > { %p4574_p8 = por %p4573_p7, %p4572_p4 }
  0xa2   : > { %p4568_p2 = pneg %p4567_p3 }
  0xa3   : > { %4017 = dma.hbm_to_vmem [thread:$0]  (!%p5110_p12), %s5808_s7, 16, %s682_s29, [#allocation3]  }
  0xa4   : > { %p4575_p11 = pnand %p4574_p8, %p4568_p2 }
  0xa6   : > { %4578 = shalt.err (!%p4575_p11)
}
  0xa7   : > { %s5809_s9 = sld [smem:[#allocation58_spill]]  ;;  %s4903_s24 = smov [#allocation10]  }
  0xa8   : > { %s729_s29 = sshll.u32 %s4903_s24, 4  ;;  %s4904_s12 = smov [#allocation13]   ;;  %s730_s29 = int_to_ptr.vmem [resolvable:$true] %s729_s29 }
  0xa9   : > { %s753_s27 = sshll.u32 %s4904_s12, 4  ;;  %s4590_s26 = scalar_lea.vmem %s730_s29, 32  ;;  %s754_s27 = int_to_ptr.vmem [resolvable:$true] %s753_s27 }
  0xaa   : > { %p4591_p1 = scmp.ne.s32.totalorder %s730_s29, %s4590_s26  ;;  %p4598_p0 = scmp.lt.s32.totalorder %s730_s29, %s730_s29 }
  0xab   : > { %p4599_p6 = scmp.lt.s32.totalorder %s4590_s26, %s4590_s26 }
  0xac   : > { %p4593_p5 = pnand %p4591_p1, %p5116_p13 }
  0xad   : > { %4023 = dma.hbm_to_vmem [thread:$0]  (!%p5110_p12), %s5809_s9, 16, %s706_s0, [#allocation6]  }
  0xae   : > { %p4594_p10 = pneg %p4593_p5  ;;  %p4600_p9 = por %p4599_p6, %p4598_p0 }
  0xb0   : > { %p4601_p3 = pnand %p4600_p9, %p4594_p10 }
  0xb2   : > { %4604 = shalt.err (!%p4601_p3)
}
  0xb3   : > { %s5810_s11 = sld [smem:[#allocation60_spill]]  ;;  %s4616_s1 = scalar_lea.vmem %s754_s27, 16 }
  0xb4   : > { %p4617_p2 = scmp.ne.s32.totalorder %s754_s27, %s4616_s1  ;;  %s4623_s28 = scalar_lea.vmem %s754_s27, 32 }
  0xb5   : > { %p4624_p8 = scmp.lt.s32.totalorder %s754_s27, %s754_s27  ;;  %p4625_p11 = scmp.lt.s32.totalorder %s4623_s28, %s4616_s1 }
  0xb6   : > { %p4619_p4 = pnand %p4617_p2, %p5116_p13 }
  0xb7   : > { %p4626_p1 = por %p4625_p11, %p4624_p8 }
  0xb8   : > { %p4620_p7 = pneg %p4619_p4 }
  0xb9   : > { %4029 = dma.hbm_to_vmem [thread:$0]  (!%p5110_p12), %s5810_s11, 32, %s730_s29, [#allocation9]  }
  0xba   : > { %p4627_p5 = pnand %p4626_p1, %p4620_p7 }
  0xbc   : > { %4630 = shalt.err (!%p4627_p5)
}
  0xbd   : > { %s5811_s13 = sld [smem:[#allocation62_spill]]  ;;  %s4905_s9 = smov [#allocation16]  }
  0xbe   : > { %s777_s24 = sshll.u32 %s4905_s9, 4  ;;  %s4906_s29 = smov [#allocation19]   ;;  %s778_s24 = int_to_ptr.vmem [resolvable:$true] %s777_s24 }
  0xbf   : > { %s801_s12 = sshll.u32 %s4906_s29, 4  ;;  %s4642_s26 = scalar_lea.vmem %s778_s24, 32  ;;  %s802_s12 = int_to_ptr.vmem [resolvable:$true] %s801_s12 }
  0xc0   : > { %p4643_p10 = scmp.ne.s32.totalorder %s778_s24, %s4642_s26  ;;  %p4650_p9 = scmp.lt.s32.totalorder %s778_s24, %s778_s24 }
  0xc1   : > { %p4651_p3 = scmp.lt.s32.totalorder %s4642_s26, %s4642_s26 }
  0xc2   : > { %p4645_p0 = pnand %p4643_p10, %p5116_p13 }
  0xc3   : > { %4035 = dma.hbm_to_vmem [thread:$0]  (!%p5110_p12), %s5811_s13, 16, %s754_s27, [#allocation12]  }
  0xc4   : > { %p4646_p6 = pneg %p4645_p0  ;;  %p4652_p2 = por %p4651_p3, %p4650_p9 }
  0xc6   : > { %p4653_p4 = pnand %p4652_p2, %p4646_p6 }
  0xc8   : > { %4656 = shalt.err (!%p4653_p4)
}
  0xc9   : > { %4041 = dma.hbm_to_vmem [thread:$0]  (!%p5110_p12), %s5740_s15, 32, %s778_s24, [#allocation15]  }
  0xca   : > { %s4668_s0 = scalar_lea.vmem %s802_s12, 16  ;;  %s4675_s1 = scalar_lea.vmem %s802_s12, 32 }
  0xcb   : > { %p4669_p7 = scmp.ne.s32.totalorder %s802_s12, %s4668_s0  ;;  %p4676_p1 = scmp.lt.s32.totalorder %s802_s12, %s802_s12 }
  0xcc   : > { %p4677_p5 = scmp.lt.s32.totalorder %s4675_s1, %s4668_s0 }
  0xcd   : > { %p4671_p8 = pnand %p4669_p7, %p5116_p13 }
  0xce   : > { %p4678_p10 = por %p4677_p5, %p4676_p1 }
  0xcf   : > { %p4672_p11 = pneg %p4671_p8 }
  0xd1   : > { %p4679_p0 = pnand %p4678_p10, %p4672_p11 }
  0xd3   : > { %4682 = shalt.err (!%p4679_p0)
}
  0xd4   : > { %4047 = dma.hbm_to_vmem [thread:$0]  (!%p5110_p12), %s5742_s17, 16, %s802_s12, [#allocation18]  }
  0xd5   : > { %s4907_s5 = smov [#allocation22]   ;;  %s4908_s24 = smov [#allocation25]  }
  0xd6   : > { %s823_s9 = sshll.u32 %s4907_s5, 4  ;;  %s845_s29 = sshll.u32 %s4908_s24, 4  ;;  %s824_s9 = int_to_ptr.vmem [resolvable:$true] %s823_s9  ;;  %s846_s29 = int_to_ptr.vmem [resolvable:$true] %s845_s29 }
  0xd7   : > { %s4694_s26 = scalar_lea.vmem %s824_s9, 16  ;;  %s4701_s7 = scalar_lea.vmem %s824_s9, 32 }
  0xd8   : > { %p4695_p6 = scmp.ne.s32.totalorder %s824_s9, %s4694_s26  ;;  %p4702_p2 = scmp.lt.s32.totalorder %s824_s9, %s824_s9 }
  0xd9   : > { %p4703_p4 = scmp.lt.s32.totalorder %s4701_s7, %s4694_s26 }
  0xda   : > { %p4697_p9 = pnand %p4695_p6, %p5116_p13 }
  0xdb   : > { %p4704_p7 = por %p4703_p4, %p4702_p2 }
  0xdc   : > { %p4698_p3 = pneg %p4697_p9 }
  0xde   : > { %p4705_p8 = pnand %p4704_p7, %p4698_p3 }
  0xe0   : > { %4708 = shalt.err (!%p4705_p8)
}
  0xe1   : > { %4053 = dma.hbm_to_vmem [thread:$0]  (!%p5110_p12), %s5744_s19, 16, %s824_s9, [#allocation21]  }
  0xe2   : > { %s4720_s0 = scalar_lea.vmem %s846_s29, 16  ;;  %s4727_s1 = scalar_lea.vmem %s846_s29, 32 }
  0xe3   : > { %p4721_p11 = scmp.ne.s32.totalorder %s846_s29, %s4720_s0  ;;  %p4728_p10 = scmp.lt.s32.totalorder %s846_s29, %s846_s29 }
  0xe4   : > { %p4729_p0 = scmp.lt.s32.totalorder %s4727_s1, %s4720_s0 }
  0xe5   : > { %p4723_p1 = pnand %p4721_p11, %p5116_p13 }
  0xe6   : > { %p4730_p6 = por %p4729_p0, %p4728_p10 }
  0xe7   : > { %p4724_p5 = pneg %p4723_p1 }
  0xe9   : > { %p4731_p9 = pnand %p4730_p6, %p4724_p5 }
  0xeb   : > { %4734 = shalt.err (!%p4731_p9)
}
  0xec   : > { %4059 = dma.hbm_to_vmem [thread:$0]  (!%p5110_p12), %s5746_s21, 16, %s846_s29, [#allocation24]  }
  0xed   : > { %s4909_s5 = smov [#allocation28]  }
  0xee   : > { %s867_s9 = sshll.u32 %s4909_s5, 4  ;;  %s868_s9 = int_to_ptr.vmem [resolvable:$true] %s867_s9 }
  0xef   : > { %s4746_s24 = scalar_lea.vmem %s868_s9, 16  ;;  %s4753_s26 = scalar_lea.vmem %s868_s9, 32 }
  0xf0   : > { %p4747_p3 = scmp.ne.s32.totalorder %s868_s9, %s4746_s24  ;;  %p4754_p7 = scmp.lt.s32.totalorder %s868_s9, %s868_s9 }
  0xf1   : > { %p4755_p8 = scmp.lt.s32.totalorder %s4753_s26, %s4746_s24 }
  0xf2   : > { %p4749_p2 = pnand %p4747_p3, %p5116_p13 }
  0xf3   : > { %p4756_p11 = por %p4755_p8, %p4754_p7 }
  0xf4   : > { %p4750_p4 = pneg %p4749_p2 }
  0xf6   : > { %p4757_p1 = pnand %p4756_p11, %p4750_p4 }
  0xf8   : > { %4760 = shalt.err (!%p4757_p1)
}
  0xf9   : > { %4065 = dma.hbm_to_vmem [thread:$0]  (!%p5110_p12), %s5748_s23, 16, %s868_s9, [#allocation27]  }
  0xfa   : > { %p5812_p5 = scmp.ne.s32.totalorder %s5799_s10, 0 }
  0xfb   : > { %p5813_p10 = scmp.eq.s32.totalorder (!%p5812_p5), %s5074_s8, 0 }
  0xfc   : > { %906 = sbr.rel (%p5812_p5) target bundleno = 4257 (0x10a1), region = 116 }
 0x101   : > { %4830 = dma.done.wait (%p5813_p10), [#allocation3], 16   ;;  %p5814_p13 = pmov %p5813_p10 }
 0x102   : > { %p5815_p0 = pmov %p5813_p10 }
 0x103   : > { %4832 = vsyncadd (%p5814_p13), [#allocation3], 4294967280 }
 0x104   : > { %4834 = dma.done.wait (%p5815_p0), [#allocation6], 1040   ;;  %p5816_p6 = pmov %p5815_p0 }
 0x105   : > { %p5817_p9 = pmov %p5815_p0 }
 0x106   : > { %4836 = vsyncadd (%p5816_p6), [#allocation6], 4294966256 }
 0x107   : > { %4838 = dma.done.wait (%p5817_p9), [#allocation9], 2080   ;;  %p5818_p12 = pmov %p5815_p0 }
 0x108   : > { %p5819_p3 = pmov %p5815_p0 }
 0x109   : > { %4840 = vsyncadd (%p5818_p12), [#allocation9], 4294965216 }
 0x10a   : > { %4842 = dma.done.wait (%p5819_p3), [#allocation12], 1040   ;;  %p5820_p2 = pmov %p5815_p0 }
 0x10b   : > { %p5821_p4 = pmov %p5815_p0 }
 0x10c   : > { %4844 = vsyncadd (%p5820_p2), [#allocation12], 4294966256 }
 0x10d   : > { %4846 = dma.done.wait (%p5821_p4), [#allocation15], 2080   ;;  %p5822_p7 = pmov %p5815_p0 }
 0x10e   : > { %p5823_p8 = pmov %p5815_p0 }
 0x10f   : > { %4848 = vsyncadd (%p5822_p7), [#allocation15], 4294965216 }
 0x110   : > { %4850 = dma.done.wait (%p5823_p8), [#allocation18], 2064   ;;  %p5824_p11 = pmov %p5815_p0 }
 0x111   : > { %p5825_p1 = pmov %p5815_p0 }
 0x112   : > { %4852 = vsyncadd (%p5824_p11), [#allocation18], 4294965232 }
 0x113   : > { %4854 = dma.done.wait (%p5825_p1), [#allocation21], 32   ;;  %p5826_p5 = pmov %p5815_p0 }
 0x114   : > { %p5827_p10 = pmov %p5815_p0 }
 0x115   : > { %4856 = vsyncadd (%p5826_p5), [#allocation21], 4294967264 }
 0x116   : > { %4858 = dma.done.wait (%p5827_p10), [#allocation24], 32   ;;  %p5828_p13 = pmov %p5815_p0 }
 0x118   : > { %4860 = vsyncadd (%p5828_p13), [#allocation24], 4294967264 }
 0x119   : > { %4862 = dma.done.wait (%p5815_p0), [#allocation27], 32   ;;  %p5829_p6 = pmov %p5815_p0 }
 0x11a   : > { %v4910_v0 = vmov 0   ;;  %v4911_v1 = vmov 0.0   ;;  %s5830_s4 = sld [smem:[#allocation53_spill]]  ;;  %p1058_p9 = scmp.lt.s32.totalorder %s5074_s8, 1  ;;  %vm4912_vm0 = vmmov 0   ;;  %v1079_v27 = vlaneseq }
 0x11b   : > { %4864 = vsyncadd (%p5829_p6), [#allocation27], 4294967264  ;;  %1309 = vmatprep.mubr.bf16.mxu0 %v4910_v0  ;;  %3766 = vmatprep.subr.bf16.mxu1 %v4911_v1  ;;  %s5831_s6 = sld [smem:[#allocation49_spill]]  ;;  %vm1379_vm1 = vcmask 261120   ;;  %s5770_s28 = smov 96   ;;  %vm1443_vm2 = vcmask 1043456  }
 0x11c   : > { %s5320_s29 = scalar_select %p1058_p9, %s5074_s8, 1  ;;  %3782 = vmatprep.mubr.msk.bf16.mxu1 %vm4912_vm0, %v4911_v1  ;;  %v1080_v28 = vshrl.u32 %v1079_v27, 7  ;;  %v1082_v53 = vand.u32 127, %v1079_v27  ;;  %vm1426_vm4 = vcmask 64512   ;;  %vm1836_vm5 = vcmask 523264  }
 0x11d   : > { %s5832_s1 = sld [smem:[#allocation54_spill]]  ;;  %s5472_s30 = sand.u32 1, %s4879_s3   ;;  %vm1838_vm6 = vcmask 785408  }
 0x11e   : > { %s5769_s9 = sshll.u32 %s5320_s29, 2  ;;  %v5395_v29 = vsub.s32 0, %v1080_v28  ;;  %v5400_v31 = vsub.s32 1, %v1080_v28  ;;  %v1144_v44 = vsub.s32 2, %v1080_v28  ;;  %s5833_s7 = sld [smem:[#allocation51_spill]]  ;;  %vm1083_vm3 = vcmp.gt.s32.totalorder %v1082_v53, %v1080_v28 }
 0x11f   : > { %v1084_v54 = vsel %vm1083_vm3, -1e+30, %v4911_v1  ;;  %s5768_s10 = sshll.u32 %s5472_s30, 3  ;;  %s5834_s24 = sld [smem:[#allocation55_spill]] }
 0x120   : > { %v4167_v2 = vld [vmem:[%s5830_s4 + $0xac] ss:$12 sps:$4 sm:$0xff]   ;;  %v4169_v3 = vld [vmem:[%s5830_s4 + $0xa8] ss:$12 sps:$4 sm:$0xff]   ;;  %v4172_v5 = vld [vmem:[%s5830_s4 + $0x90] ss:$12 sps:$4 sm:$0xff]  }
 0x121   : > { %1277 = vmatprep.subr.bf16.mxu0 %v4167_v2  ;;  %v4170_v4 = vld [vmem:[%s5830_s4 + $0x94] ss:$12 sps:$4 sm:$0xff]   ;;  %v4173_v6 = vld [vmem:[%s5830_s4 + $0x7c] ss:$12 sps:$4 sm:$0xff]   ;;  %v4175_v7 = vld [vmem:[%s5830_s4 + $0x78] ss:$12 sps:$4 sm:$0xff]   ;;  %s1061_s5 = scalar_lea.vmem %s5831_s6, %s5769_s9 }
 0x122   : > { %1278 = vmatpush1.bf16.msra.mxu0 %v4169_v3  ;;  %v4176_v8 = vld [vmem:[%s5830_s4 + $0x64] ss:$12 sps:$4 sm:$0xff]   ;;  %v4178_v9 = vld [vmem:[%s5830_s4 + $0x60] ss:$12 sps:$4 sm:$0xff]   ;;  %v4181_v13 = vld [vmem:[%s5830_s4 + $0x48] ss:$12 sps:$4 sm:$0xff]  }
 0x123   : > { %1279 = vmatprep.subr.bf16.mxu0 %v4170_v4  ;;  %v4191_v10 = vld [vmem:[%s5830_s4 + $0xb0] ss:$12 sps:$4 sm:$0xff]   ;;  %v4179_v11 = vld [vmem:[%s5830_s4 + $0x4c] ss:$12 sps:$4 sm:$0xff]   ;;  %v4182_v14 = vld [vmem:[%s5830_s4 + $0x34] ss:$12 sps:$4 sm:$0xff]  }
 0x124   : > { %3767 = vmatpush3.bf16.msra.mxu1 %v4191_v10  ;;  %v4192_v12 = vld [vmem:[%s5830_s4 + $0x98] ss:$12 sps:$4 sm:$0xff]   ;;  %v4184_v15 = vld [vmem:[%s5830_s4 + $0x30] ss:$12 sps:$4 sm:$0xff]   ;;  %v4193_v16 = vld [vmem:[%s5830_s4 + $0x80] ss:$12 sps:$4 sm:$0xff]   ;;  %s1068_s12 = scalar_lea.vmem %s5833_s7, %s5320_s29 }
 0x125   : > { %3768 = vmatprep.subr.bf16.mxu1 %v4911_v1  ;;  %v4185_v17 = vld [vmem:[%s5830_s4 + $0x1c] ss:$12 sps:$4 sm:$0xff]   ;;  %v4187_v19 = vld [vmem:[%s5830_s4 + $0x18] ss:$12 sps:$4 sm:$0xff]   ;;  %v4190_v22 = vld [vmem:[%s5830_s4] ss:$12 sps:$4 sm:$0xff]  }
 0x126   : > { %1280 = vmatpush1.bf16.msra.mxu0 %v4172_v5  ;;  %v4194_v18 = vld [vmem:[%s5830_s4 + $0x68] ss:$12 sps:$4 sm:$0xff]   ;;  %v4188_v20 = vld [vmem:[%s5830_s4 + $0x4] ss:$12 sps:$4 sm:$0xff]   ;;  %v5374_v24 = vld [vmem:[%s1061_s5] sm:$0xf] }
 0x127   : > { %1281 = vmatprep.subr.bf16.mxu0 %v4173_v6  ;;  %v4195_v21 = vld [vmem:[%s5830_s4 + $0x50] ss:$12 sps:$4 sm:$0xff]   ;;  %v4196_v23 = vld [vmem:[%s5830_s4 + $0x38] ss:$12 sps:$4 sm:$0xff]   ;;  %v4197_v25 = vld [vmem:[%s5830_s4 + $0x20] ss:$12 sps:$4 sm:$0xff]  }
 0x128   : > { %3769 = vmatpush3.bf16.msra.mxu1 %v4192_v12  ;;  %v4198_v26 = vld [vmem:[%s5830_s4 + $0x8] ss:$12 sps:$4 sm:$0xff]   ;;  %v1132_v30 = vld [vmem:[%s5832_s1] sm:$0x7]  ;;  %s4914_s6 = smov 64   ;;  %s4915_s5 = smov 32  }
 0x129   : > { %3770 = vmatprep.subr.bf16.mxu1 %v4911_v1  ;;  %v1137_v32 = vrot.slane %v1132_v30, %v5395_v29  ;;  %v1141_v33 = vrot.slane %v1132_v30, %v5400_v31  ;;  %v1145_v45 = vrot.slane %v1132_v30, %v1144_v44  ;;  %v3546_v55 = vld [vmem:[%s1068_s12] ss:$0 sm:$0xff]  ;;  %s5483_s27 = scalar_lea.vmem [#allocation29], %s5768_s10  ;;  %s5836_s1 = sshll.u32 %s5320_s29, 2 }
 0x12a   : > { %1282 = vmatpush1.bf16.msra.mxu0 %v4175_v7  ;;  %v5424_v56 = vadd.f32 %v3546_v55, %v1084_v54  ;;  %s5837_s7 = sld [smem:[#allocation50_spill]]  ;;  %s5839_s10 = sshll.u32 %s5472_s30, 3 }
 0x12b   : > { %1283 = vmatprep.subr.bf16.mxu0 %v4176_v8  ;;  %s3160_s0 = scalar_lea.sflag [#allocation4], %s5472_s30  ;;  %p5840_p3 = scmp.ne.s32.totalorder %s5796_s2, 0 }
 0x12c   : > { %3771 = vmatpush3.bf16.msra.mxu1 %v4193_v16 }
 0x12d   : > { %3772 = vmatprep.subr.bf16.mxu1 %v4911_v1 }
 0x12e   : > { %1284 = vmatpush1.bf16.msra.mxu0 %v4178_v9 }
 0x12f   : > { %1285 = vmatprep.subr.bf16.mxu0 %v4179_v11 }
 0x130   : > { %3773 = vmatpush3.bf16.msra.mxu1 %v4194_v18  ;;  %s1065_s12 = scalar_lea.vmem %s5837_s7, %s5836_s1  ;;  %s5838_s1 = sld [smem:[#allocation52_spill]] }
 0x131   : > { %3774 = vmatprep.subr.bf16.mxu1 %v4911_v1  ;;  %s5633_s7 = scalar_lea.vmem [#allocation30], %s5839_s10 }
 0x132   : > { %1286 = vmatpush1.bf16.msra.mxu0 %v4181_v13 }
 0x133   : > { %1287 = vmatprep.subr.bf16.mxu0 %v4182_v14 }
 0x134   : > { %3775 = vmatpush3.bf16.msra.mxu1 %v4195_v21 }
 0x135   : > { %3776 = vmatprep.subr.bf16.mxu1 %v4911_v1 }
 0x136   : > { %1288 = vmatpush1.bf16.msra.mxu0 %v4184_v15  ;;  %s1071_s26 = scalar_lea.vmem %s5838_s1, %s5320_s29 }
 0x137   : > { %1289 = vmatprep.subr.bf16.mxu0 %v4185_v17 }
 0x138   : > { %3777 = vmatpush3.bf16.msra.mxu1 %v4196_v23 }
 0x139   : > { %3778 = vmatprep.subr.bf16.mxu1 %v4911_v1 }
 0x13a   : > { %1290 = vmatpush1.bf16.msra.mxu0 %v4187_v19 }
 0x13b   : > { %1291 = vmatprep.subr.bf16.mxu0 %v4188_v20 }
 0x13c   : > { %3779 = vmatpush3.bf16.msra.mxu1 %v4197_v25 }
 0x13d   : > { %3780 = vmatprep.subr.bf16.mxu1 %v4911_v1 }
 0x13e   : > { %1292 = vmatpush1.bf16.msra.mxu0 %v4190_v22 }
 0x13f   : > { %3810 = vmatprep.subr.bf16.mxu0 %v4911_v1 }
 0x140   : > { %3781 = vmatpush3.bf16.msra.mxu1 %v4198_v26 }
 0x141   : > { %1310 = vmatmul.mubr.bf16.vlgmr.msra.gmra.mxu0 %v5374_v24  ;;  %3786 = vmatprep.subr.bf16.mxu1 %v4911_v1 }
 0x142   : > { %3812 = vmatprep.mubr.msk.bf16.mxu0 %vm4912_vm0, %v4911_v1 }
 0x143   : > { %3783 = vmatmul.mubr.bf16.vlgmr.msra.gmra.mxu1 %v5374_v24 }
 0x144   : > { %3788 = vmatprep.mubr.msk.bf16.mxu1 %vm4912_vm0, %v4911_v1 }
 0x201   : > { %v1311_v34 = vpop.f32.mrf.mxu0 }
 0x202   : > { %v1312_v35 = vadd.f32 %v1311_v34, %v1137_v32 }
 0x203   : > { %v1313_v36 = vpop.f32.mrf.mxu0  ;;  %v1352_v46 = vpop.f32.mrf.mxu1 }
 0x204   : > { %v1314_v37 = vadd.f32 %v1313_v36, %v1141_v33  ;;  %v1375_v39 = vmul.f32 0.17677669, %v1312_v35  ;;  %v1353_v47 = vadd.f32 %v1352_v46, %v1145_v45 }
 0x205   : > { %v1315_v38 = vpop.f32.mrf.mxu0  ;;  %v3784_v48 = vpop.f32.mrf.mxu1 }
 0x206   : > { %v1377_v40 = vpack.c.bf16 %v1314_v37, %v1314_v37  ;;  %v1376_v43 = vpack.c.bf16 %v1375_v39, %v1375_v39  ;;  %v5414_v49 = vpack.c.bf16 %v1353_v47, %v1353_v47 }
 0x207   : > { %v1316_v41 = vpop.f32.mrf.mxu0  ;;  %v1355_v50 = vpop.f32.mrf.mxu1 }
 0x208   : > { %1491 = vrot.lane.b32.xlu1 %v1377_v40, %s5770_s28  ;;  %v1384_v42 = vsel %vm1379_vm1, %v1377_v40, 0  ;;  %v1445_v51 = vsel %vm1443_vm2, %v5414_v49, 0 }
 0x209   : > { %3787 = vmatpush3.bf16.xpose.msra.mxu1 %v1384_v42  ;;  %v3785_v52 = vpop.f32.mrf.mxu1 }
 0x20a   : > { %3792 = vmatprep.subr.bf16.mxu1 %v4911_v1 }
 0x20c   : > { %1488 = vrot.lane.b32.xlu1 %v1376_v43, %s5770_s28 }
 0x210   : > { %1601 = vrot.lane.b32.xlu1 %v1376_v43, %s4914_s6  ;;  %3789 = vmatmul.mubr.msk.bf16.vlgmr.msra.gmra.mxu1 %vm1379_vm1, %v1376_v43 }
 0x211   : > { %3794 = vmatprep.mubr.msk.bf16.mxu1 %vm4912_vm0, %v4911_v1  ;;  %3793 = vmatpush3.bf16.msra.mxu1 %v1445_v51 }
 0x212   : > { %3798 = vmatprep.subr.bf16.mxu1 %v4911_v1 }
 0x214   : > { %1714 = vrot.lane.b32.xlu1 %v1377_v40, %s4915_s5 }
 0x218   : > { %1712 = vrot.lane.b32.xlu1 %v1376_v43, %s4915_s5 }
 0x27a   : > { %v1492_v6 = vpop.permute.xlu1 %1491 }
 0x27b   : > { %v1497_v17 = vsel %vm1379_vm1, %v1492_v6, 0 }
 0x27e   : > { %v1489_v7 = vpop.permute.xlu1 %1488 }
 0x282   : > { %v1602_v9 = vpop.permute.xlu1 %1601 }
 0x286   : > { %v1715_v12 = vpop.permute.xlu1 %1714 }
 0x287   : > { %v1720_v13 = vsel %vm1379_vm1, %v1715_v12, 0 }
 0x28a   : > { %v1713_v18 = vpop.permute.xlu1 %1712 }
 0x2d0   : > { %v1420_v57 = vpop.f32.mrf.mxu1 }
 0x2d1   : > { %v1421_v58 = vadd.f32 %v1420_v57, %v5424_v56 }
 0x2d2   : > { %v3790_v59 = vpop.f32.mrf.mxu1 }
 0x2d3   : > { %v1427_v60 = vsel %vm1426_vm4, %v1421_v58, -inf }
 0x2d4   : > { %1428 = vmax.xlane.f32.xlu0 %v1427_v60  ;;  %v1423_v61 = vpop.f32.mrf.mxu1 }
 0x2d6   : > { %v3791_v62 = vpop.f32.mrf.mxu1 }
 0x35d   : > { %v1429_v63 = vpop.xlane.xlu0 %1428 }
 0x35e   : > { %v1430_v2 = vsub.f32 %v1421_v58, %v1429_v63 }
 0x360   : > { %v1431_v3 = vmul.f32 1.442695, %v1430_v2 }
 0x362   : > { %4287 = vpow2.f32 %v1431_v3 }
 0x36f   : > { %v4288_v4 = vpop.eup %4287 }
 0x370   : > { %v1433_v5 = vsel %vm1426_vm4, %v4288_v4, 0.0 }
 0x371   : > { %1434 = vadd.xlane.f32.xlu0 %v1433_v5 }
 0x387   : > { %1603 = vrot.lane.b32.xlu0 %v1377_v40, %s4914_s6 }
 0x3fa   : > { %v1435_v8 = vpop.xlane.xlu0 %1434 }
 0x3fb   : > { %4289 = vrcp.f32 %v1435_v8 }
 0x3fe   : > { %v1604_v10 = vpop.permute.xlu0 %1603 }
 0x3ff   : > { %v1609_v11 = vsel %vm1379_vm1, %v1604_v10, 0 }
 0x400   : > { %3811 = vmatpush3.bf16.xpose.msra.mxu0 %v1609_v11 }
 0x401   : > { %3822 = vmatprep.subr.bf16.mxu0 %v4911_v1 }
 0x407   : > { %3813 = vmatmul.mubr.msk.bf16.vlgmr.msra.gmra.mxu0 %vm1379_vm1, %v1602_v9 }
 0x408   : > { %v4290_v14 = vpop.eup %4289  ;;  %3823 = vmatpush3.bf16.xpose.msra.mxu0 %v1720_v13  ;;  %3824 = vmatprep.mubr.msk.bf16.mxu0 %vm4912_vm0, %v4911_v1 }
 0x409   : > { %v5436_v15 = vmul.f32 %v4290_v14, %v4288_v4  ;;  %3834 = vmatprep.subr.bf16.mxu0 %v4911_v1 }
 0x40b   : > { %v1439_v16 = vpack.c.bf16 %v5436_v15, %v5436_v15 }
 0x40d   : > { %3795 = vmatmul.mubr.msk.bf16.vlgmr.msra.gmra.mxu1 %vm1426_vm4, %v1439_v16 }
 0x40e   : > { %3799 = vmatpush3.bf16.xpose.msra.mxu1 %v1497_v17  ;;  %3800 = vmatprep.mubr.msk.bf16.mxu1 %vm4912_vm0, %v4911_v1 }
 0x40f   : > { %3825 = vmatmul.mubr.msk.bf16.vlgmr.msra.gmra.mxu0 %vm1379_vm1, %v1713_v18  ;;  %3804 = vmatprep.subr.bf16.mxu1 %v4911_v1 }
 0x410   : > { %3850 = vmatprep.mubr.msk.bf16.mxu0 %vm4912_vm0, %v4911_v1 }
 0x415   : > { %3801 = vmatmul.mubr.msk.bf16.vlgmr.msra.gmra.mxu1 %vm1379_vm1, %v1489_v7 }
 0x416   : > { %3806 = vmatprep.mubr.msk.bf16.mxu1 %vm4912_vm0, %v4911_v1 }
 0x4c7   : > { %v1645_v19 = vpop.f32.mrf.mxu0 }
 0x4c8   : > { %v1646_v20 = vadd.f32 %v1645_v19, %v5424_v56  ;;  %v4199_v19 = vld [vmem:[%s5834_s24 + $0x38] sm:$0xff]  }
 0x4c9   : > { %v3814_v21 = vpop.f32.mrf.mxu0  ;;  %3835 = vmatpush3.bf16.msra.mxu0 %v4199_v19  ;;  %v3590_v19 = vld [vmem:[#allocation22] ss:$0 sm:$0xff] }
 0x4ca   : > { %v1651_v22 = vsel %vm1426_vm4, %v1646_v20, -inf  ;;  %3836 = vmatprep.subr.bf16.mxu0 %v4911_v1  ;;  %v4201_v21 = vld [vmem:[%s5834_s24 + $0x28] sm:$0xff]  }
 0x4cb   : > { %1652 = vmax.xlane.f32.xlu0 %v1651_v22  ;;  %v1648_v23 = vpop.f32.mrf.mxu0  ;;  %v4202_v22 = vld [vmem:[%s5834_s24 + $0x20] sm:$0xff]  }
 0x4cc   : > { %v4203_v23 = vld [vmem:[%s5834_s24 + $0x18] sm:$0xff]  }
 0x4cd   : > { %v5454_v25 = vpop.f32.mrf.mxu1  ;;  %v3815_v26 = vpop.f32.mrf.mxu0 }
 0x4ce   : > { %v4204_v26 = vld [vmem:[%s5834_s24 + $0x10] sm:$0xff]  }
 0x4cf   : > { %v3796_v27 = vpop.f32.mrf.mxu1  ;;  %v1756_v28 = vpop.f32.mrf.mxu0 }
 0x4d0   : > { %v1757_v39 = vadd.f32 %v1756_v28, %v5424_v56  ;;  %v4205_v27 = vld [vmem:[%s5834_s24 + $0x8] sm:$0xff]  }
 0x4d1   : > { %v1484_v30 = vpop.f32.mrf.mxu1  ;;  %v3826_v32 = vpop.f32.mrf.mxu0 }
 0x4d2   : > { %v1762_v43 = vsel %vm1426_vm4, %v1757_v39, -inf  ;;  %v4206_v32 = vld [vmem:[%s5834_s24] sm:$0xff]  }
 0x4d3   : > { %v3797_v33 = vpop.f32.mrf.mxu1  ;;  %v1759_v34 = vpop.f32.mrf.mxu0 }
 0x4d5   : > { %v1533_v35 = vpop.f32.mrf.mxu1  ;;  %v3827_v36 = vpop.f32.mrf.mxu0 }
 0x4d6   : > { %v1534_v37 = vadd.f32 %v1533_v35, %v5424_v56  ;;  %v4209_v35 = vld [vmem:[#allocation8 + $0x74] ss:$8 sps:$4 sm:$0xff]  }
 0x4d7   : > { %v3802_v38 = vpop.f32.mrf.mxu1 }
 0x4d8   : > { %v1539_v40 = vsel %vm1426_vm4, %v1534_v37, -inf }
 0x4d9   : > { %1540 = vmax.xlane.f32.xlu1 %v1539_v40  ;;  %v1536_v41 = vpop.f32.mrf.mxu1 }
 0x4da   : > { %v4219_v41 = vld [vmem:[#allocation5 + $0x38] sm:$0xff]  }
 0x4db   : > { %v3803_v42 = vpop.f32.mrf.mxu1 }
 0x4dd   : > { %1763 = vmax.xlane.f32.xlu1 %v1762_v43 }
 0x554   : > { %v1653_v44 = vpop.xlane.xlu0 %1652 }
 0x555   : > { %v1654_v45 = vsub.f32 %v1646_v20, %v1653_v44  ;;  %v4200_v20 = vld [vmem:[%s5834_s24 + $0x30] sm:$0xff]  }
 0x556   : > { %3837 = vmatpush3.bf16.msra.mxu0 %v4200_v20  ;;  %v4223_v44 = vld [vmem:[#allocation5 + $0x30] sm:$0xff]  }
 0x557   : > { %v1655_v46 = vmul.f32 1.442695, %v1654_v45  ;;  %3838 = vmatprep.subr.bf16.mxu0 %v4911_v1 }
 0x559   : > { %4291 = vpow2.f32 %v1655_v46  ;;  %v4227_v46 = vld [vmem:[#allocation5 + $0x28] sm:$0xff]  }
 0x55a   : > { %3839 = vmatpush3.bf16.msra.mxu0 %v4201_v21 }
 0x55b   : > { %3840 = vmatprep.subr.bf16.mxu0 %v4911_v1 }
 0x55e   : > { %3841 = vmatpush3.bf16.msra.mxu0 %v4202_v22 }
 0x55f   : > { %3842 = vmatprep.subr.bf16.mxu0 %v4911_v1 }
 0x562   : > { %v1541_v47 = vpop.xlane.xlu1 %1540  ;;  %3843 = vmatpush3.bf16.msra.mxu0 %v4203_v23 }
 0x563   : > { %v1542_v48 = vsub.f32 %v1534_v37, %v1541_v47  ;;  %3844 = vmatprep.subr.bf16.mxu0 %v4911_v1  ;;  %v4231_v47 = vld [vmem:[#allocation5 + $0x20] sm:$0xff]  }
 0x565   : > { %v1543_v54 = vmul.f32 1.442695, %v1542_v48  ;;  %v4235_v48 = vld [vmem:[#allocation5 + $0x18] sm:$0xff]  }
 0x566   : > { %v4292_v50 = vpop.eup %4291  ;;  %v1764_v51 = vpop.xlane.xlu1 %1763  ;;  %3845 = vmatpush3.bf16.msra.mxu0 %v4204_v26 }
 0x567   : > { %v1765_v52 = vsub.f32 %v1757_v39, %v1764_v51  ;;  %v1657_v53 = vsel %vm1426_vm4, %v4292_v50, 0.0  ;;  %3846 = vmatprep.subr.bf16.mxu0 %v4911_v1 }
 0x568   : > { %1658 = vadd.xlane.f32.xlu0 %v1657_v53 }
 0x569   : > { %v1766_v55 = vmul.f32 1.442695, %v1765_v52 }
 0x56a   : > { %3847 = vmatpush3.bf16.msra.mxu0 %v4205_v27  ;;  %v2082_v27 = vld [vmem:[#allocation10] sm:$0x3] }
 0x56b   : > { %4293 = vpow2.f32 %v1766_v55  ;;  %3848 = vmatprep.subr.bf16.mxu0 %v4911_v1 }
 0x56c   : > { %4295 = vpow2.f32 %v1543_v54 }
 0x56e   : > { %3849 = vmatpush3.bf16.msra.mxu0 %v4206_v32 }
 0x56f   : > { %2174 = vmatprep.subr.bf16.mxu0 %v4209_v35 }
 0x578   : > { %v4294_v56 = vpop.eup %4293 }
 0x579   : > { %v1768_v57 = vsel %vm1426_vm4, %v4294_v56, 0.0  ;;  %v4296_v58 = vpop.eup %4295 }
 0x57a   : > { %1769 = vadd.xlane.f32.xlu1 %v1768_v57  ;;  %v1545_v59 = vsel %vm1426_vm4, %v4296_v58, 0.0 }
 0x57e   : > { %1553 = vrot.lane.b32.xlu0 %v5414_v49, %s5770_s28  ;;  %1546 = vadd.xlane.f32.xlu1 %v1545_v59  ;;  %s5835_s28 = smov 96   ;;  %v4210_v59 = vld [vmem:[#allocation8 + $0x60] ss:$8 sps:$4 sm:$0xff]  }
 0x58f   : > { %1664 = vrot.lane.b32.xlu1 %v5414_v49, %s4914_s6 }
 0x593   : > { %1775 = vrot.lane.b32.xlu1 %v5414_v49, %s4915_s5 }
 0x5f1   : > { %v1659_v60 = vpop.xlane.xlu0 %1658 }
 0x5f2   : > { %4297 = vrcp.f32 %v1659_v60  ;;  %v4215_v60 = vld [vmem:[#allocation8 + $0x54] ss:$8 sps:$4 sm:$0xff]  }
 0x5f5   : > { %v1554_v61 = vpop.permute.xlu0 %1553 }
 0x5f6   : > { %v1559_v62 = vsel %vm1443_vm2, %v1554_v61, 0  ;;  %v4213_v61 = vld [vmem:[#allocation8 + $0x50] ss:$8 sps:$4 sm:$0xff]  }
 0x5f7   : > { %3805 = vmatpush3.bf16.msra.mxu1 %v1559_v62  ;;  %v4218_v62 = vld [vmem:[#allocation8 + $0x44] ss:$8 sps:$4 sm:$0xff]  }
 0x5f8   : > { %3816 = vmatprep.subr.bf16.mxu1 %v4911_v1 }
 0x5ff   : > { %v4298_v3 = vpop.eup %4297 }
 0x600   : > { %v1661_v9 = vmul.f32 %v4298_v3, %v4292_v50  ;;  %v4226_v3 = vld [vmem:[#allocation8 + $0x24] ss:$8 sps:$4 sm:$0xff]  }
 0x602   : > { %v1663_v17 = vpack.c.bf16 %v1661_v9, %v1661_v9 }
 0x603   : > { %v1770_v63 = vpop.xlane.xlu1 %1769 }
 0x607   : > { %v1547_v2 = vpop.xlane.xlu1 %1546 }
 0x608   : > { %4299 = vrcp.f32 %v1547_v2  ;;  %v4220_v2 = vld [vmem:[#allocation8 + $0x30] ss:$8 sps:$4 sm:$0xff]  }
 0x609   : > { %4301 = vrcp.f32 %v1770_v63  ;;  %v4222_v63 = vld [vmem:[#allocation8 + $0x34] ss:$8 sps:$4 sm:$0xff]  }
 0x60b   : > { %v1665_v7 = vpop.permute.xlu1 %1664 }
 0x60c   : > { %v1670_v10 = vsel %vm1443_vm2, %v1665_v7, 0  ;;  %v4234_v7 = vld [vmem:[#allocation8 + $0x4] ss:$8 sps:$4 sm:$0xff]  }
 0x60f   : > { %v1776_v16 = vpop.permute.xlu1 %1775 }
 0x615   : > { %v4300_v4 = vpop.eup %4299 }
 0x616   : > { %v1549_v5 = vmul.f32 %v4300_v4, %v4296_v58  ;;  %v4302_v6 = vpop.eup %4301  ;;  %v4212_v58 = vld [vmem:[#allocation8 + $0x64] ss:$8 sps:$4 sm:$0xff]   ;;  %v4224_v4 = vld [vmem:[#allocation8 + $0x20] ss:$8 sps:$4 sm:$0xff]  }
 0x617   : > { %v1772_v12 = vmul.f32 %v4302_v6, %v4294_v56  ;;  %v4207_v56 = vld [vmem:[#allocation8 + $0x70] ss:$8 sps:$4 sm:$0xff]  }
 0x618   : > { %v1550_v49 = vadd.f32 %v1549_v5, %v5436_v15  ;;  %v1551_v8 = vpack.c.bf16 %v1549_v5, %v1549_v5  ;;  %v1781_v15 = vsel %vm1443_vm2, %v1776_v16, 0  ;;  %v4230_v5 = vld [vmem:[#allocation8 + $0x14] ss:$8 sps:$4 sm:$0xff]   ;;  %v4228_v6 = vld [vmem:[#allocation8 + $0x10] ss:$8 sps:$4 sm:$0xff]  }
 0x619   : > { %v1774_v18 = vpack.c.bf16 %v1772_v12, %v1772_v12 }
 0x61a   : > { %3807 = vmatmul.mubr.msk.bf16.vlgmr.msra.gmra.mxu1 %vm1426_vm4, %v1551_v8  ;;  %v1662_v11 = vadd.f32 %v1661_v9, %v1550_v49  ;;  %v4232_v49 = vld [vmem:[#allocation8] ss:$8 sps:$4 sm:$0xff]   ;;  %v1078_v8 = vld [vmem:[%s1065_s12] sm:$0xf]  ;;  %v4236_v9 = vld [vmem:[#allocation5 + $0x10] sm:$0xff]  }
 0x61b   : > { %3817 = vmatpush3.bf16.msra.mxu1 %v1670_v10  ;;  %3818 = vmatprep.mubr.msk.bf16.mxu1 %vm4912_vm0, %v4911_v1  ;;  %v4237_v10 = vld [vmem:[#allocation5 + $0x8] sm:$0xff]  }
 0x61c   : > { %3828 = vmatprep.subr.bf16.mxu1 %v4911_v1  ;;  %v1773_v13 = vadd.f32 %v1772_v12, %v1662_v11  ;;  %v4238_v11 = vld [vmem:[#allocation5] sm:$0xff]   ;;  %v3580_v12 = vld [vmem:[#allocation2] ss:$0 sm:$0xff] }
 0x61e   : > { %v1935_v14 = vmul.f32 0.25, %v1773_v13  ;;  %v1936_v13 = vunpack.c.l.bf16 %v5374_v24  ;;  %v2087_v24 = vrot.slane %v2082_v27, %v5395_v29 }
 0x620   : > { %3153 = vst.msk [vmem:[%s5483_s27] sm:$0xff] %vm1426_vm4, %v1935_v14 }
 0x622   : > { %3819 = vmatmul.mubr.msk.bf16.vlgmr.msra.gmra.mxu1 %vm1426_vm4, %v1663_v17  ;;  %v3589_v17 = vld [vmem:[#allocation20] ss:$0 sm:$0xff] }
 0x623   : > { %3829 = vmatpush3.bf16.msra.mxu1 %v1781_v15  ;;  %3830 = vmatprep.mubr.msk.bf16.mxu1 %vm4912_vm0, %v4911_v1 }
 0x624   : > { %3854 = vmatprep.subr.bf16.mxu1 %v4911_v1 }
 0x62a   : > { %3831 = vmatmul.mubr.msk.bf16.vlgmr.msra.gmra.mxu1 %vm1426_vm4, %v1774_v18 }
 0x62b   : > { %3870 = vmatprep.mubr.msk.bf16.mxu1 %vm4912_vm0, %v4911_v1  ;;  %3855 = vmatpush3.bf16.msra.mxu1 %v4219_v41 }
 0x62c   : > { %3856 = vmatprep.subr.bf16.mxu1 %v4911_v1 }
 0x62f   : > { %3857 = vmatpush3.bf16.msra.mxu1 %v4223_v44 }
 0x630   : > { %3858 = vmatprep.subr.bf16.mxu1 %v4911_v1 }
 0x633   : > { %3859 = vmatpush3.bf16.msra.mxu1 %v4227_v46 }
 0x634   : > { %3860 = vmatprep.subr.bf16.mxu1 %v4911_v1 }
 0x637   : > { %3861 = vmatpush3.bf16.msra.mxu1 %v4231_v47 }
 0x638   : > { %3862 = vmatprep.subr.bf16.mxu1 %v4911_v1 }
 0x63b   : > { %3863 = vmatpush3.bf16.msra.mxu1 %v4235_v48 }
 0x63c   : > { %3864 = vmatprep.subr.bf16.mxu1 %v4911_v1 }
 0x63f   : > { %3865 = vmatpush3.bf16.msra.mxu1 %v4236_v9 }
 0x640   : > { %3866 = vmatprep.subr.bf16.mxu1 %v4911_v1 }
 0x643   : > { %3867 = vmatpush3.bf16.msra.mxu1 %v4237_v10 }
 0x644   : > { %3868 = vmatprep.subr.bf16.mxu1 %v4911_v1 }
 0x647   : > { %3869 = vmatpush3.bf16.msra.mxu1 %v4238_v11 }
 0x648   : > { %3874 = vmatprep.subr.bf16.mxu1 %v4911_v1 }
 0x6da   : > { %v1595_v28 = vpop.f32.mrf.mxu1 }
 0x6db   : > { %1824 = vrot.lane.b32.xlu0 %v1595_v28, %s4915_s5  ;;  %v2091_v28 = vrot.slane %v2082_v27, %v5400_v31 }
 0x6dc   : > { %v3808_v30 = vpop.f32.mrf.mxu1 }
 0x6de   : > { %v1598_v33 = vpop.f32.mrf.mxu1 }
 0x6e0   : > { %v3809_v34 = vpop.f32.mrf.mxu1 }
 0x6e2   : > { %v1706_v36 = vpop.f32.mrf.mxu1 }
 0x6e3   : > { %1828 = vrot.lane.b32.xlu1 %v1706_v36, %s4914_s6 }
 0x6e4   : > { %v3820_v37 = vpop.f32.mrf.mxu1 }
 0x6e6   : > { %v1709_v38 = vpop.f32.mrf.mxu1 }
 0x6e8   : > { %v3821_v39 = vpop.f32.mrf.mxu1 }
 0x6e9   : > { %v3591_v39 = vld [vmem:[#allocation7] ss:$0 sm:$0xff] }
 0x6ea   : > { %v1817_v40 = vpop.f32.mrf.mxu1 }
 0x6eb   : > { %1832 = vrot.lane.b32.xlu0 %v1817_v40, %s5835_s28 }
 0x6ec   : > { %v3832_v42 = vpop.f32.mrf.mxu1 }
 0x6ee   : > { %v1820_v43 = vpop.f32.mrf.mxu1 }
 0x6f0   : > { %v3833_v45 = vpop.f32.mrf.mxu1 }
 0x74d   : > { %v1825_v50 = vpop.permute.xlu0 %1824 }
 0x74e   : > { %v1835_v52 = vsel %vm1379_vm1, %v5454_v25, %v1825_v50  ;;  %v4216_v25 = vld [vmem:[#allocation8 + $0x40] ss:$8 sps:$4 sm:$0xff]   ;;  %v5573_v50 = vld [vmem:[%s1071_s26] ss:$0 sm:$0xff]  ;;  %s4916_s26 = smov [#allocation29]  }
 0x74f   : > { %s4765_s10 = sshll.u32 %s4916_s26, 4  ;;  %s4766_s10 = int_to_ptr.vmem [resolvable:$false] %s4765_s10 }
 0x750   : > { %s4767_s4 = scalar_lea.vmem %s4766_s10, 256 }
 0x755   : > { %v1829_v51 = vpop.permute.xlu1 %1828 }
 0x756   : > { %v1837_v53 = vsel %vm1836_vm5, %v1835_v52, %v1829_v51 }
 0x75d   : > { %v1833_v54 = vpop.permute.xlu0 %1832 }
 0x75e   : > { %v1839_v55 = vsel %vm1838_vm6, %v1837_v53, %v1833_v54 }
 0x75f   : > { %v1840_v57 = vpack.c.bf16 %v1839_v55, %v1839_v55 }
 0x761   : > { %3851 = vmatmul.mubr.bf16.vlgmr.msra.gmra.mxu0 %v1840_v57 }
 0x762   : > { %2175 = vmatpush1.bf16.msra.mxu0 %v4207_v56  ;;  %2206 = vmatprep.mubr.bf16.mxu0 %v4910_v0 }
 0x763   : > { %2176 = vmatprep.subr.bf16.mxu0 %v4212_v58 }
 0x766   : > { %2177 = vmatpush1.bf16.msra.mxu0 %v4210_v59 }
 0x767   : > { %2178 = vmatprep.subr.bf16.mxu0 %v4215_v60 }
 0x76a   : > { %2179 = vmatpush1.bf16.msra.mxu0 %v4213_v61 }
 0x76b   : > { %2180 = vmatprep.subr.bf16.mxu0 %v4218_v62 }
 0x76e   : > { %2181 = vmatpush1.bf16.msra.mxu0 %v4216_v25 }
 0x76f   : > { %2182 = vmatprep.subr.bf16.mxu0 %v4222_v63 }
 0x772   : > { %2183 = vmatpush1.bf16.msra.mxu0 %v4220_v2 }
 0x773   : > { %2184 = vmatprep.subr.bf16.mxu0 %v4226_v3 }
 0x776   : > { %2185 = vmatpush1.bf16.msra.mxu0 %v4224_v4 }
 0x777   : > { %2186 = vmatprep.subr.bf16.mxu0 %v4230_v5 }
 0x77a   : > { %2187 = vmatpush1.bf16.msra.mxu0 %v4228_v6 }
 0x77b   : > { %2188 = vmatprep.subr.bf16.mxu0 %v4234_v7 }
 0x77e   : > { %2189 = vmatpush1.bf16.msra.mxu0 %v4232_v49 }
 0x77f   : > { %3898 = vmatprep.subr.bf16.mxu0 %v4911_v1 }
 0x781   : > { %2207 = vmatmul.mubr.bf16.vlgmr.msra.gmra.mxu0 %v1078_v8 }
 0x782   : > { %3900 = vmatprep.mubr.msk.bf16.mxu0 %vm4912_vm0, %v4911_v1 }
 0x821   : > { %v1929_v14 = vpop.f32.mrf.mxu0 }
 0x822   : > { %v1930_v16 = vadd.f32 %v3580_v12, %v1929_v14 }
 0x823   : > { %v3852_v15 = vpop.f32.mrf.mxu0 }
 0x824   : > { %v1937_v18 = vadd.f32 %v1936_v13, %v1930_v16 }
 0x825   : > { %v1932_v20 = vpop.f32.mrf.mxu0 }
 0x826   : > { %v1945_v21 = vmul.f32 %v3589_v17, %v1937_v18 }
 0x827   : > { %v3853_v22 = vpop.f32.mrf.mxu0 }
 0x828   : > { %v5551_v23 = vadd.f32 %v3590_v19, %v1945_v21 }
 0x82a   : > { %v1954_v26 = vpack.c.bf16 %v5551_v23, %v5551_v23 }
 0x82c   : > { %3871 = vmatmul.mubr.bf16.vlgmr.msra.gmra.mxu1 %v1954_v26 }
 0x82d   : > { %3876 = vmatprep.mubr.msk.bf16.mxu1 %vm4912_vm0, %v4911_v1 }
 0x841   : > { %v2208_v30 = vpop.f32.mrf.mxu0 }
 0x842   : > { %v2209_v32 = vadd.f32 %v2208_v30, %v2087_v24 }
 0x843   : > { %v2210_v33 = vpop.f32.mrf.mxu0 }
 0x844   : > { %v2234_v34 = vpack.c.bf16 %v2209_v32, %v2209_v32  ;;  %v2211_v35 = vadd.f32 %v2210_v33, %v2091_v28 }
 0x845   : > { %v2212_v36 = vpop.f32.mrf.mxu0 }
 0x846   : > { %v2240_v37 = vsel %vm1379_vm1, %v2234_v34, 0  ;;  %v5561_v43 = vpack.c.bf16 %v2211_v35, %v2211_v35 }
 0x847   : > { %v2213_v38 = vpop.f32.mrf.mxu0  ;;  %3875 = vmatpush3.bf16.xpose.msra.mxu1 %v2240_v37 }
 0x848   : > { %3880 = vmatprep.subr.bf16.mxu1 %v4911_v1  ;;  %v2299_v48 = vsel %vm1443_vm2, %v5561_v43, 0 }
 0x8ec   : > { %v2060_v40 = vpop.f32.mrf.mxu1 }
 0x8ed   : > { %v2061_v41 = vadd.f32 %v3591_v39, %v2060_v40 }
 0x8ee   : > { %v3872_v42 = vpop.f32.mrf.mxu1 }
 0x8ef   : > { %v2232_v44 = vmul.f32 0.17677669, %v2061_v41 }
 0x8f0   : > { %v2063_v45 = vpop.f32.mrf.mxu1 }
 0x8f1   : > { %v2233_v46 = vpack.c.bf16 %v2232_v44, %v2232_v44 }
 0x8f2   : > { %v3873_v47 = vpop.f32.mrf.mxu1 }
 0x8f3   : > { %3877 = vmatmul.mubr.msk.bf16.vlgmr.msra.gmra.mxu1 %vm1379_vm1, %v2233_v46 }
 0x8f4   : > { %3881 = vmatpush3.bf16.msra.mxu1 %v2299_v48  ;;  %3882 = vmatprep.mubr.msk.bf16.mxu1 %vm4912_vm0, %v4911_v1 }
 0x8f5   : > { %3886 = vmatprep.subr.bf16.mxu1 %v4911_v1 }
 0x9b3   : > { %v2276_v51 = vpop.f32.mrf.mxu1 }
 0x9b4   : > { %v2277_v52 = vadd.f32 %v5573_v50, %v2276_v51 }
 0x9b5   : > { %v3878_v53 = vpop.f32.mrf.mxu1 }
 0x9b6   : > { %v2282_v54 = vsel %vm1426_vm4, %v2277_v52, -inf }
 0x9b7   : > { %2283 = vmax.xlane.f32.xlu1 %v2282_v54  ;;  %v2279_v55 = vpop.f32.mrf.mxu1 }
 0x9b9   : > { %v3879_v56 = vpop.f32.mrf.mxu1 }
 0x9c8   : > { %2342 = vrot.lane.b32.xlu1 %v2233_v46, %s5835_s28 }
 0x9cc   : > { %2457 = vrot.lane.b32.xlu1 %v2234_v34, %s4914_s6 }
 0x9d0   : > { %2568 = vrot.lane.b32.xlu1 %v2234_v34, %s4915_s5 }
 0xa40   : > { %v2284_v57 = vpop.xlane.xlu1 %2283 }
 0xa41   : > { %v2285_v58 = vsub.f32 %v2277_v52, %v2284_v57 }
 0xa43   : > { %v2286_v59 = vmul.f32 1.442695, %v2285_v58 }
 0xa44   : > { %v2343_v60 = vpop.permute.xlu1 %2342 }
 0xa45   : > { %4303 = vpow2.f32 %v2286_v59 }
 0xa48   : > { %v2458_v61 = vpop.permute.xlu1 %2457 }
 0xa49   : > { %v2463_v62 = vsel %vm1379_vm1, %v2458_v61, 0 }
 0xa4a   : > { %3899 = vmatpush3.bf16.xpose.msra.mxu0 %v2463_v62 }
 0xa4b   : > { %3910 = vmatprep.subr.bf16.mxu0 %v4911_v1 }
 0xa4c   : > { %v2569_v4 = vpop.permute.xlu1 %2568 }
 0xa4d   : > { %v2574_v6 = vsel %vm1379_vm1, %v2569_v4, 0 }
 0xa52   : > { %v4304_v25 = vpop.eup %4303 }
 0xa53   : > { %v2288_v63 = vsel %vm1426_vm4, %v4304_v25, 0.0 }
 0xa54   : > { %2289 = vadd.xlane.f32.xlu0 %v2288_v63 }
 0xa6a   : > { %2345 = vrot.lane.b32.xlu0 %v2234_v34, %s5835_s28 }
 0xa6e   : > { %2455 = vrot.lane.b32.xlu0 %v2233_v46, %s4914_s6 }
 0xa72   : > { %2566 = vrot.lane.b32.xlu0 %v2233_v46, %s4915_s5 }
 0xadd   : > { %v2290_v2 = vpop.xlane.xlu0 %2289 }
 0xade   : > { %4305 = vrcp.f32 %v2290_v2 }
 0xae1   : > { %v2346_v3 = vpop.permute.xlu0 %2345 }
 0xae2   : > { %v2351_v10 = vsel %vm1379_vm1, %v2346_v3, 0 }
 0xae5   : > { %v2456_v5 = vpop.permute.xlu0 %2455 }
 0xae6   : > { %3901 = vmatmul.mubr.msk.bf16.vlgmr.msra.gmra.mxu0 %vm1379_vm1, %v2456_v5 }
 0xae7   : > { %3911 = vmatpush3.bf16.xpose.msra.mxu0 %v2574_v6  ;;  %3912 = vmatprep.mubr.msk.bf16.mxu0 %vm4912_vm0, %v4911_v1 }
 0xae8   : > { %3922 = vmatprep.subr.bf16.mxu0 %v4911_v1 }
 0xae9   : > { %v2567_v8 = vpop.permute.xlu0 %2566 }
 0xaeb   : > { %v4306_v7 = vpop.eup %4305 }
 0xaec   : > { %v5591_v49 = vmul.f32 %v4306_v7, %v4304_v25 }
 0xaee   : > { %3913 = vmatmul.mubr.msk.bf16.vlgmr.msra.gmra.mxu0 %vm1379_vm1, %v2567_v8  ;;  %v2294_v9 = vpack.c.bf16 %v5591_v49, %v5591_v49 }
 0xaef   : > { %3938 = vmatprep.mubr.msk.bf16.mxu0 %vm4912_vm0, %v4911_v1 }
 0xaf0   : > { %3883 = vmatmul.mubr.msk.bf16.vlgmr.msra.gmra.mxu1 %vm1426_vm4, %v2294_v9 }
 0xaf1   : > { %3887 = vmatpush3.bf16.xpose.msra.mxu1 %v2351_v10  ;;  %3888 = vmatprep.mubr.msk.bf16.mxu1 %vm4912_vm0, %v4911_v1 }
 0xaf2   : > { %3892 = vmatprep.subr.bf16.mxu1 %v4911_v1 }
 0xaf8   : > { %3889 = vmatmul.mubr.msk.bf16.vlgmr.msra.gmra.mxu1 %vm1379_vm1, %v2343_v60 }
 0xaf9   : > { %3894 = vmatprep.mubr.msk.bf16.mxu1 %vm4912_vm0, %v4911_v1 }
 0xba6   : > { %v2499_v11 = vpop.f32.mrf.mxu0 }
 0xba7   : > { %v2500_v12 = vadd.f32 %v5573_v50, %v2499_v11  ;;  %v4239_v11 = vld [vmem:[#allocation11 + $0x38] sm:$0xff]  }
 0xba8   : > { %v3902_v13 = vpop.f32.mrf.mxu0  ;;  %3923 = vmatpush3.bf16.msra.mxu0 %v4239_v11  ;;  %v3634_v11 = vld [vmem:[#allocation25] ss:$0 sm:$0xff] }
 0xba9   : > { %v2505_v14 = vsel %vm1426_vm4, %v2500_v12, -inf  ;;  %3924 = vmatprep.subr.bf16.mxu0 %v4911_v1  ;;  %v4241_v13 = vld [vmem:[#allocation11 + $0x28] sm:$0xff]  }
 0xbaa   : > { %2506 = vmax.xlane.f32.xlu0 %v2505_v14  ;;  %v2502_v16 = vpop.f32.mrf.mxu0  ;;  %v4242_v14 = vld [vmem:[#allocation11 + $0x20] sm:$0xff]  }
 0xbab   : > { %v4243_v16 = vld [vmem:[#allocation11 + $0x18] sm:$0xff]  }
 0xbac   : > { %v3903_v17 = vpop.f32.mrf.mxu0 }
 0xbad   : > { %v4245_v17 = vld [vmem:[#allocation11 + $0x8] sm:$0xff]  }
 0xbae   : > { %v2610_v15 = vpop.f32.mrf.mxu0 }
 0xbaf   : > { %v2611_v18 = vadd.f32 %v5573_v50, %v2610_v15 }
 0xbb0   : > { %v5609_v19 = vpop.f32.mrf.mxu1  ;;  %v3914_v20 = vpop.f32.mrf.mxu0 }
 0xbb1   : > { %v2616_v21 = vsel %vm1426_vm4, %v2611_v18, -inf  ;;  %v4246_v20 = vld [vmem:[#allocation11] sm:$0xff]  }
 0xbb2   : > { %2617 = vmax.xlane.f32.xlu0 %v2616_v21  ;;  %v3884_v22 = vpop.f32.mrf.mxu1  ;;  %v2613_v26 = vpop.f32.mrf.mxu0 }
 0xbb3   : > { %v4247_v26 = vld [vmem:[#allocation14 + $0x70] ss:$8 sps:$4 sm:$0xff]  }
 0xbb4   : > { %v2338_v27 = vpop.f32.mrf.mxu1  ;;  %v3915_v24 = vpop.f32.mrf.mxu0 }
 0xbb5   : > { %v4249_v27 = vld [vmem:[#allocation14 + $0x74] ss:$8 sps:$4 sm:$0xff]  }
 0xbb6   : > { %v3885_v28 = vpop.f32.mrf.mxu1 }
 0xbb7   : > { %v4252_v28 = vld [vmem:[#allocation14 + $0x64] ss:$8 sps:$4 sm:$0xff]  }
 0xbb8   : > { %v2387_v30 = vpop.f32.mrf.mxu1 }
 0xbb9   : > { %v2388_v32 = vadd.f32 %v5573_v50, %v2387_v30 }
 0xbba   : > { %v3890_v33 = vpop.f32.mrf.mxu1 }
 0xbbb   : > { %v2393_v34 = vsel %vm1426_vm4, %v2388_v32, -inf  ;;  %v4255_v33 = vld [vmem:[#allocation14 + $0x54] ss:$8 sps:$4 sm:$0xff]  }
 0xbbc   : > { %2394 = vmax.xlane.f32.xlu1 %v2393_v34  ;;  %v2390_v35 = vpop.f32.mrf.mxu1 }
 0xbbe   : > { %v3891_v36 = vpop.f32.mrf.mxu1 }
 0xbbf   : > { %v4258_v36 = vld [vmem:[#allocation14 + $0x44] ss:$8 sps:$4 sm:$0xff]  }
 0xc33   : > { %v2507_v37 = vpop.xlane.xlu0 %2506 }
 0xc34   : > { %v2508_v38 = vsub.f32 %v2500_v12, %v2507_v37  ;;  %v4240_v12 = vld [vmem:[#allocation11 + $0x30] sm:$0xff]  }
 0xc35   : > { %3925 = vmatpush3.bf16.msra.mxu0 %v4240_v12 }
 0xc36   : > { %v2509_v39 = vmul.f32 1.442695, %v2508_v38  ;;  %3926 = vmatprep.subr.bf16.mxu0 %v4911_v1 }
 0xc38   : > { %4307 = vpow2.f32 %v2509_v39  ;;  %v4256_v39 = vld [vmem:[#allocation14 + $0x40] ss:$8 sps:$4 sm:$0xff]  }
 0xc39   : > { %3927 = vmatpush3.bf16.msra.mxu0 %v4241_v13 }
 0xc3a   : > { %3928 = vmatprep.subr.bf16.mxu0 %v4911_v1 }
 0xc3b   : > { %v2618_v40 = vpop.xlane.xlu0 %2617 }
 0xc3c   : > { %v2619_v41 = vsub.f32 %v2611_v18, %v2618_v40  ;;  %v4261_v40 = vld [vmem:[#allocation14 + $0x34] ss:$8 sps:$4 sm:$0xff]  }
 0xc3d   : > { %3929 = vmatpush3.bf16.msra.mxu0 %v4242_v14 }
 0xc3e   : > { %v2620_v42 = vmul.f32 1.442695, %v2619_v41  ;;  %3930 = vmatprep.subr.bf16.mxu0 %v4911_v1 }
 0xc40   : > { %4309 = vpow2.f32 %v2620_v42 }
 0xc41   : > { %3931 = vmatpush3.bf16.msra.mxu0 %v4243_v16 }
 0xc42   : > { %3932 = vmatprep.subr.bf16.mxu0 %v4911_v1 }
 0xc45   : > { %v4308_v44 = vpop.eup %4307  ;;  %v2395_v45 = vpop.xlane.xlu1 %2394 }
 0xc46   : > { %v2396_v46 = vsub.f32 %v2388_v32, %v2395_v45  ;;  %v2511_v47 = vsel %vm1426_vm4, %v4308_v44, 0.0  ;;  %v4250_v32 = vld [vmem:[#allocation14 + $0x60] ss:$8 sps:$4 sm:$0xff]   ;;  %v4264_v45 = vld [vmem:[#allocation14 + $0x24] ss:$8 sps:$4 sm:$0xff]  }
 0xc47   : > { %2512 = vadd.xlane.f32.xlu0 %v2511_v47 }
 0xc48   : > { %v2397_v48 = vmul.f32 1.442695, %v2396_v46  ;;  %v4262_v46 = vld [vmem:[#allocation14 + $0x20] ss:$8 sps:$4 sm:$0xff]  }
 0xc4a   : > { %4311 = vpow2.f32 %v2397_v48 }
 0xc4d   : > { %v4310_v50 = vpop.eup %4309 }
 0xc4e   : > { %v2622_v51 = vsel %vm1426_vm4, %v4310_v50, 0.0 }
 0xc4f   : > { %2623 = vadd.xlane.f32.xlu1 %v2622_v51 }
 0xc57   : > { %v4312_v52 = vpop.eup %4311 }
 0xc58   : > { %v2399_v53 = vsel %vm1426_vm4, %v4312_v52, 0.0 }
 0xc59   : > { %2400 = vadd.xlane.f32.xlu1 %v2399_v53 }
 0xc5d   : > { %2407 = vrot.lane.b32.xlu0 %v5561_v43, %s5835_s28 }
 0xc6a   : > { %2518 = vrot.lane.b32.xlu1 %v5561_v43, %s4914_s6 }
 0xc6e   : > { %2629 = vrot.lane.b32.xlu1 %v5561_v43, %s4915_s5 }
 0xcd0   : > { %v2513_v54 = vpop.xlane.xlu0 %2512 }
 0xcd1   : > { %4313 = vrcp.f32 %v2513_v54 }
 0xcd4   : > { %v2408_v55 = vpop.permute.xlu0 %2407 }
 0xcd5   : > { %v2413_v56 = vsel %vm1443_vm2, %v2408_v55, 0  ;;  %v4267_v55 = vld [vmem:[#allocation14 + $0x14] ss:$8 sps:$4 sm:$0xff]  }
 0xcd6   : > { %3893 = vmatpush3.bf16.msra.mxu1 %v2413_v56  ;;  %v4265_v56 = vld [vmem:[#allocation14 + $0x10] ss:$8 sps:$4 sm:$0xff]  }
 0xcd7   : > { %3904 = vmatprep.subr.bf16.mxu1 %v4911_v1 }
 0xcd8   : > { %v2624_v57 = vpop.xlane.xlu1 %2623 }
 0xcde   : > { %v4314_v59 = vpop.eup %4313 }
 0xcdf   : > { %v2515_v2 = vmul.f32 %v4314_v59, %v4308_v44  ;;  %v4259_v44 = vld [vmem:[#allocation14 + $0x30] ss:$8 sps:$4 sm:$0xff]  }
 0xce0   : > { %v4271_v59 = vld [vmem:[#allocation17 + $0x78] sm:$0xff]  }
 0xce1   : > { %v2517_v9 = vpack.c.bf16 %v2515_v2, %v2515_v2 }
 0xce2   : > { %v2401_v58 = vpop.xlane.xlu1 %2400 }
 0xce3   : > { %4315 = vrcp.f32 %v2401_v58  ;;  %v4268_v58 = vld [vmem:[#allocation14] ss:$8 sps:$4 sm:$0xff]  }
 0xce4   : > { %4317 = vrcp.f32 %v2624_v57  ;;  %v4270_v57 = vld [vmem:[#allocation14 + $0x4] ss:$8 sps:$4 sm:$0xff]  }
 0xce6   : > { %v2519_v25 = vpop.permute.xlu1 %2518 }
 0xce7   : > { %v2524_v3 = vsel %vm1443_vm2, %v2519_v25, 0  ;;  %v4276_v25 = vld [vmem:[#allocation17 + $0x28] sm:$0xff]  }
 0xcea   : > { %v2630_v8 = vpop.permute.xlu1 %2629 }
 0xcf0   : > { %v4316_v60 = vpop.eup %4315 }
 0xcf1   : > { %v2403_v61 = vmul.f32 %v4316_v60, %v4312_v52  ;;  %v4318_v62 = vpop.eup %4317  ;;  %v4272_v60 = vld [vmem:[#allocation17 + $0x38] sm:$0xff]  }
 0xcf2   : > { %v2626_v5 = vmul.f32 %v4318_v62, %v4310_v50  ;;  %v4275_v62 = vld [vmem:[#allocation17 + $0x68] sm:$0xff]  }
 0xcf3   : > { %v2404_v43 = vadd.f32 %v2403_v61, %v5591_v49  ;;  %v2405_v63 = vpack.c.bf16 %v2403_v61, %v2403_v61  ;;  %v2635_v49 = vsel %vm1443_vm2, %v2630_v8, 0  ;;  %v4273_v61 = vld [vmem:[#allocation17 + $0x70] sm:$0xff]  }
 0xcf4   : > { %v2628_v10 = vpack.c.bf16 %v2626_v5, %v2626_v5 }
 0xcf5   : > { %3895 = vmatmul.mubr.msk.bf16.vlgmr.msra.gmra.mxu1 %vm1426_vm4, %v2405_v63  ;;  %v2516_v4 = vadd.f32 %v2515_v2, %v2404_v43  ;;  %v4277_v43 = vld [vmem:[#allocation17 + $0x60] sm:$0xff]   ;;  %v4279_v2 = vld [vmem:[#allocation17 + $0x58] sm:$0xff]  }
 0xcf6   : > { %3905 = vmatpush3.bf16.msra.mxu1 %v2524_v3  ;;  %3906 = vmatprep.mubr.msk.bf16.mxu1 %vm4912_vm0, %v4911_v1  ;;  %v4278_v63 = vld [vmem:[#allocation17 + $0x20] sm:$0xff]   ;;  %v4280_v3 = vld [vmem:[#allocation17 + $0x18] sm:$0xff]  }
 0xcf7   : > { %3916 = vmatprep.subr.bf16.mxu1 %v4911_v1  ;;  %v2627_v6 = vadd.f32 %v2626_v5, %v2516_v4  ;;  %v4281_v4 = vld [vmem:[#allocation17 + $0x50] sm:$0xff]  }
 0xcf8   : > { %v4282_v5 = vld [vmem:[#allocation17 + $0x10] sm:$0xff]  }
 0xcf9   : > { %v2787_v7 = vmul.f32 0.25, %v2627_v6  ;;  %v3624_v6 = vld [vmem:[#allocation13] ss:$0 sm:$0xff] }
 0xcfb   : > { %3154 = vst.msk [vmem:[%s5633_s7] sm:$0xff] %vm1426_vm4, %v2787_v7 }
 0xcfd   : > { %3907 = vmatmul.mubr.msk.bf16.vlgmr.msra.gmra.mxu1 %vm1426_vm4, %v2517_v9  ;;  %v3633_v9 = vld [vmem:[#allocation23] ss:$0 sm:$0xff] }
 0xcfe   : > { %3917 = vmatpush3.bf16.msra.mxu1 %v2635_v49  ;;  %3918 = vmatprep.mubr.msk.bf16.mxu1 %vm4912_vm0, %v4911_v1 }
 0xcff   : > { %2914 = vmatprep.subr.bf16.mxu1 %v4249_v27 }
 0xd05   : > { %3919 = vmatmul.mubr.msk.bf16.vlgmr.msra.gmra.mxu1 %vm1426_vm4, %v2628_v10 }
 0xd06   : > { %2946 = vmatprep.mubr.bf16.mxu1 %v4910_v0  ;;  %v4244_v0 = vld [vmem:[#allocation11 + $0x10] sm:$0xff]   ;;  %2915 = vmatpush1.bf16.msra.mxu1 %v4247_v26 }
 0xd07   : > { %3933 = vmatpush3.bf16.msra.mxu0 %v4244_v0  ;;  %2916 = vmatprep.subr.bf16.mxu1 %v4252_v28 }
 0xd08   : > { %3934 = vmatprep.subr.bf16.mxu0 %v4911_v1 }
 0xd0a   : > { %2917 = vmatpush1.bf16.msra.mxu1 %v4250_v32 }
 0xd0b   : > { %3935 = vmatpush3.bf16.msra.mxu0 %v4245_v17  ;;  %2918 = vmatprep.subr.bf16.mxu1 %v4255_v33  ;;  %v4283_v17 = vld [vmem:[#allocation17 + $0x48] sm:$0xff]  }
 0xd0c   : > { %3936 = vmatprep.subr.bf16.mxu0 %v4911_v1  ;;  %v4253_v1 = vld [vmem:[#allocation14 + $0x50] ss:$8 sps:$4 sm:$0xff]  }
 0xd0e   : > { %2919 = vmatpush1.bf16.msra.mxu1 %v4253_v1 }
 0xd0f   : > { %3937 = vmatpush3.bf16.msra.mxu0 %v4246_v20  ;;  %2920 = vmatprep.subr.bf16.mxu1 %v4258_v36  ;;  %v4286_v20 = vld [vmem:[#allocation17] sm:$0xff]  }
 0xd10   : > { %3744 = vmatprep.subr.bf16.mxu0 %v4271_v59 }
 0xd12   : > { %2921 = vmatpush1.bf16.msra.mxu1 %v4256_v39 }
 0xd13   : > { %2922 = vmatprep.subr.bf16.mxu1 %v4261_v40 }
 0xd16   : > { %2923 = vmatpush1.bf16.msra.mxu1 %v4259_v44 }
 0xd17   : > { %2924 = vmatprep.subr.bf16.mxu1 %v4264_v45 }
 0xd1a   : > { %2925 = vmatpush1.bf16.msra.mxu1 %v4262_v46 }
 0xd1b   : > { %2926 = vmatprep.subr.bf16.mxu1 %v4267_v55 }
 0xd1e   : > { %2927 = vmatpush1.bf16.msra.mxu1 %v4265_v56 }
 0xd1f   : > { %2928 = vmatprep.subr.bf16.mxu1 %v4270_v57 }
 0xd22   : > { %2929 = vmatpush1.bf16.msra.mxu1 %v4268_v58 }
 0xdb5   : > { %v2449_v15 = vpop.f32.mrf.mxu1 }
 0xdb6   : > { %2678 = vrot.lane.b32.xlu0 %v2449_v15, %s4915_s5  ;;  %v4284_v15 = vld [vmem:[#allocation17 + $0x8] sm:$0xff]   ;;  %s3181_s5 = sshll.u32 %s5483_s27, 4  ;;  %s3182_s5 = int_to_ptr.vmem [resolvable:$true] %s3181_s5 }
 0xdb7   : > { %v3896_v18 = vpop.f32.mrf.mxu1  ;;  %s4761_s1 = scalar_lea.vmem %s3182_s5, 128  ;;  %p4768_p7 = scmp.lt.s32.totalorder %s3182_s5, %s4766_s10 }
 0xdb8   : > { %v4285_v18 = vld [vmem:[#allocation17 + $0x40] sm:$0xff]   ;;  %p4762_p12 = scmp.ne.s32.totalorder %s3182_s5, %s4761_s1  ;;  %p4769_p8 = scmp.lt.s32.totalorder %s4767_s4, %s4761_s1 }
 0xdb9   : > { %v2452_v21 = vpop.f32.mrf.mxu1 }
 0xdba   : > { %p4763_p2 = pnand %p4762_p12, %p5840_p3  ;;  %p4770_p11 = por %p4769_p8, %p4768_p7 }
 0xdbb   : > { %v3897_v22 = vpop.f32.mrf.mxu1 }
 0xdbc   : > { %p4764_p4 = pneg %p4763_p2 }
 0xdbd   : > { %v2560_v24 = vpop.f32.mrf.mxu1 }
 0xdbe   : > { %2682 = vrot.lane.b32.xlu1 %v2560_v24, %s4914_s6  ;;  %s5773_s6 = sshll.u32 %s5074_s8, 7  ;;  %p4771_p1 = pnand %p4770_p11, %p4764_p4 }
 0xdbf   : > { %v3908_v30 = vpop.f32.mrf.mxu1  ;;  %s3179_s9 = scalar_lea.hbm %s5750_s25, %s5773_s6 }
 0xdc1   : > { %v2563_v34 = vpop.f32.mrf.mxu1 }
 0xdc3   : > { %v3909_v35 = vpop.f32.mrf.mxu1 }
 0xdc5   : > { %v2671_v37 = vpop.f32.mrf.mxu1 }
 0xdc6   : > { %2686 = vrot.lane.b32.xlu0 %v2671_v37, %s5835_s28 }
 0xdc7   : > { %v3920_v38 = vpop.f32.mrf.mxu1 }
 0xdc9   : > { %v2674_v41 = vpop.f32.mrf.mxu1 }
 0xdcb   : > { %v3921_v42 = vpop.f32.mrf.mxu1 }
 0xe28   : > { %v2679_v47 = vpop.permute.xlu0 %2678 }
 0xe29   : > { %v2689_v50 = vsel %vm1379_vm1, %v5609_v19, %v2679_v47  ;;  %v4274_v19 = vld [vmem:[#allocation17 + $0x30] sm:$0xff]  }
 0xe30   : > { %v2683_v48 = vpop.permute.xlu1 %2682 }
 0xe31   : > { %v2690_v51 = vsel %vm1836_vm5, %v2689_v50, %v2683_v48 }
 0xe38   : > { %v2687_v52 = vpop.permute.xlu0 %2686 }
 0xe39   : > { %v2691_v53 = vsel %vm1838_vm6, %v2690_v51, %v2687_v52 }
 0xe3a   : > { %v2692_v54 = vpack.c.bf16 %v2691_v53, %v2691_v53 }
 0xe3c   : > { %3939 = vmatmul.mubr.bf16.vlgmr.msra.gmra.mxu0 %v2692_v54 }
 0xe3d   : > { %3745 = vmatpush3.bf16.msra.mxu0 %v4272_v60 }
 0xe3e   : > { %3746 = vmatprep.subr.bf16.mxu0 %v4273_v61 }
 0xe41   : > { %3747 = vmatpush3.bf16.msra.mxu0 %v4274_v19 }
 0xe42   : > { %3748 = vmatprep.subr.bf16.mxu0 %v4275_v62 }
 0xe45   : > { %3749 = vmatpush3.bf16.msra.mxu0 %v4276_v25 }
 0xe46   : > { %3750 = vmatprep.subr.bf16.mxu0 %v4277_v43 }
 0xe49   : > { %3751 = vmatpush3.bf16.msra.mxu0 %v4278_v63 }
 0xe4a   : > { %3752 = vmatprep.subr.bf16.mxu0 %v4279_v2 }
 0xe4d   : > { %3753 = vmatpush3.bf16.msra.mxu0 %v4280_v3 }
 0xe4e   : > { %3754 = vmatprep.subr.bf16.mxu0 %v4281_v4 }
 0xe51   : > { %3755 = vmatpush3.bf16.msra.mxu0 %v4282_v5 }
 0xe52   : > { %3756 = vmatprep.subr.bf16.mxu0 %v4283_v17 }
 0xe55   : > { %3757 = vmatpush3.bf16.msra.mxu0 %v4284_v15 }
 0xe56   : > { %3758 = vmatprep.subr.bf16.mxu0 %v4285_v18 }
 0xe59   : > { %3759 = vmatpush3.bf16.msra.mxu0 %v4286_v20 }
 0xefc   : > { %v2781_v7 = vpop.f32.mrf.mxu0 }
 0xefd   : > { %v2782_v8 = vadd.f32 %v3624_v6, %v2781_v7 }
 0xefe   : > { %v3940_v49 = vpop.f32.mrf.mxu0 }
 0xeff   : > { %v2788_v10 = vadd.f32 %v2782_v8, %v5551_v23  ;;  %v2822_v23 = vld [vmem:[#allocation16] sm:$0x3] }
 0xf00   : > { %v2784_v12 = vpop.f32.mrf.mxu0  ;;  %v2827_v21 = vrot.slane %v2822_v23, %v5395_v29  ;;  %v2831_v22 = vrot.slane %v2822_v23, %v5400_v31 }
 0xf01   : > { %v2796_v13 = vmul.f32 %v3633_v9, %v2788_v10 }
 0xf02   : > { %v3941_v14 = vpop.f32.mrf.mxu0 }
 0xf03   : > { %v5658_v16 = vadd.f32 %v3634_v11, %v2796_v13 }
 0xf05   : > { %v2805_v0 = vpack.c.bf16 %v5658_v16, %v5658_v16 }
 0xf07   : > { %2947 = vmatmul.mubr.bf16.vlgmr.msra.gmra.mxu1 %v2805_v0 }
 0xfc7   : > { %v2948_v26 = vpop.f32.mrf.mxu1 }
 0xfc8   : > { %v2949_v27 = vadd.f32 %v2948_v26, %v2827_v21 }
 0xfc9   : > { %v2950_v24 = vpop.f32.mrf.mxu1 }
 0xfca   : > { %v2951_v28 = vadd.f32 %v2950_v24, %v2831_v22  ;;  %v2955_v30 = vmax.f32 %v2949_v27, 0.0 }
 0xfcb   : > { %v2952_v32 = vpop.f32.mrf.mxu1 }
 0xfcc   : > { %v2956_v33 = vmax.f32 %v2951_v28, 0.0  ;;  %v2957_v1 = vpack.c.bf16 %v2955_v30, %v2955_v30 }
 0xfcd   : > { %v2953_v34 = vpop.f32.mrf.mxu1 }
 0xfce   : > { %v2958_v35 = vpack.c.bf16 %v2956_v33, %v2956_v33 }
 0xfd0   : > { %3126 = vmatprep.mubr.bf16.mxu0 %v2958_v35 }
 0xfd1   : > { %3127 = vmatmul.mubr.bf16.vlgmr.msra.gmra.mxu0 %v2957_v1 }
 0xfd2   : > { %4774 = shalt.err (!%p4771_p1)
}
 0xfd3   : > { %s4775_s27 = scalar_lea.hbm %s3179_s9, 128  ;;  %s4779_s6 = scalar_lea.hbm %s5750_s25, 256 }
 0xfd4   : > { %p4776_p5 = scmp.ne.s32.totalorder %s3179_s9, %s4775_s27  ;;  %p4780_p0 = scmp.lt.s32.totalorder %s3179_s9, %s5750_s25 }
 0xfd5   : > { %p4781_p6 = scmp.lt.s32.totalorder %s4779_s6, %s4775_s27 }
 0xfd6   : > { %p4777_p10 = pnand %p4776_p5, %p5840_p3 }
 0xfd7   : > { %p4782_p9 = por %p4781_p6, %p4780_p0 }
 0xfd8   : > { %p4778_p13 = pneg %p4777_p10 }
 0xfda   : > { %p4783_p12 = pnand %p4782_p9, %p4778_p13 }
 0xfdc   : > { %4786 = shalt.err (!%p4783_p12)
}
 0xfdd   : > { %4010 = dma.vmem_to_hbm [thread:$0]  (%p5840_p3), %s3182_s5, 128, %s3179_s9, %s3160_s0  }
 0xfde   : > { %s5841_s4 = sshll.u32 %s5074_s8, 7  ;;  %s5842_s10 = sld [smem:[#allocation65_spill]] }
 0xfdf   : > { %s3194_s12 = sshll.u32 %s5633_s7, 4  ;;  %s3165_s11 = scalar_lea.sflag [#allocation31], %s5472_s30  ;;  %s3195_s12 = int_to_ptr.vmem [resolvable:$true] %s3194_s12 }
 0xfe0   : > { %s4787_s13 = scalar_lea.vmem %s3195_s12, 128  ;;  %s4917_s6 = smov [#allocation30]  }
 0xfe1   : > { %p4788_p2 = scmp.ne.s32.totalorder %s3195_s12, %s4787_s13  ;;  %s4791_s27 = sshll.u32 %s4917_s6, 4  ;;  %s4792_s27 = int_to_ptr.vmem [resolvable:$false] %s4791_s27 }
 0xfe2   : > { %s4793_s14 = scalar_lea.vmem %s4792_s27, 256  ;;  %p4794_p8 = scmp.lt.s32.totalorder %s3195_s12, %s4792_s27 }
 0xfe3   : > { %p4789_p4 = pnand %p4788_p2, %p5840_p3  ;;  %p4795_p11 = scmp.lt.s32.totalorder %s4793_s14, %s4787_s13 }
 0xfe4   : > { %s3192_s28 = scalar_lea.hbm %s5842_s10, %s5841_s4 }
 0xfe5   : > { %p4790_p7 = pneg %p4789_p4  ;;  %p4796_p1 = por %p4795_p11, %p4794_p8 }
 0xfe7   : > { %p4797_p5 = pnand %p4796_p1, %p4790_p7 }
 0xfe9   : > { %4800 = shalt.err (!%p4797_p5)
}
 0xfea   : > { %s4801_s8 = scalar_lea.hbm %s3192_s28, 128  ;;  %s4805_s5 = scalar_lea.hbm %s5842_s10, 256 }
 0xfeb   : > { %p4802_p10 = scmp.ne.s32.totalorder %s3192_s28, %s4801_s8  ;;  %p4806_p6 = scmp.lt.s32.totalorder %s3192_s28, %s5842_s10 }
 0xfec   : > { %p4807_p9 = scmp.lt.s32.totalorder %s4805_s5, %s4801_s8 }
 0xfed   : > { %p4803_p13 = pnand %p4802_p10, %p5840_p3 }
 0xfee   : > { %p4808_p12 = por %p4807_p9, %p4806_p6 }
 0xfef   : > { %p4804_p0 = pneg %p4803_p13 }
 0xff1   : > { %p4809_p2 = pnand %p4808_p12, %p4804_p0 }
 0xff3   : > { %4812 = shalt.err (!%p4809_p2)
}
 0xff4   : > { %4011 = dma.vmem_to_hbm [thread:$0]  (%p5840_p3), %s3195_s12, 128, %s3192_s28, %s3165_s11   ;;  %v3651_v31 = vld [vmem:[#allocation19] ss:$0 sm:$0xff]  ;;  %v3668_v42 = vld [vmem:[#allocation26] ss:$0 sm:$0xff] }
 0xff5   : > { %s3545_s14 = sshll.u32 %s5320_s29, 3  ;;  %v3669_v45 = vld [vmem:[#allocation28] ss:$0 sm:$0xff]  ;;  %s5843_s26 = sld [smem:[#allocation64_spill]] }
 0xffb   : > { %s1075_s2 = scalar_lea.vmem %s5843_s26, %s3545_s14 }
0x1091   : > { %v3760_v29 = vpop.f32.mrf.mxu0 }
0x1093   : > { %v3761_v36 = vpop.f32.mrf.mxu0 }
0x1094   : > { %v3762_v37 = vadd.f32 %v3761_v36, %v3760_v29 }
0x1095   : > { %v3763_v38 = vpop.f32.mrf.mxu0 }
0x1096   : > { %v3129_v39 = vadd.f32 %v3762_v37, %v3651_v31 }
0x1097   : > { %v3764_v40 = vpop.f32.mrf.mxu0 }
0x1098   : > { %v3134_v41 = vmax.f32 %v3129_v39, 0.0 }
0x109a   : > { %v3135_v44 = vadd.f32 %v3134_v41, %v5658_v16 }
0x109c   : > { %v3143_v46 = vmul.f32 %v3668_v42, %v3135_v44 }
0x109e   : > { %v3151_v47 = vadd.f32 %v3669_v45, %v3143_v46 }
0x10a0   : > { %3152 = vst [vmem:[%s1075_s2] sm:$0xff] %v3151_v47 }
0x10a1 PF: > { %s5844_s28 = sld [smem:[#allocation45_spill]] }
0x10a2   : > { %s5845_s12 = sld [smem:[#allocation43_spill]] }
0x10a3   : > { %s5846_s11 = sld [smem:[#allocation48_spill]] }
0x10a7   : > { %p4107_p3 = scmp.ge.s32.totalorder %s5844_s28, 2 }
0x10a8   : > { %s3213_s13 = sand.u32 1, %s5845_s12  }
0x10a9   : > { %p5847_p4 = scmp.ne.s32.totalorder %s5846_s11, 0  ;;  %s3214_s29 = scalar_lea.sflag [#allocation4], %s3213_s13 }
0x10ab   : > { %p4067_p7 = pnand %p4107_p3, %p5847_p4 }
0x10ad   : > { %p4068_p8 = pneg %p4067_p7 }
0x10af   : > { %4866 = dma.done.wait (%p4068_p8), %s3214_s29, 128  }
0x10b0   : > { %4868 = vsyncadd (%p4068_p8), %s3214_s29, 4294967168  ;;  %s3223_s6 = scalar_lea.sflag [#allocation31], %s3213_s13 }
0x10b1   : > { %4870 = dma.done.wait (%p4068_p8), %s3223_s6, 128  }
0x10b2   : > { %4872 = vsyncadd (%p4068_p8), %s3223_s6, 4294967168  ;;  %s5848_s28 = sld [smem:[#allocation46_spill]]  ;;  %s5851_s27 = smov %s4879_s3 }
0x10b3   : > { %s5849_s8 = sld [smem:[#allocation44_spill]] }
0x10b4   : > { %s5850_s7 = sld [smem:[#allocation47_spill]] }
0x10b8   : > { %p49_p11 = scmp.ge.s32.totalorder %s5848_s28, 4  }
0x10b9   : > { %s5852_s3 = smov %s5849_s8 }
0x10ba   :  { %51 = sbr.rel (!%p49_p11) target bundleno = 32 (0x20), region = 258 }
0x10bf   :  { %3228 = vsyncpa [#allocation3], 1 }
0x10c0   :  { %3230 = vsyncpa [#allocation3 + $0x1], 1 }
0x10c1   :  { %3231 = vsyncpa [#allocation6], 1 }
0x10c2   :  { %3232 = vsyncpa [#allocation9], 1 }
0x10c3   :  { %3233 = vsyncpa [#allocation12], 1 }
0x10c4   :  { %3234 = vsyncpa [#allocation15], 1 }
0x10c5   :  { %3235 = vsyncpa [#allocation18], 1 }
0x10c6   :  { %3236 = vsyncpa [#allocation21], 1 }
0x10c7   :  { %3237 = vsyncpa [#allocation24], 1 }
0x10c8   :  { %3238 = vsyncpa [#allocation27], 1 }
0x10c9   :  { %3239 = vsyncpa [#allocation4], 1 }
0x10ca   :  { %3241 = vsyncpa [#allocation4 + $0x1], 1 }
0x10cb   :  { %3242 = vsyncpa [#allocation31], 1 }
0x10cc   :  { %3244 = vsyncpa [#allocation31 + $0x1], 1 }

// kernel: decoder_forward.3
= control target key start
LH: loop header
LB: loop body
LE: loop exit
PB: predicated region body
PF: predicated region fallthrough
CT: control target
= control target key end

     0   :  { %s4735_s0 = inlined_call_operand.vmem [shape: bf16[2,8,128], index: 0, kind: input, shape index: {}]   ;;  %s4736_s1 = inlined_call_operand.vmem [shape: bf16[2,8,128], index: 1, kind: input, shape index: {}]   ;;  %s4737_s2 = inlined_call_operand.vmem [shape: f32[2,1,8], index: 2, kind: input, shape index: {}]   ;;  %s4738_s3 = inlined_call_operand.vmem [shape: f32[2,1,8], index: 3, kind: input, shape index: {}]   ;;  %s4739_s4 = inlined_call_operand.vmem [shape: bf16[128,384], index: 4, kind: input, shape index: {}]   ;;  %s4740_s5 = inlined_call_operand.vmem [shape: f32[1,384], index: 5, kind: input, shape index: {}]   ;;  %s4741_s6 = inlined_call_operand.vmem [shape: bf16[128,128], index: 6, kind: input, shape index: {}]   ;;  %s4742_s7 = inlined_call_operand.vmem [shape: f32[1,128], index: 7, kind: input, shape index: {}]   ;;  %s4743_s8 = inlined_call_operand.vmem [shape: bf16[128,128], index: 8, kind: input, shape index: {}]   ;;  %s4744_s9 = inlined_call_operand.vmem [shape: f32[1,128], index: 9, kind: input, shape index: {}]   ;;  %s4745_s10 = inlined_call_operand.vmem [shape: bf16[128,256], index: 10, kind: input, shape index: {}]   ;;  %s4746_s11 = inlined_call_operand.vmem [shape: f32[1,256], index: 11, kind: input, shape index: {}]   ;;  %s4747_s12 = inlined_call_operand.vmem [shape: bf16[128,128], index: 12, kind: input, shape index: {}]   ;;  %s4748_s13 = inlined_call_operand.vmem [shape: f32[1,128], index: 13, kind: input, shape index: {}]   ;;  %s4749_s14 = inlined_call_operand.vmem [shape: bf16[128,256], index: 14, kind: input, shape index: {}]   ;;  %s4750_s15 = inlined_call_operand.vmem [shape: f32[1,256], index: 15, kind: input, shape index: {}]   ;;  %s4751_s16 = inlined_call_operand.vmem [shape: bf16[256,128], index: 16, kind: input, shape index: {}]   ;;  %s4752_s17 = inlined_call_operand.vmem [shape: f32[1,128], index: 17, kind: input, shape index: {}]   ;;  %s4753_s18 = inlined_call_operand.vmem [shape: f32[1,128], index: 18, kind: input, shape index: {}]   ;;  %s4754_s19 = inlined_call_operand.vmem [shape: f32[1,128], index: 19, kind: input, shape index: {}]   ;;  %s4755_s20 = inlined_call_operand.vmem [shape: f32[1,128], index: 20, kind: input, shape index: {}]   ;;  %s4756_s21 = inlined_call_operand.vmem [shape: f32[1,128], index: 21, kind: input, shape index: {}]   ;;  %s4757_s22 = inlined_call_operand.vmem [shape: f32[1,128], index: 22, kind: input, shape index: {}]   ;;  %s4758_s23 = inlined_call_operand.vmem [shape: f32[1,128], index: 23, kind: input, shape index: {}]   ;;  %s4759_s24 = inlined_call_operand.hbm [shape: f32[2,8,128], index: 24, kind: output, shape index: {0}]   ;;  %s4760_s25 = inlined_call_operand.hbm [shape: f32[2,8,8], index: 25, kind: output, shape index: {1}]   ;;  %s4761_s26 = inlined_call_operand.hbm [shape: f32[2,8,8], index: 26, kind: output, shape index: {2}]  }
   0x1   :  { %4787 = sst [smem:[#allocation16_spill]] %s4735_s0 }
   0x2   :  { %4788 = sst [smem:[#allocation17_spill]] %s4736_s1 }
   0x3   :  { %4789 = sst [smem:[#allocation18_spill]] %s4737_s2 }
   0x4   :  { %4790 = sst [smem:[#allocation19_spill]] %s4738_s3 }
   0x5   :  { %4791 = sst [smem:[#allocation20_spill]] %s4739_s4 }
   0x6   :  { %4792 = sst [smem:[#allocation21_spill]] %s4740_s5 }
   0x7   :  { %4793 = sst [smem:[#allocation22_spill]] %s4741_s6 }
   0x8   :  { %4794 = sst [smem:[#allocation23_spill]] %s4742_s7 }
   0x9   :  { %4795 = sst [smem:[#allocation24_spill]] %s4743_s8 }
   0xa   :  { %4796 = sst [smem:[#allocation25_spill]] %s4744_s9 }
   0xb   :  { %4797 = sst [smem:[#allocation26_spill]] %s4745_s10 }
   0xc   :  { %4798 = sst [smem:[#allocation27_spill]] %s4746_s11 }
   0xd   :  { %4799 = sst [smem:[#allocation28_spill]] %s4752_s17 }
   0xe   :  { %4800 = sst [smem:[#allocation29_spill]] %s4757_s22 }
   0xf   :  { %4801 = sst [smem:[#allocation30_spill]] %s4758_s23 }
  0x10   :  { %4802 = sst [smem:[#allocation31_spill]] %s4759_s24 }
  0x11   :  { %32 = vsyncpa [#allocation3], 0 }
  0x12   :  { %34 = vsyncpa [#allocation3 + $0x1], 0 }
  0x13   :  { %35 = vsyncpa [#allocation5], 0 }
  0x14   :  { %37 = vsyncpa [#allocation5 + $0x1], 0  ;;  %s4005_s27 = smov 0   ;;  %s4007_s3 = smov 0  }
  0x15   :  { %s4009_s7 = smov 0   ;;  %s4011_s28 = smov 0  }
  0x16 LB: > { %4803 = sst [smem:[#allocation9_spill]] %s3847_s27  ;;  %s4026_s8 = sadd.s32 4294967295, %s3859_s28   ;;  %s3859_s28 = sphi %s4011_s28, %s4842_s28   ;;  %s3855_s7 = sphi %s4009_s7, %s4845_s7   ;;  %s3851_s3 = sphi %s4007_s3, %s4844_s3   ;;  %s3847_s27 = sphi %s4005_s27, %s4843_s27  }
  0x17   : > { %4804 = sst [smem:[#allocation10_spill]] %s3851_s3  ;;  %s4766_s4 = sadd.s32 4294967294, %s3859_s28  }
  0x18   : > { %4805 = sst [smem:[#allocation11_spill]] %s3855_s7  ;;  %s4030_s29 = sadd.s32 1, %s3859_s28  }
  0x19   : > { %4806 = sst [smem:[#allocation12_spill]] %s3859_s28  ;;  %s574_s0 = sadd.s32 1, %s3855_s7 }
  0x1a   : > { %4807 = sst [smem:[#allocation13_spill]] %s4030_s29  ;;  %s571_s9 = ssub.s32 %s3859_s28, %s4030_s29 }
  0x1b   : > { %p584_p0 = scmp.ne.s32.totalorder %s3855_s7, %s3851_s3  ;;  %p572_p1 = scmp.eq.s32.totalorder %s571_s9, 0 }
  0x1c   : > { %p585_p2 = scmp.eq.s32.totalorder %s4026_s8, 1  ;;  %p590_p3 = scmp.ne.s32.totalorder %s3851_s3, %s3847_s27 }
  0x1d   : > { %p591_p4 = scmp.eq.s32.totalorder %s4766_s4, 1  ;;  %p3132_p7 = scmp.ge.s32.totalorder %s3859_s28, 1 }
  0x1e   : > { %s4043_s30 = scalar_select %p572_p1, %s3855_s7, %s574_s0  }
  0x1f   : > { %p4045_p5 = por %p585_p2, %p584_p0  ;;  %p4049_p6 = por %p591_p4, %p590_p3 }
  0x20   : > { %4808 = sst [smem:[#allocation14_spill]] %s4043_s30  ;;  %p747_p8 = scmp.lt.s32.totalorder %s3859_s28, 3 }
  0x21   : > { %s4810_s5 = scalar_select %p4049_p6, 1, 0 }
  0x22   : > { %p748_p9 = pnand %p3132_p7, %p747_p8 }
  0x23   : > { %4811 = sst [smem:[#allocation15_spill]] %s4810_s5  ;;  %p836_p10 = scmp.lt.s32.totalorder (!%p748_p9), %s4026_s8, 1 }
  0x24   : > { %751 = sbr.rel (%p748_p9) target bundleno = 4023 (0xfb7), region = 116  ;;  %s4812_s1 = sld [smem:[#allocation20_spill]] (!%p748_p9) }
  0x25   : > { %s4814_s9 = sld [smem:[#allocation16_spill]] (!%p748_p9)  ;;  %s4777_s6 = smov (!%p748_p9), 96  }
  0x26   : > { %s4815_s30 = sld [smem:[#allocation21_spill]] (!%p748_p9)  ;;  %s4781_s7 = smov (!%p748_p9), 32  }
  0x27   : > { %s4816_s27 = sld [smem:[#allocation18_spill]] (!%p748_p9)  ;;  %s4775_s4 = sand.u32 (!%p748_p9), 1, %s3851_s3  }
  0x28   : > { %s4817_s28 = sld [smem:[#allocation22_spill]] (!%p748_p9)  ;;  %s4829_s3 = smov (!%p748_p9), 32  }
  0x29   : > { %v3861_v2 = vmov 0   ;;  %v3862_v4 = vmov 0.0   ;;  %s4083_s10 = scalar_select %p836_p10, %s4026_s8, 1  ;;  %vm3863_vm0 = vmmov 0   ;;  %v853_v27 = vlaneseq }
  0x2a   : > { %v3591_v0 = vld [vmem:[%s4812_s1 + $0xac] ss:$12 sps:$4 sm:$0xff]   ;;  %v3593_v1 = vld [vmem:[%s4812_s1 + $0xa8] ss:$12 sps:$4 sm:$0xff]   ;;  %1083 = vmatprep.mubr.bf16.mxu0 %v3861_v2  ;;  %3360 = vmatprep.subr.bf16.mxu1 %v3862_v4  ;;  %v3596_v5 = vld [vmem:[%s4812_s1 + $0x90] ss:$12 sps:$4 sm:$0xff]  }
  0x2b   : > { %1051 = vmatprep.subr.bf16.mxu0 %v3591_v0  ;;  %v3594_v3 = vld [vmem:[%s4812_s1 + $0x94] ss:$12 sps:$4 sm:$0xff]   ;;  %v3597_v6 = vld [vmem:[%s4812_s1 + $0x7c] ss:$12 sps:$4 sm:$0xff]   ;;  %v3599_v7 = vld [vmem:[%s4812_s1 + $0x78] ss:$12 sps:$4 sm:$0xff]   ;;  %3376 = vmatprep.mubr.msk.bf16.mxu1 %vm3863_vm0, %v3862_v4 }
  0x2c   : > { %1052 = vmatpush1.bf16.msra.mxu0 %v3593_v1  ;;  %v3600_v8 = vld [vmem:[%s4812_s1 + $0x64] ss:$12 sps:$4 sm:$0xff]   ;;  %v3602_v9 = vld [vmem:[%s4812_s1 + $0x60] ss:$12 sps:$4 sm:$0xff]   ;;  %v3605_v13 = vld [vmem:[%s4812_s1 + $0x48] ss:$12 sps:$4 sm:$0xff]  }
  0x2d   : > { %1053 = vmatprep.subr.bf16.mxu0 %v3594_v3  ;;  %v3615_v10 = vld [vmem:[%s4812_s1 + $0xb0] ss:$12 sps:$4 sm:$0xff]   ;;  %v3603_v11 = vld [vmem:[%s4812_s1 + $0x4c] ss:$12 sps:$4 sm:$0xff]   ;;  %v3606_v14 = vld [vmem:[%s4812_s1 + $0x34] ss:$12 sps:$4 sm:$0xff]   ;;  %s846_s0 = scalar_lea.vmem %s4816_s27, %s4083_s10 }
  0x2e   : > { %3361 = vmatpush3.bf16.msra.mxu1 %v3615_v10  ;;  %v3616_v12 = vld [vmem:[%s4812_s1 + $0x98] ss:$12 sps:$4 sm:$0xff]   ;;  %v3608_v15 = vld [vmem:[%s4812_s1 + $0x30] ss:$12 sps:$4 sm:$0xff]   ;;  %v3617_v16 = vld [vmem:[%s4812_s1 + $0x80] ss:$12 sps:$4 sm:$0xff]  }
  0x2f   : > { %3362 = vmatprep.subr.bf16.mxu1 %v3862_v4  ;;  %v3609_v17 = vld [vmem:[%s4812_s1 + $0x1c] ss:$12 sps:$4 sm:$0xff]   ;;  %v3611_v19 = vld [vmem:[%s4812_s1 + $0x18] ss:$12 sps:$4 sm:$0xff]   ;;  %v3614_v22 = vld [vmem:[%s4812_s1] ss:$12 sps:$4 sm:$0xff]  }
  0x30   : > { %1054 = vmatpush1.bf16.msra.mxu0 %v3596_v5  ;;  %v3618_v18 = vld [vmem:[%s4812_s1 + $0x68] ss:$12 sps:$4 sm:$0xff]   ;;  %v3612_v20 = vld [vmem:[%s4812_s1 + $0x4] ss:$12 sps:$4 sm:$0xff]   ;;  %s4813_s5 = sshll.u32 %s4083_s10, 2  ;;  %v854_v28 = vshrl.u32 %v853_v27, 7 }
  0x31   : > { %1055 = vmatprep.subr.bf16.mxu0 %v3597_v6  ;;  %v3619_v21 = vld [vmem:[%s4812_s1 + $0x50] ss:$12 sps:$4 sm:$0xff]   ;;  %s839_s24 = scalar_lea.vmem %s4814_s9, %s4813_s5  ;;  %v3620_v23 = vld [vmem:[%s4812_s1 + $0x38] ss:$12 sps:$4 sm:$0xff]   ;;  %v3621_v25 = vld [vmem:[%s4812_s1 + $0x20] ss:$12 sps:$4 sm:$0xff]  }
  0x32   : > { %3363 = vmatpush3.bf16.msra.mxu1 %v3616_v12  ;;  %v4137_v24 = vld [vmem:[%s839_s24] sm:$0xf]  ;;  %v3622_v26 = vld [vmem:[%s4812_s1 + $0x8] ss:$12 sps:$4 sm:$0xff]   ;;  %v4158_v29 = vsub.s32 0, %v854_v28  ;;  %v4163_v31 = vsub.s32 1, %v854_v28 }
  0x33   : > { %3364 = vmatprep.subr.bf16.mxu1 %v3862_v4  ;;  %v906_v30 = vld [vmem:[%s4815_s30] sm:$0x7]  ;;  %vm1153_vm1 = vcmask 261120   ;;  %s4779_s9 = smov 64   ;;  %v918_v44 = vsub.s32 2, %v854_v28  ;;  %vm1217_vm2 = vcmask 1043456  }
  0x34   : > { %1056 = vmatpush1.bf16.msra.mxu0 %v3599_v7  ;;  %v911_v32 = vrot.slane %v906_v30, %v4158_v29  ;;  %v915_v33 = vrot.slane %v906_v30, %v4163_v31  ;;  %v856_v53 = vand.u32 127, %v853_v27  ;;  %v3138_v55 = vld [vmem:[%s846_s0] ss:$0 sm:$0xff]  ;;  %vm1200_vm4 = vcmask 64512   ;;  %s4240_s24 = sshll.u32 %s4775_s4, 3  ;;  %s4818_s0 = smov %s4817_s28 }
  0x35   : > { %1057 = vmatprep.subr.bf16.mxu0 %v3600_v8  ;;  %v919_v45 = vrot.slane %v906_v30, %v918_v44  ;;  %s4776_s5 = scalar_lea.vmem [#allocation4], %s4240_s24  ;;  %s4822_s30 = sld [smem:[#allocation24_spill]]  ;;  %vm1610_vm5 = vcmask 523264   ;;  %vm1612_vm6 = vcmask 785408  }
  0x36   : > { %3365 = vmatpush3.bf16.msra.mxu1 %v3617_v16  ;;  %vm857_vm3 = vcmp.gt.s32.totalorder %v856_v53, %v854_v28  ;;  %s4823_s27 = sshll.u32 %s4083_s10, 2  ;;  %s4824_s22 = sld [smem:[#allocation17_spill]] }
  0x37   : > { %3366 = vmatprep.subr.bf16.mxu1 %v3862_v4  ;;  %v858_v54 = vsel %vm857_vm3, -1e+30, %v3862_v4  ;;  %s4826_s11 = sld [smem:[#allocation27_spill]] }
  0x38   : > { %1058 = vmatpush1.bf16.msra.mxu0 %v3602_v9  ;;  %v4187_v56 = vadd.f32 %v3138_v55, %v858_v54  ;;  %s4828_s29 = sld [smem:[#allocation19_spill]] }
  0x39   : > { %1059 = vmatprep.subr.bf16.mxu0 %v3603_v11 }
  0x3a   : > { %3367 = vmatpush3.bf16.msra.mxu1 %v3618_v18 }
  0x3b   : > { %3368 = vmatprep.subr.bf16.mxu1 %v3862_v4 }
  0x3c   : > { %1060 = vmatpush1.bf16.msra.mxu0 %v3605_v13  ;;  %s843_s17 = scalar_lea.vmem %s4824_s22, %s4823_s27 }
  0x3d   : > { %1061 = vmatprep.subr.bf16.mxu0 %v3606_v14 }
  0x3e   : > { %3369 = vmatpush3.bf16.msra.mxu1 %v3619_v21  ;;  %s849_s22 = scalar_lea.vmem %s4828_s29, %s4083_s10  ;;  %s835_s10 = scalar_lea.vmem [#allocation6], %s4240_s24 }
  0x3f   : > { %3370 = vmatprep.subr.bf16.mxu1 %v3862_v4 }
  0x40   : > { %1062 = vmatpush1.bf16.msra.mxu0 %v3608_v15 }
  0x41   : > { %1063 = vmatprep.subr.bf16.mxu0 %v3609_v17 }
  0x42   : > { %3371 = vmatpush3.bf16.msra.mxu1 %v3620_v23 }
  0x43   : > { %3372 = vmatprep.subr.bf16.mxu1 %v3862_v4 }
  0x44   : > { %1064 = vmatpush1.bf16.msra.mxu0 %v3611_v19 }
  0x45   : > { %1065 = vmatprep.subr.bf16.mxu0 %v3612_v20 }
  0x46   : > { %3373 = vmatpush3.bf16.msra.mxu1 %v3621_v25 }
  0x47   : > { %3374 = vmatprep.subr.bf16.mxu1 %v3862_v4 }
  0x48   : > { %1066 = vmatpush1.bf16.msra.mxu0 %v3614_v22 }
  0x49   : > { %3404 = vmatprep.subr.bf16.mxu0 %v3862_v4 }
  0x4a   : > { %3375 = vmatpush3.bf16.msra.mxu1 %v3622_v26 }
  0x4b   : > { %1084 = vmatmul.mubr.bf16.vlgmr.msra.gmra.mxu0 %v4137_v24  ;;  %3380 = vmatprep.subr.bf16.mxu1 %v3862_v4 }
  0x4c   : > { %3406 = vmatprep.mubr.msk.bf16.mxu0 %vm3863_vm0, %v3862_v4 }
  0x4d   : > { %3377 = vmatmul.mubr.bf16.vlgmr.msra.gmra.mxu1 %v4137_v24 }
  0x4e   : > { %3382 = vmatprep.mubr.msk.bf16.mxu1 %vm3863_vm0, %v3862_v4 }
 0x10b   : > { %v1085_v34 = vpop.f32.mrf.mxu0 }
 0x10c   : > { %v1086_v35 = vadd.f32 %v1085_v34, %v911_v32 }
 0x10d   : > { %v1087_v36 = vpop.f32.mrf.mxu0  ;;  %v1126_v46 = vpop.f32.mrf.mxu1 }
 0x10e   : > { %v1088_v37 = vadd.f32 %v1087_v36, %v915_v33  ;;  %v1149_v39 = vmul.f32 0.17677669, %v1086_v35  ;;  %v1127_v47 = vadd.f32 %v1126_v46, %v919_v45 }
 0x10f   : > { %v1089_v38 = vpop.f32.mrf.mxu0  ;;  %v3378_v48 = vpop.f32.mrf.mxu1 }
 0x110   : > { %v1151_v40 = vpack.c.bf16 %v1088_v37, %v1088_v37  ;;  %v1150_v43 = vpack.c.bf16 %v1149_v39, %v1149_v39  ;;  %v4177_v49 = vpack.c.bf16 %v1127_v47, %v1127_v47 }
 0x111   : > { %v1090_v41 = vpop.f32.mrf.mxu0  ;;  %v1129_v50 = vpop.f32.mrf.mxu1 }
 0x112   : > { %1265 = vrot.lane.b32.xlu1 %v1151_v40, %s4777_s6  ;;  %v1158_v42 = vsel %vm1153_vm1, %v1151_v40, 0  ;;  %v1219_v51 = vsel %vm1217_vm2, %v4177_v49, 0 }
 0x113   : > { %3381 = vmatpush3.bf16.xpose.msra.mxu1 %v1158_v42  ;;  %v3379_v52 = vpop.f32.mrf.mxu1 }
 0x114   : > { %3386 = vmatprep.subr.bf16.mxu1 %v3862_v4 }
 0x116   : > { %1262 = vrot.lane.b32.xlu1 %v1150_v43, %s4777_s6 }
 0x11a   : > { %1375 = vrot.lane.b32.xlu1 %v1150_v43, %s4779_s9  ;;  %3383 = vmatmul.mubr.msk.bf16.vlgmr.msra.gmra.mxu1 %vm1153_vm1, %v1150_v43 }
 0x11b   : > { %3388 = vmatprep.mubr.msk.bf16.mxu1 %vm3863_vm0, %v3862_v4  ;;  %3387 = vmatpush3.bf16.msra.mxu1 %v1219_v51 }
 0x11c   : > { %3392 = vmatprep.subr.bf16.mxu1 %v3862_v4 }
 0x11e   : > { %1488 = vrot.lane.b32.xlu1 %v1151_v40, %s4781_s7 }
 0x122   : > { %1486 = vrot.lane.b32.xlu1 %v1150_v43, %s4781_s7 }
 0x184   : > { %v1266_v6 = vpop.permute.xlu1 %1265 }
 0x185   : > { %v1271_v17 = vsel %vm1153_vm1, %v1266_v6, 0 }
 0x188   : > { %v1263_v7 = vpop.permute.xlu1 %1262 }
 0x18c   : > { %v1376_v9 = vpop.permute.xlu1 %1375 }
 0x190   : > { %v1489_v12 = vpop.permute.xlu1 %1488 }
 0x191   : > { %v1494_v13 = vsel %vm1153_vm1, %v1489_v12, 0 }
 0x194   : > { %v1487_v18 = vpop.permute.xlu1 %1486 }
 0x1da   : > { %v1194_v57 = vpop.f32.mrf.mxu1 }
 0x1db   : > { %v1195_v58 = vadd.f32 %v1194_v57, %v4187_v56 }
 0x1dc   : > { %v3384_v59 = vpop.f32.mrf.mxu1 }
 0x1dd   : > { %v1201_v60 = vsel %vm1200_vm4, %v1195_v58, -inf }
 0x1de   : > { %1202 = vmax.xlane.f32.xlu0 %v1201_v60  ;;  %v1197_v61 = vpop.f32.mrf.mxu1 }
 0x1e0   : > { %v3385_v62 = vpop.f32.mrf.mxu1 }
 0x267   : > { %v1203_v63 = vpop.xlane.xlu0 %1202 }
 0x268   : > { %v1204_v0 = vsub.f32 %v1195_v58, %v1203_v63 }
 0x26a   : > { %v1205_v1 = vmul.f32 1.442695, %v1204_v0 }
 0x26c   : > { %3711 = vpow2.f32 %v1205_v1 }
 0x279   : > { %v3712_v3 = vpop.eup %3711 }
 0x27a   : > { %v1207_v5 = vsel %vm1200_vm4, %v3712_v3, 0.0 }
 0x27b   : > { %1208 = vadd.xlane.f32.xlu0 %v1207_v5 }
 0x291   : > { %1377 = vrot.lane.b32.xlu0 %v1151_v40, %s4779_s9 }
 0x304   : > { %v1209_v8 = vpop.xlane.xlu0 %1208 }
 0x305   : > { %3713 = vrcp.f32 %v1209_v8 }
 0x308   : > { %v1378_v10 = vpop.permute.xlu0 %1377 }
 0x309   : > { %v1383_v11 = vsel %vm1153_vm1, %v1378_v10, 0 }
 0x30a   : > { %3405 = vmatpush3.bf16.xpose.msra.mxu0 %v1383_v11 }
 0x30b   : > { %3416 = vmatprep.subr.bf16.mxu0 %v3862_v4 }
 0x311   : > { %3407 = vmatmul.mubr.msk.bf16.vlgmr.msra.gmra.mxu0 %vm1153_vm1, %v1376_v9 }
 0x312   : > { %v3714_v14 = vpop.eup %3713  ;;  %3417 = vmatpush3.bf16.xpose.msra.mxu0 %v1494_v13  ;;  %3418 = vmatprep.mubr.msk.bf16.mxu0 %vm3863_vm0, %v3862_v4 }
 0x313   : > { %v4199_v15 = vmul.f32 %v3714_v14, %v3712_v3  ;;  %3428 = vmatprep.subr.bf16.mxu0 %v3862_v4 }
 0x315   : > { %v1213_v16 = vpack.c.bf16 %v4199_v15, %v4199_v15 }
 0x317   : > { %3389 = vmatmul.mubr.msk.bf16.vlgmr.msra.gmra.mxu1 %vm1200_vm4, %v1213_v16 }
 0x318   : > { %3393 = vmatpush3.bf16.xpose.msra.mxu1 %v1271_v17  ;;  %3394 = vmatprep.mubr.msk.bf16.mxu1 %vm3863_vm0, %v3862_v4 }
 0x319   : > { %3419 = vmatmul.mubr.msk.bf16.vlgmr.msra.gmra.mxu0 %vm1153_vm1, %v1487_v18  ;;  %3398 = vmatprep.subr.bf16.mxu1 %v3862_v4 }
 0x31a   : > { %3444 = vmatprep.mubr.msk.bf16.mxu0 %vm3863_vm0, %v3862_v4 }
 0x31f   : > { %3395 = vmatmul.mubr.msk.bf16.vlgmr.msra.gmra.mxu1 %vm1153_vm1, %v1263_v7 }
 0x320   : > { %3400 = vmatprep.mubr.msk.bf16.mxu1 %vm3863_vm0, %v3862_v4 }
 0x3d1   : > { %v1419_v19 = vpop.f32.mrf.mxu0 }
 0x3d2   : > { %v1420_v20 = vadd.f32 %v1419_v19, %v4187_v56  ;;  %v3623_v19 = vld [vmem:[%s4817_s28 + $0x38] sm:$0xff]   ;;  %s4821_s28 = smov 96  }
 0x3d3   : > { %v3408_v21 = vpop.f32.mrf.mxu0  ;;  %3429 = vmatpush3.bf16.msra.mxu0 %v3623_v19  ;;  %v3182_v19 = vld [vmem:[%s4754_s19] ss:$0 sm:$0xff] }
 0x3d4   : > { %v1425_v22 = vsel %vm1200_vm4, %v1420_v20, -inf  ;;  %3430 = vmatprep.subr.bf16.mxu0 %v3862_v4  ;;  %v3625_v21 = vld [vmem:[%s4818_s0 + $0x28] sm:$0xff]  }
 0x3d5   : > { %1426 = vmax.xlane.f32.xlu0 %v1425_v22  ;;  %v1422_v23 = vpop.f32.mrf.mxu0  ;;  %v3626_v22 = vld [vmem:[%s4818_s0 + $0x20] sm:$0xff]  }
 0x3d6   : > { %v3627_v23 = vld [vmem:[%s4818_s0 + $0x18] sm:$0xff]  }
 0x3d7   : > { %v4217_v25 = vpop.f32.mrf.mxu1  ;;  %v3409_v26 = vpop.f32.mrf.mxu0 }
 0x3d8   : > { %v3628_v26 = vld [vmem:[%s4818_s0 + $0x10] sm:$0xff]  }
 0x3d9   : > { %v3390_v27 = vpop.f32.mrf.mxu1  ;;  %v1530_v28 = vpop.f32.mrf.mxu0 }
 0x3da   : > { %v1531_v39 = vadd.f32 %v1530_v28, %v4187_v56  ;;  %v3629_v27 = vld [vmem:[%s4818_s0 + $0x8] sm:$0xff]  }
 0x3db   : > { %v1258_v30 = vpop.f32.mrf.mxu1  ;;  %v3420_v32 = vpop.f32.mrf.mxu0 }
 0x3dc   : > { %v1536_v43 = vsel %vm1200_vm4, %v1531_v39, -inf  ;;  %v3630_v32 = vld [vmem:[%s4818_s0] sm:$0xff]  }
 0x3dd   : > { %v3391_v33 = vpop.f32.mrf.mxu1  ;;  %v1533_v34 = vpop.f32.mrf.mxu0 }
 0x3df   : > { %v1307_v35 = vpop.f32.mrf.mxu1  ;;  %v3421_v36 = vpop.f32.mrf.mxu0 }
 0x3e0   : > { %v1308_v37 = vadd.f32 %v1307_v35, %v4187_v56 }
 0x3e1   : > { %v3396_v38 = vpop.f32.mrf.mxu1 }
 0x3e2   : > { %v1313_v40 = vsel %vm1200_vm4, %v1308_v37, -inf }
 0x3e3   : > { %1314 = vmax.xlane.f32.xlu1 %v1313_v40  ;;  %v1310_v41 = vpop.f32.mrf.mxu1 }
 0x3e4   : > { %v3643_v41 = vld [vmem:[%s4822_s30 + $0x38] sm:$0xff]  }
 0x3e5   : > { %v3397_v42 = vpop.f32.mrf.mxu1 }
 0x3e7   : > { %1537 = vmax.xlane.f32.xlu1 %v1536_v43 }
 0x45e   : > { %v1427_v44 = vpop.xlane.xlu0 %1426 }
 0x45f   : > { %v1428_v45 = vsub.f32 %v1420_v20, %v1427_v44  ;;  %v3624_v20 = vld [vmem:[%s4818_s0 + $0x30] sm:$0xff]   ;;  %s4827_s0 = sld [smem:[#allocation25_spill]] }
 0x460   : > { %3431 = vmatpush3.bf16.msra.mxu0 %v3624_v20  ;;  %v3647_v44 = vld [vmem:[%s4822_s30 + $0x30] sm:$0xff]  }
 0x461   : > { %v1429_v46 = vmul.f32 1.442695, %v1428_v45  ;;  %3432 = vmatprep.subr.bf16.mxu0 %v3862_v4 }
 0x463   : > { %3715 = vpow2.f32 %v1429_v46  ;;  %v3651_v46 = vld [vmem:[%s4822_s30 + $0x28] sm:$0xff]  }
 0x464   : > { %3433 = vmatpush3.bf16.msra.mxu0 %v3625_v21 }
 0x465   : > { %3434 = vmatprep.subr.bf16.mxu0 %v3862_v4 }
 0x468   : > { %3435 = vmatpush3.bf16.msra.mxu0 %v3626_v22 }
 0x469   : > { %3436 = vmatprep.subr.bf16.mxu0 %v3862_v4 }
 0x46c   : > { %v1315_v47 = vpop.xlane.xlu1 %1314  ;;  %3437 = vmatpush3.bf16.msra.mxu0 %v3627_v23 }
 0x46d   : > { %v1316_v48 = vsub.f32 %v1308_v37, %v1315_v47  ;;  %3438 = vmatprep.subr.bf16.mxu0 %v3862_v4  ;;  %v3655_v47 = vld [vmem:[%s4822_s30 + $0x20] sm:$0xff]  }
 0x46f   : > { %v1317_v54 = vmul.f32 1.442695, %v1316_v48  ;;  %v3659_v48 = vld [vmem:[%s4822_s30 + $0x18] sm:$0xff]  }
 0x470   : > { %v3716_v50 = vpop.eup %3715  ;;  %v1538_v51 = vpop.xlane.xlu1 %1537  ;;  %3439 = vmatpush3.bf16.msra.mxu0 %v3628_v26  ;;  %v1856_v26 = vld [vmem:[%s4826_s11] sm:$0x3] }
 0x471   : > { %v1539_v52 = vsub.f32 %v1531_v39, %v1538_v51  ;;  %v1431_v53 = vsel %vm1200_vm4, %v3716_v50, 0.0  ;;  %3440 = vmatprep.subr.bf16.mxu0 %v3862_v4 }
 0x472   : > { %1432 = vadd.xlane.f32.xlu0 %v1431_v53 }
 0x473   : > { %v1540_v55 = vmul.f32 1.442695, %v1539_v52 }
 0x474   : > { %3441 = vmatpush3.bf16.msra.mxu0 %v3629_v27  ;;  %v1861_v27 = vrot.slane %v1856_v26, %v4158_v29 }
 0x475   : > { %3717 = vpow2.f32 %v1540_v55  ;;  %3442 = vmatprep.subr.bf16.mxu0 %v3862_v4 }
 0x476   : > { %3719 = vpow2.f32 %v1317_v54 }
 0x478   : > { %3443 = vmatpush3.bf16.msra.mxu0 %v3630_v32 }
 0x482   : > { %v3718_v56 = vpop.eup %3717 }
 0x483   : > { %v1542_v57 = vsel %vm1200_vm4, %v3718_v56, 0.0  ;;  %v3720_v58 = vpop.eup %3719 }
 0x484   : > { %1543 = vadd.xlane.f32.xlu1 %v1542_v57  ;;  %v1319_v59 = vsel %vm1200_vm4, %v3720_v58, 0.0 }
 0x488   : > { %1327 = vrot.lane.b32.xlu0 %v4177_v49, %s4777_s6  ;;  %1320 = vadd.xlane.f32.xlu1 %v1319_v59  ;;  %s4819_s6 = sld [smem:[#allocation26_spill]] }
 0x48e   : > { %v3633_v35 = vld [vmem:[%s4819_s6 + $0x74] ss:$8 sps:$4 sm:$0xff]  }
 0x48f   : > { %1948 = vmatprep.subr.bf16.mxu0 %v3633_v35  ;;  %v3639_v59 = vld [vmem:[%s4819_s6 + $0x54] ss:$8 sps:$4 sm:$0xff]  }
 0x499   : > { %1438 = vrot.lane.b32.xlu1 %v4177_v49, %s4779_s9  ;;  %s4825_s9 = sld [smem:[#allocation23_spill]] }
 0x49d   : > { %1549 = vrot.lane.b32.xlu1 %v4177_v49, %s4781_s7 }
 0x4fb   : > { %v1433_v60 = vpop.xlane.xlu0 %1432 }
 0x4fc   : > { %3721 = vrcp.f32 %v1433_v60  ;;  %v3637_v60 = vld [vmem:[%s4819_s6 + $0x50] ss:$8 sps:$4 sm:$0xff]  }
 0x4ff   : > { %v1328_v61 = vpop.permute.xlu0 %1327 }
 0x500   : > { %v1333_v62 = vsel %vm1217_vm2, %v1328_v61, 0  ;;  %v3642_v61 = vld [vmem:[%s4819_s6 + $0x44] ss:$8 sps:$4 sm:$0xff]  }
 0x501   : > { %3399 = vmatpush3.bf16.msra.mxu1 %v1333_v62  ;;  %v3640_v62 = vld [vmem:[%s4819_s6 + $0x40] ss:$8 sps:$4 sm:$0xff]  }
 0x502   : > { %3410 = vmatprep.subr.bf16.mxu1 %v3862_v4 }
 0x509   : > { %v3722_v1 = vpop.eup %3721 }
 0x50a   : > { %v1435_v8 = vmul.f32 %v3722_v1, %v3716_v50  ;;  %v3650_v1 = vld [vmem:[%s4819_s6 + $0x24] ss:$8 sps:$4 sm:$0xff]  }
 0x50c   : > { %v1437_v16 = vpack.c.bf16 %v1435_v8, %v1435_v8 }
 0x50d   : > { %v1544_v63 = vpop.xlane.xlu1 %1543 }
 0x511   : > { %v1321_v0 = vpop.xlane.xlu1 %1320 }
 0x512   : > { %3723 = vrcp.f32 %v1321_v0  ;;  %v3644_v0 = vld [vmem:[%s4819_s6 + $0x30] ss:$8 sps:$4 sm:$0xff]  }
 0x513   : > { %3725 = vrcp.f32 %v1544_v63  ;;  %v3646_v63 = vld [vmem:[%s4819_s6 + $0x34] ss:$8 sps:$4 sm:$0xff]  }
 0x515   : > { %v1439_v7 = vpop.permute.xlu1 %1438 }
 0x516   : > { %v1444_v10 = vsel %vm1217_vm2, %v1439_v7, 0  ;;  %v3658_v7 = vld [vmem:[%s4819_s6 + $0x4] ss:$8 sps:$4 sm:$0xff]  }
 0x51f   : > { %v3724_v3 = vpop.eup %3723 }
 0x520   : > { %v1323_v5 = vmul.f32 %v3724_v3, %v3720_v58  ;;  %v3726_v6 = vpop.eup %3725  ;;  %v3636_v58 = vld [vmem:[%s4819_s6 + $0x64] ss:$8 sps:$4 sm:$0xff]   ;;  %v3648_v3 = vld [vmem:[%s4819_s6 + $0x20] ss:$8 sps:$4 sm:$0xff]  }
 0x521   : > { %v1546_v11 = vmul.f32 %v3726_v6, %v3718_v56  ;;  %v3631_v56 = vld [vmem:[%s4819_s6 + $0x70] ss:$8 sps:$4 sm:$0xff]  }
 0x522   : > { %v1325_v49 = vpack.c.bf16 %v1323_v5, %v1323_v5  ;;  %v1324_v9 = vadd.f32 %v1323_v5, %v4199_v15  ;;  %v1550_v15 = vpop.permute.xlu1 %1549  ;;  %v3654_v5 = vld [vmem:[%s4819_s6 + $0x14] ss:$8 sps:$4 sm:$0xff]   ;;  %v3652_v6 = vld [vmem:[%s4819_s6 + $0x10] ss:$8 sps:$4 sm:$0xff]  }
 0x523   : > { %v1555_v17 = vsel %vm1217_vm2, %v1550_v15, 0  ;;  %v1548_v18 = vpack.c.bf16 %v1546_v11, %v1546_v11 }
 0x524   : > { %3401 = vmatmul.mubr.msk.bf16.vlgmr.msra.gmra.mxu1 %vm1200_vm4, %v1325_v49  ;;  %v1436_v12 = vadd.f32 %v1435_v8, %v1324_v9  ;;  %v3656_v49 = vld [vmem:[%s4819_s6] ss:$8 sps:$4 sm:$0xff]   ;;  %v3660_v9 = vld [vmem:[%s4822_s30 + $0x10] sm:$0xff]  }
 0x525   : > { %3411 = vmatpush3.bf16.msra.mxu1 %v1444_v10  ;;  %3412 = vmatprep.mubr.msk.bf16.mxu1 %vm3863_vm0, %v3862_v4  ;;  %v852_v8 = vld [vmem:[%s843_s17] sm:$0xf]  ;;  %v3661_v10 = vld [vmem:[%s4822_s30 + $0x8] sm:$0xff]   ;;  %s4645_s17 = sshll.u32 %s4026_s8, 7 }
 0x526   : > { %3422 = vmatprep.subr.bf16.mxu1 %v3862_v4  ;;  %v1547_v13 = vadd.f32 %v1546_v11, %v1436_v12  ;;  %v3662_v11 = vld [vmem:[%s4822_s30] sm:$0xff]   ;;  %s2964_s27 = scalar_lea.hbm %s4760_s25, %s4645_s17 }
 0x527   : > { %v3172_v12 = vld [vmem:[%s4825_s9] ss:$0 sm:$0xff] }
 0x528   : > { %v1709_v14 = vmul.f32 0.25, %v1547_v13  ;;  %v1710_v13 = vunpack.c.l.bf16 %v4137_v24 }
 0x52a   : > { %2927 = vst.msk [vmem:[%s4776_s5] sm:$0xff] %vm1200_vm4, %v1709_v14  ;;  %s4820_s5 = smov 64  }
 0x52c   : > { %3413 = vmatmul.mubr.msk.bf16.vlgmr.msra.gmra.mxu1 %vm1200_vm4, %v1437_v16  ;;  %v3181_v16 = vld [vmem:[%s4753_s18] ss:$0 sm:$0xff] }
 0x52d   : > { %3423 = vmatpush3.bf16.msra.mxu1 %v1555_v17  ;;  %3424 = vmatprep.mubr.msk.bf16.mxu1 %vm3863_vm0, %v3862_v4 }
 0x52e   : > { %3448 = vmatprep.subr.bf16.mxu1 %v3862_v4 }
 0x534   : > { %3425 = vmatmul.mubr.msk.bf16.vlgmr.msra.gmra.mxu1 %vm1200_vm4, %v1548_v18 }
 0x535   : > { %3464 = vmatprep.mubr.msk.bf16.mxu1 %vm3863_vm0, %v3862_v4  ;;  %3449 = vmatpush3.bf16.msra.mxu1 %v3643_v41 }
 0x536   : > { %3450 = vmatprep.subr.bf16.mxu1 %v3862_v4 }
 0x539   : > { %3451 = vmatpush3.bf16.msra.mxu1 %v3647_v44 }
 0x53a   : > { %3452 = vmatprep.subr.bf16.mxu1 %v3862_v4 }
 0x53d   : > { %3453 = vmatpush3.bf16.msra.mxu1 %v3651_v46 }
 0x53e   : > { %3454 = vmatprep.subr.bf16.mxu1 %v3862_v4 }
 0x541   : > { %3455 = vmatpush3.bf16.msra.mxu1 %v3655_v47 }
 0x542   : > { %3456 = vmatprep.subr.bf16.mxu1 %v3862_v4 }
 0x545   : > { %3457 = vmatpush3.bf16.msra.mxu1 %v3659_v48 }
 0x546   : > { %3458 = vmatprep.subr.bf16.mxu1 %v3862_v4 }
 0x549   : > { %3459 = vmatpush3.bf16.msra.mxu1 %v3660_v9 }
 0x54a   : > { %3460 = vmatprep.subr.bf16.mxu1 %v3862_v4 }
 0x54d   : > { %3461 = vmatpush3.bf16.msra.mxu1 %v3661_v10 }
 0x54e   : > { %3462 = vmatprep.subr.bf16.mxu1 %v3862_v4 }
 0x551   : > { %3463 = vmatpush3.bf16.msra.mxu1 %v3662_v11 }
 0x552   : > { %3468 = vmatprep.subr.bf16.mxu1 %v3862_v4 }
 0x5e4   : > { %v1369_v28 = vpop.f32.mrf.mxu1 }
 0x5e5   : > { %1598 = vrot.lane.b32.xlu0 %v1369_v28, %s4781_s7  ;;  %v1865_v28 = vrot.slane %v1856_v26, %v4163_v31 }
 0x5e6   : > { %v3402_v30 = vpop.f32.mrf.mxu1 }
 0x5e8   : > { %v1372_v33 = vpop.f32.mrf.mxu1 }
 0x5ea   : > { %v3403_v34 = vpop.f32.mrf.mxu1 }
 0x5ec   : > { %v1480_v36 = vpop.f32.mrf.mxu1 }
 0x5ed   : > { %1602 = vrot.lane.b32.xlu1 %v1480_v36, %s4820_s5 }
 0x5ee   : > { %v3414_v37 = vpop.f32.mrf.mxu1 }
 0x5f0   : > { %v1483_v38 = vpop.f32.mrf.mxu1 }
 0x5f2   : > { %v3415_v39 = vpop.f32.mrf.mxu1 }
 0x5f3   : > { %v3183_v39 = vld [vmem:[%s4827_s0] ss:$0 sm:$0xff] }
 0x5f4   : > { %v1591_v40 = vpop.f32.mrf.mxu1 }
 0x5f5   : > { %1606 = vrot.lane.b32.xlu0 %v1591_v40, %s4821_s28 }
 0x5f6   : > { %v3426_v42 = vpop.f32.mrf.mxu1 }
 0x5f8   : > { %v1594_v43 = vpop.f32.mrf.mxu1 }
 0x5fa   : > { %v3427_v45 = vpop.f32.mrf.mxu1 }
 0x657   : > { %v1599_v50 = vpop.permute.xlu0 %1598 }
 0x658   : > { %v1609_v52 = vsel %vm1153_vm1, %v4217_v25, %v1599_v50  ;;  %v3634_v25 = vld [vmem:[%s4819_s6 + $0x60] ss:$8 sps:$4 sm:$0xff]  }
 0x659   : > { %v4422_v50 = vld [vmem:[%s849_s22] ss:$0 sm:$0xff] }
 0x65f   : > { %v1603_v51 = vpop.permute.xlu1 %1602 }
 0x660   : > { %v1611_v53 = vsel %vm1610_vm5, %v1609_v52, %v1603_v51 }
 0x667   : > { %v1607_v54 = vpop.permute.xlu0 %1606 }
 0x668   : > { %v1613_v55 = vsel %vm1612_vm6, %v1611_v53, %v1607_v54 }
 0x669   : > { %v1614_v57 = vpack.c.bf16 %v1613_v55, %v1613_v55 }
 0x66b   : > { %3445 = vmatmul.mubr.bf16.vlgmr.msra.gmra.mxu0 %v1614_v57 }
 0x66c   : > { %1949 = vmatpush1.bf16.msra.mxu0 %v3631_v56  ;;  %1980 = vmatprep.mubr.bf16.mxu0 %v3861_v2 }
 0x66d   : > { %1950 = vmatprep.subr.bf16.mxu0 %v3636_v58 }
 0x670   : > { %1951 = vmatpush1.bf16.msra.mxu0 %v3634_v25 }
 0x671   : > { %1952 = vmatprep.subr.bf16.mxu0 %v3639_v59 }
 0x674   : > { %1953 = vmatpush1.bf16.msra.mxu0 %v3637_v60 }
 0x675   : > { %1954 = vmatprep.subr.bf16.mxu0 %v3642_v61 }
 0x678   : > { %1955 = vmatpush1.bf16.msra.mxu0 %v3640_v62 }
 0x679   : > { %1956 = vmatprep.subr.bf16.mxu0 %v3646_v63 }
 0x67c   : > { %1957 = vmatpush1.bf16.msra.mxu0 %v3644_v0 }
 0x67d   : > { %1958 = vmatprep.subr.bf16.mxu0 %v3650_v1 }
 0x680   : > { %1959 = vmatpush1.bf16.msra.mxu0 %v3648_v3 }
 0x681   : > { %1960 = vmatprep.subr.bf16.mxu0 %v3654_v5 }
 0x684   : > { %1961 = vmatpush1.bf16.msra.mxu0 %v3652_v6 }
 0x685   : > { %1962 = vmatprep.subr.bf16.mxu0 %v3658_v7 }
 0x688   : > { %1963 = vmatpush1.bf16.msra.mxu0 %v3656_v49 }
 0x689   : > { %3492 = vmatprep.subr.bf16.mxu0 %v3862_v4 }
 0x68b   : > { %1981 = vmatmul.mubr.bf16.vlgmr.msra.gmra.mxu0 %v852_v8 }
 0x68c   : > { %3494 = vmatprep.mubr.msk.bf16.mxu0 %vm3863_vm0, %v3862_v4 }
 0x72b   : > { %v1703_v14 = vpop.f32.mrf.mxu0 }
 0x72c   : > { %v1704_v15 = vadd.f32 %v3172_v12, %v1703_v14 }
 0x72d   : > { %v3446_v17 = vpop.f32.mrf.mxu0 }
 0x72e   : > { %v1711_v18 = vadd.f32 %v1710_v13, %v1704_v15 }
 0x72f   : > { %v1706_v20 = vpop.f32.mrf.mxu0 }
 0x730   : > { %v1719_v21 = vmul.f32 %v3181_v16, %v1711_v18 }
 0x731   : > { %v3447_v22 = vpop.f32.mrf.mxu0 }
 0x732   : > { %v4394_v23 = vadd.f32 %v3182_v19, %v1719_v21 }
 0x734   : > { %v1728_v24 = vpack.c.bf16 %v4394_v23, %v4394_v23 }
 0x736   : > { %3465 = vmatmul.mubr.bf16.vlgmr.msra.gmra.mxu1 %v1728_v24 }
 0x737   : > { %3470 = vmatprep.mubr.msk.bf16.mxu1 %vm3863_vm0, %v3862_v4 }
 0x74b   : > { %v1982_v30 = vpop.f32.mrf.mxu0 }
 0x74c   : > { %v1983_v32 = vadd.f32 %v1982_v30, %v1861_v27 }
 0x74d   : > { %v1984_v33 = vpop.f32.mrf.mxu0 }
 0x74e   : > { %v2008_v34 = vpack.c.bf16 %v1983_v32, %v1983_v32  ;;  %v1985_v35 = vadd.f32 %v1984_v33, %v1865_v28 }
 0x74f   : > { %v1986_v36 = vpop.f32.mrf.mxu0 }
 0x750   : > { %v2014_v37 = vsel %vm1153_vm1, %v2008_v34, 0  ;;  %v4410_v43 = vpack.c.bf16 %v1985_v35, %v1985_v35 }
 0x751   : > { %v1987_v38 = vpop.f32.mrf.mxu0  ;;  %3469 = vmatpush3.bf16.xpose.msra.mxu1 %v2014_v37 }
 0x752   : > { %3474 = vmatprep.subr.bf16.mxu1 %v3862_v4  ;;  %v2073_v48 = vsel %vm1217_vm2, %v4410_v43, 0 }
 0x7f6   : > { %v1834_v40 = vpop.f32.mrf.mxu1 }
 0x7f7   : > { %v1835_v41 = vadd.f32 %v3183_v39, %v1834_v40 }
 0x7f8   : > { %v3466_v42 = vpop.f32.mrf.mxu1 }
 0x7f9   : > { %v2006_v44 = vmul.f32 0.17677669, %v1835_v41 }
 0x7fa   : > { %v1837_v45 = vpop.f32.mrf.mxu1 }
 0x7fb   : > { %v2007_v46 = vpack.c.bf16 %v2006_v44, %v2006_v44 }
 0x7fc   : > { %v3467_v47 = vpop.f32.mrf.mxu1 }
 0x7fd   : > { %3471 = vmatmul.mubr.msk.bf16.vlgmr.msra.gmra.mxu1 %vm1153_vm1, %v2007_v46 }
 0x7fe   : > { %3475 = vmatpush3.bf16.msra.mxu1 %v2073_v48  ;;  %3476 = vmatprep.mubr.msk.bf16.mxu1 %vm3863_vm0, %v3862_v4 }
 0x7ff   : > { %3480 = vmatprep.subr.bf16.mxu1 %v3862_v4 }
 0x8bd   : > { %v2050_v51 = vpop.f32.mrf.mxu1 }
 0x8be   : > { %v2051_v52 = vadd.f32 %v4422_v50, %v2050_v51 }
 0x8bf   : > { %v3472_v53 = vpop.f32.mrf.mxu1 }
 0x8c0   : > { %v2056_v54 = vsel %vm1200_vm4, %v2051_v52, -inf }
 0x8c1   : > { %2057 = vmax.xlane.f32.xlu1 %v2056_v54  ;;  %v2053_v55 = vpop.f32.mrf.mxu1 }
 0x8c3   : > { %v3473_v56 = vpop.f32.mrf.mxu1 }
 0x8d2   : > { %2116 = vrot.lane.b32.xlu1 %v2007_v46, %s4821_s28 }
 0x8d6   : > { %2231 = vrot.lane.b32.xlu1 %v2008_v34, %s4820_s5 }
 0x8da   : > { %2342 = vrot.lane.b32.xlu1 %v2008_v34, %s4829_s3 }
 0x94a   : > { %v2058_v57 = vpop.xlane.xlu1 %2057 }
 0x94b   : > { %v2059_v58 = vsub.f32 %v2051_v52, %v2058_v57 }
 0x94d   : > { %v2060_v25 = vmul.f32 1.442695, %v2059_v58 }
 0x94e   : > { %v2117_v59 = vpop.permute.xlu1 %2116 }
 0x94f   : > { %3727 = vpow2.f32 %v2060_v25 }
 0x952   : > { %v2232_v60 = vpop.permute.xlu1 %2231 }
 0x953   : > { %v2237_v61 = vsel %vm1153_vm1, %v2232_v60, 0 }
 0x954   : > { %3493 = vmatpush3.bf16.xpose.msra.mxu0 %v2237_v61 }
 0x955   : > { %3504 = vmatprep.subr.bf16.mxu0 %v3862_v4 }
 0x956   : > { %v2343_v3 = vpop.permute.xlu1 %2342 }
 0x957   : > { %v2348_v6 = vsel %vm1153_vm1, %v2343_v3, 0 }
 0x95c   : > { %v3728_v62 = vpop.eup %3727 }
 0x95d   : > { %v2062_v63 = vsel %vm1200_vm4, %v3728_v62, 0.0 }
 0x95e   : > { %2063 = vadd.xlane.f32.xlu0 %v2062_v63 }
 0x974   : > { %2119 = vrot.lane.b32.xlu0 %v2008_v34, %s4821_s28 }
 0x978   : > { %2229 = vrot.lane.b32.xlu0 %v2007_v46, %s4820_s5 }
 0x97c   : > { %2340 = vrot.lane.b32.xlu0 %v2007_v46, %s4829_s3 }
 0x9e7   : > { %v2064_v0 = vpop.xlane.xlu0 %2063 }
 0x9e8   : > { %3729 = vrcp.f32 %v2064_v0 }
 0x9eb   : > { %v2120_v1 = vpop.permute.xlu0 %2119 }
 0x9ec   : > { %v2125_v10 = vsel %vm1153_vm1, %v2120_v1, 0 }
 0x9ef   : > { %v2230_v5 = vpop.permute.xlu0 %2229 }
 0x9f0   : > { %3495 = vmatmul.mubr.msk.bf16.vlgmr.msra.gmra.mxu0 %vm1153_vm1, %v2230_v5 }
 0x9f1   : > { %3505 = vmatpush3.bf16.xpose.msra.mxu0 %v2348_v6  ;;  %3506 = vmatprep.mubr.msk.bf16.mxu0 %vm3863_vm0, %v3862_v4 }
 0x9f2   : > { %3516 = vmatprep.subr.bf16.mxu0 %v3862_v4 }
 0x9f3   : > { %v2341_v8 = vpop.permute.xlu0 %2340 }
 0x9f5   : > { %v3730_v7 = vpop.eup %3729 }
 0x9f6   : > { %v4440_v49 = vmul.f32 %v3730_v7, %v3728_v62 }
 0x9f8   : > { %3507 = vmatmul.mubr.msk.bf16.vlgmr.msra.gmra.mxu0 %vm1153_vm1, %v2341_v8  ;;  %v2068_v9 = vpack.c.bf16 %v4440_v49, %v4440_v49 }
 0x9f9   : > { %3532 = vmatprep.mubr.msk.bf16.mxu0 %vm3863_vm0, %v3862_v4 }
 0x9fa   : > { %3477 = vmatmul.mubr.msk.bf16.vlgmr.msra.gmra.mxu1 %vm1200_vm4, %v2068_v9 }
 0x9fb   : > { %3481 = vmatpush3.bf16.xpose.msra.mxu1 %v2125_v10  ;;  %3482 = vmatprep.mubr.msk.bf16.mxu1 %vm3863_vm0, %v3862_v4 }
 0x9fc   : > { %3486 = vmatprep.subr.bf16.mxu1 %v3862_v4 }
 0xa02   : > { %3483 = vmatmul.mubr.msk.bf16.vlgmr.msra.gmra.mxu1 %vm1153_vm1, %v2117_v59 }
 0xa03   : > { %3488 = vmatprep.mubr.msk.bf16.mxu1 %vm3863_vm0, %v3862_v4 }
 0xab0   : > { %v2273_v11 = vpop.f32.mrf.mxu0 }
 0xab1   : > { %v2274_v12 = vadd.f32 %v4422_v50, %v2273_v11  ;;  %v3663_v11 = vld [vmem:[%s4747_s12 + $0x38] sm:$0xff]  }
 0xab2   : > { %v3496_v13 = vpop.f32.mrf.mxu0  ;;  %3517 = vmatpush3.bf16.msra.mxu0 %v3663_v11  ;;  %v3226_v11 = vld [vmem:[%s4756_s21] ss:$0 sm:$0xff] }
 0xab3   : > { %v2279_v14 = vsel %vm1200_vm4, %v2274_v12, -inf  ;;  %3518 = vmatprep.subr.bf16.mxu0 %v3862_v4  ;;  %v3665_v13 = vld [vmem:[%s4747_s12 + $0x28] sm:$0xff]  }
 0xab4   : > { %2280 = vmax.xlane.f32.xlu0 %v2279_v14  ;;  %v2276_v15 = vpop.f32.mrf.mxu0  ;;  %v3667_v14 = vld [vmem:[%s4747_s12 + $0x18] sm:$0xff]  }
 0xab5   : > { %v3668_v15 = vld [vmem:[%s4747_s12 + $0x10] sm:$0xff]  }
 0xab6   : > { %v3497_v16 = vpop.f32.mrf.mxu0 }
 0xab7   : > { %v3669_v16 = vld [vmem:[%s4747_s12 + $0x8] sm:$0xff]  }
 0xab8   : > { %v2384_v17 = vpop.f32.mrf.mxu0 }
 0xab9   : > { %v2385_v18 = vadd.f32 %v4422_v50, %v2384_v17 }
 0xaba   : > { %v4458_v19 = vpop.f32.mrf.mxu1  ;;  %v3508_v20 = vpop.f32.mrf.mxu0 }
 0xabb   : > { %v2390_v21 = vsel %vm1200_vm4, %v2385_v18, -inf  ;;  %v3670_v20 = vld [vmem:[%s4747_s12] sm:$0xff]  }
 0xabc   : > { %2391 = vmax.xlane.f32.xlu0 %v2390_v21  ;;  %v3478_v22 = vpop.f32.mrf.mxu1  ;;  %v2387_v24 = vpop.f32.mrf.mxu0 }
 0xabd   : > { %v3671_v24 = vld [vmem:[%s4749_s14 + $0x70] ss:$8 sps:$4 sm:$0xff]  }
 0xabe   : > { %v2112_v26 = vpop.f32.mrf.mxu1  ;;  %v3509_v27 = vpop.f32.mrf.mxu0 }
 0xabf   : > { %v3673_v26 = vld [vmem:[%s4749_s14 + $0x74] ss:$8 sps:$4 sm:$0xff]  }
 0xac0   : > { %v3479_v28 = vpop.f32.mrf.mxu1 }
 0xac2   : > { %v2161_v30 = vpop.f32.mrf.mxu1 }
 0xac3   : > { %v2162_v32 = vadd.f32 %v4422_v50, %v2161_v30  ;;  %v3674_v30 = vld [vmem:[%s4749_s14 + $0x60] ss:$8 sps:$4 sm:$0xff]  }
 0xac4   : > { %v3484_v33 = vpop.f32.mrf.mxu1 }
 0xac5   : > { %v2167_v34 = vsel %vm1200_vm4, %v2162_v32, -inf }
 0xac6   : > { %2168 = vmax.xlane.f32.xlu1 %v2167_v34  ;;  %v2164_v35 = vpop.f32.mrf.mxu1 }
 0xac7   : > { %v3677_v35 = vld [vmem:[%s4749_s14 + $0x50] ss:$8 sps:$4 sm:$0xff]  }
 0xac8   : > { %v3485_v36 = vpop.f32.mrf.mxu1 }
 0xac9   : > { %v3682_v36 = vld [vmem:[%s4749_s14 + $0x44] ss:$8 sps:$4 sm:$0xff]  }
 0xb3d   : > { %v2281_v37 = vpop.xlane.xlu0 %2280 }
 0xb3e   : > { %v2282_v38 = vsub.f32 %v2274_v12, %v2281_v37  ;;  %v3664_v12 = vld [vmem:[%s4747_s12 + $0x30] sm:$0xff]  }
 0xb3f   : > { %3519 = vmatpush3.bf16.msra.mxu0 %v3664_v12 }
 0xb40   : > { %v2283_v39 = vmul.f32 1.442695, %v2282_v38  ;;  %3520 = vmatprep.subr.bf16.mxu0 %v3862_v4 }
 0xb42   : > { %3731 = vpow2.f32 %v2283_v39  ;;  %v3680_v39 = vld [vmem:[%s4749_s14 + $0x40] ss:$8 sps:$4 sm:$0xff]  }
 0xb43   : > { %3521 = vmatpush3.bf16.msra.mxu0 %v3665_v13 }
 0xb44   : > { %3522 = vmatprep.subr.bf16.mxu0 %v3862_v4 }
 0xb45   : > { %v2392_v40 = vpop.xlane.xlu0 %2391 }
 0xb46   : > { %v2393_v41 = vsub.f32 %v2385_v18, %v2392_v40  ;;  %v3685_v40 = vld [vmem:[%s4749_s14 + $0x34] ss:$8 sps:$4 sm:$0xff]  }
 0xb48   : > { %v2394_v42 = vmul.f32 1.442695, %v2393_v41 }
 0xb4a   : > { %3733 = vpow2.f32 %v2394_v42 }
 0xb4f   : > { %v3732_v44 = vpop.eup %3731  ;;  %v2169_v45 = vpop.xlane.xlu1 %2168 }
 0xb50   : > { %v2170_v46 = vsub.f32 %v2162_v32, %v2169_v45  ;;  %v2285_v47 = vsel %vm1200_vm4, %v3732_v44, 0.0  ;;  %v3679_v32 = vld [vmem:[%s4749_s14 + $0x54] ss:$8 sps:$4 sm:$0xff]   ;;  %v3688_v45 = vld [vmem:[%s4749_s14 + $0x24] ss:$8 sps:$4 sm:$0xff]  }
 0xb51   : > { %2286 = vadd.xlane.f32.xlu0 %v2285_v47 }
 0xb52   : > { %v2171_v48 = vmul.f32 1.442695, %v2170_v46  ;;  %v3686_v46 = vld [vmem:[%s4749_s14 + $0x20] ss:$8 sps:$4 sm:$0xff]  }
 0xb54   : > { %3735 = vpow2.f32 %v2171_v48 }
 0xb57   : > { %v3734_v50 = vpop.eup %3733 }
 0xb58   : > { %v2396_v51 = vsel %vm1200_vm4, %v3734_v50, 0.0 }
 0xb59   : > { %2397 = vadd.xlane.f32.xlu1 %v2396_v51 }
 0xb61   : > { %v3736_v52 = vpop.eup %3735 }
 0xb62   : > { %v2173_v53 = vsel %vm1200_vm4, %v3736_v52, 0.0 }
 0xb63   : > { %2174 = vadd.xlane.f32.xlu1 %v2173_v53 }
 0xb67   : > { %2181 = vrot.lane.b32.xlu0 %v4410_v43, %s4821_s28 }
 0xb74   : > { %2292 = vrot.lane.b32.xlu1 %v4410_v43, %s4820_s5 }
 0xb78   : > { %2403 = vrot.lane.b32.xlu1 %v4410_v43, %s4829_s3 }
 0xbda   : > { %v2287_v54 = vpop.xlane.xlu0 %2286 }
 0xbdb   : > { %3737 = vrcp.f32 %v2287_v54 }
 0xbde   : > { %v2182_v55 = vpop.permute.xlu0 %2181 }
 0xbdf   : > { %v2187_v56 = vsel %vm1217_vm2, %v2182_v55, 0  ;;  %v3691_v55 = vld [vmem:[%s4749_s14 + $0x14] ss:$8 sps:$4 sm:$0xff]  }
 0xbe0   : > { %3487 = vmatpush3.bf16.msra.mxu1 %v2187_v56  ;;  %v3689_v56 = vld [vmem:[%s4749_s14 + $0x10] ss:$8 sps:$4 sm:$0xff]  }
 0xbe1   : > { %3498 = vmatprep.subr.bf16.mxu1 %v3862_v4 }
 0xbe2   : > { %v2398_v57 = vpop.xlane.xlu1 %2397 }
 0xbe8   : > { %v3738_v25 = vpop.eup %3737 }
 0xbe9   : > { %v2289_v63 = vmul.f32 %v3738_v25, %v3732_v44  ;;  %v3683_v44 = vld [vmem:[%s4749_s14 + $0x30] ss:$8 sps:$4 sm:$0xff]  }
 0xbea   : > { %v3696_v25 = vld [vmem:[%s4751_s16 + $0x38] sm:$0xff]  }
 0xbeb   : > { %v2291_v9 = vpack.c.bf16 %v2289_v63, %v2289_v63 }
 0xbec   : > { %v2175_v58 = vpop.xlane.xlu1 %2174 }
 0xbed   : > { %3739 = vrcp.f32 %v2175_v58  ;;  %v3695_v58 = vld [vmem:[%s4751_s16 + $0x78] sm:$0xff]  }
 0xbee   : > { %3741 = vrcp.f32 %v2398_v57  ;;  %v3692_v57 = vld [vmem:[%s4749_s14] ss:$8 sps:$4 sm:$0xff]  }
 0xbf0   : > { %v2293_v62 = vpop.permute.xlu1 %2292 }
 0xbf1   : > { %v2298_v1 = vsel %vm1217_vm2, %v2293_v62, 0  ;;  %v3700_v62 = vld [vmem:[%s4751_s16 + $0x28] sm:$0xff]  }
 0xbf4   : > { %v2404_v8 = vpop.permute.xlu1 %2403 }
 0xbfa   : > { %v3740_v59 = vpop.eup %3739 }
 0xbfb   : > { %v2177_v60 = vmul.f32 %v3740_v59, %v3736_v52  ;;  %v3742_v61 = vpop.eup %3741  ;;  %v3697_v59 = vld [vmem:[%s4751_s16 + $0x70] sm:$0xff]  }
 0xbfc   : > { %v2400_v3 = vmul.f32 %v3742_v61, %v3734_v50  ;;  %v3699_v61 = vld [vmem:[%s4751_s16 + $0x68] sm:$0xff]  }
 0xbfd   : > { %v2179_v43 = vpack.c.bf16 %v2177_v60, %v2177_v60  ;;  %v2178_v0 = vadd.f32 %v2177_v60, %v4440_v49  ;;  %v2409_v49 = vsel %vm1217_vm2, %v2404_v8, 0  ;;  %v3698_v60 = vld [vmem:[%s4751_s16 + $0x30] sm:$0xff]  }
 0xbfe   : > { %v2402_v10 = vpack.c.bf16 %v2400_v3, %v2400_v3 }
 0xbff   : > { %3489 = vmatmul.mubr.msk.bf16.vlgmr.msra.gmra.mxu1 %vm1200_vm4, %v2179_v43  ;;  %v2290_v5 = vadd.f32 %v2289_v63, %v2178_v0  ;;  %v3701_v43 = vld [vmem:[%s4751_s16 + $0x60] sm:$0xff]   ;;  %v3703_v0 = vld [vmem:[%s4751_s16 + $0x58] sm:$0xff]  }
 0xc00   : > { %3499 = vmatpush3.bf16.msra.mxu1 %v2298_v1  ;;  %3500 = vmatprep.mubr.msk.bf16.mxu1 %vm3863_vm0, %v3862_v4  ;;  %v3702_v63 = vld [vmem:[%s4751_s16 + $0x20] sm:$0xff]   ;;  %v3704_v1 = vld [vmem:[%s4751_s16 + $0x18] sm:$0xff]  }
 0xc01   : > { %3510 = vmatprep.subr.bf16.mxu1 %v3862_v4  ;;  %v2401_v6 = vadd.f32 %v2400_v3, %v2290_v5  ;;  %v3705_v3 = vld [vmem:[%s4751_s16 + $0x50] sm:$0xff]  }
 0xc02   : > { %v3706_v5 = vld [vmem:[%s4751_s16 + $0x10] sm:$0xff]  }
 0xc03   : > { %v2561_v7 = vmul.f32 0.25, %v2401_v6  ;;  %v3216_v6 = vld [vmem:[%s4748_s13] ss:$0 sm:$0xff] }
 0xc05   : > { %2928 = vst.msk [vmem:[%s835_s10] sm:$0xff] %vm1200_vm4, %v2561_v7 }
 0xc07   : > { %3501 = vmatmul.mubr.msk.bf16.vlgmr.msra.gmra.mxu1 %vm1200_vm4, %v2291_v9  ;;  %v3225_v9 = vld [vmem:[%s4755_s20] ss:$0 sm:$0xff] }
 0xc08   : > { %3511 = vmatpush3.bf16.msra.mxu1 %v2409_v49  ;;  %3512 = vmatprep.mubr.msk.bf16.mxu1 %vm3863_vm0, %v3862_v4 }
 0xc09   : > { %2688 = vmatprep.subr.bf16.mxu1 %v3673_v26 }
 0xc0f   : > { %3513 = vmatmul.mubr.msk.bf16.vlgmr.msra.gmra.mxu1 %vm1200_vm4, %v2402_v10 }
 0xc10   : > { %2720 = vmatprep.mubr.bf16.mxu1 %v3861_v2  ;;  %v3666_v2 = vld [vmem:[%s4747_s12 + $0x20] sm:$0xff]   ;;  %2689 = vmatpush1.bf16.msra.mxu1 %v3671_v24 }
 0xc11   : > { %3523 = vmatpush3.bf16.msra.mxu0 %v3666_v2 }
 0xc12   : > { %3524 = vmatprep.subr.bf16.mxu0 %v3862_v4 }
 0xc15   : > { %3525 = vmatpush3.bf16.msra.mxu0 %v3667_v14 }
 0xc16   : > { %3526 = vmatprep.subr.bf16.mxu0 %v3862_v4 }
 0xc19   : > { %3527 = vmatpush3.bf16.msra.mxu0 %v3668_v15 }
 0xc1a   : > { %3528 = vmatprep.subr.bf16.mxu0 %v3862_v4 }
 0xc1d   : > { %3529 = vmatpush3.bf16.msra.mxu0 %v3669_v16  ;;  %v3707_v16 = vld [vmem:[%s4751_s16 + $0x48] sm:$0xff]  }
 0xc1e   : > { %3530 = vmatprep.subr.bf16.mxu0 %v3862_v4  ;;  %v3676_v4 = vld [vmem:[%s4749_s14 + $0x64] ss:$8 sps:$4 sm:$0xff]  }
 0xc1f   : > { %2690 = vmatprep.subr.bf16.mxu1 %v3676_v4 }
 0xc20   : > { %2691 = vmatpush1.bf16.msra.mxu1 %v3674_v30 }
 0xc21   : > { %3531 = vmatpush3.bf16.msra.mxu0 %v3670_v20  ;;  %2692 = vmatprep.subr.bf16.mxu1 %v3679_v32  ;;  %v2596_v20 = vld [vmem:[%s4750_s15] sm:$0x3] }
 0xc22   : > { %3338 = vmatprep.subr.bf16.mxu0 %v3695_v58 }
 0xc24   : > { %2693 = vmatpush1.bf16.msra.mxu1 %v3677_v35 }
 0xc25   : > { %2694 = vmatprep.subr.bf16.mxu1 %v3682_v36 }
 0xc28   : > { %2695 = vmatpush1.bf16.msra.mxu1 %v3680_v39 }
 0xc29   : > { %2696 = vmatprep.subr.bf16.mxu1 %v3685_v40 }
 0xc2c   : > { %2697 = vmatpush1.bf16.msra.mxu1 %v3683_v44 }
 0xc2d   : > { %2698 = vmatprep.subr.bf16.mxu1 %v3688_v45 }
 0xc30   : > { %2699 = vmatpush1.bf16.msra.mxu1 %v3686_v46 }
 0xc31   : > { %2700 = vmatprep.subr.bf16.mxu1 %v3691_v55 }
 0xc34   : > { %2701 = vmatpush1.bf16.msra.mxu1 %v3689_v56 }
 0xcbf   : > { %v2223_v17 = vpop.f32.mrf.mxu1 }
 0xcc0   : > { %2452 = vrot.lane.b32.xlu0 %v2223_v17, %s4829_s3  ;;  %v3709_v17 = vld [vmem:[%s4751_s16 + $0x40] sm:$0xff]   ;;  %s3867_s3 = smov [#allocation4]  }
 0xcc1   : > { %v3490_v18 = vpop.f32.mrf.mxu1  ;;  %s3747_s4 = sshll.u32 %s3867_s3, 4  ;;  %s3748_s4 = int_to_ptr.vmem [resolvable:$false] %s3747_s4 }
 0xcc2   : > { %v3710_v18 = vld [vmem:[%s4751_s16] sm:$0xff]  }
 0xcc3   : > { %v2226_v21 = vpop.f32.mrf.mxu1 }
 0xcc4   : > { %v2601_v21 = vrot.slane %v2596_v20, %v4158_v29 }
 0xcc5   : > { %v3491_v22 = vpop.f32.mrf.mxu1 }
 0xcc6   : > { %v2605_v22 = vrot.slane %v2596_v20, %v4163_v31 }
 0xcc7   : > { %v2334_v27 = vpop.f32.mrf.mxu1 }
 0xcc8   : > { %2456 = vrot.lane.b32.xlu1 %v2334_v27, %s4820_s5  ;;  %s4830_s5 = scalar_lea.vmem [#allocation4], %s4240_s24 }
 0xcc9   : > { %v3502_v28 = vpop.f32.mrf.mxu1  ;;  %s2966_s9 = sshll.u32 %s4830_s5, 4  ;;  %s2967_s9 = int_to_ptr.vmem [resolvable:$true] %s2966_s9 }
 0xcca   : > { %s3743_s22 = scalar_lea.vmem %s2967_s9, 128  ;;  %p3750_p0 = scmp.lt.s32.totalorder %s2967_s9, %s3748_s4 }
 0xccb   : > { %v2337_v33 = vpop.f32.mrf.mxu1  ;;  %p3744_p11 = scmp.ne.s32.totalorder %s2967_s9, %s3743_s22 }
 0xccd   : > { %v3503_v34 = vpop.f32.mrf.mxu1  ;;  %p3745_p12 = pnand %p3744_p11, %p4045_p5 }
 0xccf   : > { %v2445_v37 = vpop.f32.mrf.mxu1  ;;  %p3746_p13 = pneg %p3745_p12 }
 0xcd0   : > { %2460 = vrot.lane.b32.xlu0 %v2445_v37, %s4821_s28  ;;  %s2934_s28 = sand.u32 1, %s4026_s8   ;;  %s3749_s8 = scalar_lea.vmem %s3748_s4, 256 }
 0xcd1   : > { %v3514_v38 = vpop.f32.mrf.mxu1  ;;  %s4653_s29 = scalar_lea.sflag [#allocation5], %s2934_s28  ;;  %p3751_p1 = scmp.lt.s32.totalorder %s3749_s8, %s3743_s22 }
 0xcd3   : > { %v2448_v41 = vpop.f32.mrf.mxu1  ;;  %p3752_p2 = por %p3751_p1, %p3750_p0 }
 0xcd5   : > { %v3515_v42 = vpop.f32.mrf.mxu1  ;;  %p3753_p3 = pnand %p3752_p2, %p3746_p13 }
 0xd32   : > { %v2453_v47 = vpop.permute.xlu0 %2452 }
 0xd33   : > { %v2463_v50 = vsel %vm1153_vm1, %v4458_v19, %v2453_v47  ;;  %v3694_v19 = vld [vmem:[%s4749_s14 + $0x4] ss:$8 sps:$4 sm:$0xff]  }
 0xd34   : > { %2702 = vmatprep.subr.bf16.mxu1 %v3694_v19 }
 0xd35   : > { %2703 = vmatpush1.bf16.msra.mxu1 %v3692_v57 }
 0xd3a   : > { %v2457_v48 = vpop.permute.xlu1 %2456 }
 0xd3b   : > { %v2464_v51 = vsel %vm1610_vm5, %v2463_v50, %v2457_v48 }
 0xd42   : > { %v2461_v52 = vpop.permute.xlu0 %2460 }
 0xd43   : > { %v2465_v53 = vsel %vm1612_vm6, %v2464_v51, %v2461_v52 }
 0xd44   : > { %v2466_v54 = vpack.c.bf16 %v2465_v53, %v2465_v53 }
 0xd46   : > { %3533 = vmatmul.mubr.bf16.vlgmr.msra.gmra.mxu0 %v2466_v54 }
 0xd47   : > { %3339 = vmatpush3.bf16.msra.mxu0 %v3696_v25 }
 0xd48   : > { %3340 = vmatprep.subr.bf16.mxu0 %v3697_v59 }
 0xd4b   : > { %3341 = vmatpush3.bf16.msra.mxu0 %v3698_v60 }
 0xd4c   : > { %3342 = vmatprep.subr.bf16.mxu0 %v3699_v61 }
 0xd4f   : > { %3343 = vmatpush3.bf16.msra.mxu0 %v3700_v62 }
 0xd50   : > { %3344 = vmatprep.subr.bf16.mxu0 %v3701_v43 }
 0xd53   : > { %3345 = vmatpush3.bf16.msra.mxu0 %v3702_v63 }
 0xd54   : > { %3346 = vmatprep.subr.bf16.mxu0 %v3703_v0 }
 0xd57   : > { %3347 = vmatpush3.bf16.msra.mxu0 %v3704_v1 }
 0xd58   : > { %3348 = vmatprep.subr.bf16.mxu0 %v3705_v3 }
 0xd5b   : > { %3349 = vmatpush3.bf16.msra.mxu0 %v3706_v5 }
 0xd5c   : > { %3350 = vmatprep.subr.bf16.mxu0 %v3707_v16 }
 0xe06   : > { %v2555_v7 = vpop.f32.mrf.mxu0 }
 0xe07   : > { %v2556_v8 = vadd.f32 %v3216_v6, %v2555_v7 }
 0xe08   : > { %v3534_v49 = vpop.f32.mrf.mxu0 }
 0xe09   : > { %v2562_v10 = vadd.f32 %v2556_v8, %v4394_v23  ;;  %v3708_v23 = vld [vmem:[%s4751_s16 + $0x8] sm:$0xff]  }
 0xe0a   : > { %v2558_v12 = vpop.f32.mrf.mxu0  ;;  %3351 = vmatpush3.bf16.msra.mxu0 %v3708_v23 }
 0xe0b   : > { %v2570_v13 = vmul.f32 %v3225_v9, %v2562_v10  ;;  %3352 = vmatprep.subr.bf16.mxu0 %v3709_v17 }
 0xe0c   : > { %v3535_v2 = vpop.f32.mrf.mxu0 }
 0xe0d   : > { %v4622_v14 = vadd.f32 %v3226_v11, %v2570_v13 }
 0xe0e   : > { %3353 = vmatpush3.bf16.msra.mxu0 %v3710_v18 }
 0xe0f   : > { %v2579_v15 = vpack.c.bf16 %v4622_v14, %v4622_v14 }
 0xe11   : > { %2721 = vmatmul.mubr.bf16.vlgmr.msra.gmra.mxu1 %v2579_v15 }
 0xed1   : > { %v2722_v24 = vpop.f32.mrf.mxu1 }
 0xed2   : > { %v2723_v26 = vadd.f32 %v2722_v24, %v2601_v21 }
 0xed3   : > { %v2724_v27 = vpop.f32.mrf.mxu1 }
 0xed4   : > { %v2725_v4 = vadd.f32 %v2724_v27, %v2605_v22  ;;  %v2729_v28 = vmax.f32 %v2723_v26, 0.0 }
 0xed5   : > { %v2726_v30 = vpop.f32.mrf.mxu1 }
 0xed6   : > { %v2730_v32 = vmax.f32 %v2725_v4, 0.0  ;;  %v2731_v35 = vpack.c.bf16 %v2729_v28, %v2729_v28 }
 0xed7   : > { %v2727_v33 = vpop.f32.mrf.mxu1 }
 0xed8   : > { %v2732_v34 = vpack.c.bf16 %v2730_v32, %v2730_v32 }
 0xeda   : > { %2900 = vmatprep.mubr.bf16.mxu0 %v2732_v34 }
 0xedb   : > { %2901 = vmatmul.mubr.bf16.vlgmr.msra.gmra.mxu0 %v2731_v35 }
 0xedc   : > { %3756 = shalt.err (!%p3753_p3)
}
 0xedd   : > { %s3757_s23 = scalar_lea.hbm %s2964_s27, 128  ;;  %s3761_s7 = scalar_lea.hbm %s4760_s25, 256 }
 0xede   : > { %p3758_p4 = scmp.ne.s32.totalorder %s2964_s27, %s3757_s23  ;;  %p3762_p9 = scmp.lt.s32.totalorder %s2964_s27, %s4760_s25 }
 0xedf   : > { %p3763_p10 = scmp.lt.s32.totalorder %s3761_s7, %s3757_s23 }
 0xee0   : > { %p3759_p7 = pnand %p3758_p4, %p4045_p5 }
 0xee1   : > { %p3764_p11 = por %p3763_p10, %p3762_p9 }
 0xee2   : > { %p3760_p8 = pneg %p3759_p7 }
 0xee4   : > { %p3765_p12 = pnand %p3764_p11, %p3760_p8 }
 0xee6   : > { %3768 = shalt.err (!%p3765_p12)
}
 0xee7   : > { %3537 = dma.vmem_to_hbm [thread:$0]  (%p4045_p5), %s2967_s9, 128, %s2964_s27, %s4653_s29  }
 0xee8   : > { %s2977_s4 = scalar_lea.hbm %s4761_s26, %s4645_s17  ;;  %s2979_s8 = sshll.u32 %s835_s10, 4  ;;  %s2980_s8 = int_to_ptr.vmem [resolvable:$true] %s2979_s8 }
 0xee9   : > { %s3769_s1 = scalar_lea.vmem %s2980_s8, 128  ;;  %s3868_s23 = smov [#allocation6]  }
 0xeea   : > { %p3770_p13 = scmp.ne.s32.totalorder %s2980_s8, %s3769_s1  ;;  %s3773_s28 = sshll.u32 %s3868_s23, 4  ;;  %s3774_s28 = int_to_ptr.vmem [resolvable:$false] %s3773_s28 }
 0xeeb   : > { %s3775_s7 = scalar_lea.vmem %s3774_s28, 256  ;;  %p3776_p2 = scmp.lt.s32.totalorder %s2980_s8, %s3774_s28 }
 0xeec   : > { %p3771_p0 = pnand %p3770_p13, %p4045_p5  ;;  %p3777_p3 = scmp.lt.s32.totalorder %s3775_s7, %s3769_s1 }
 0xeee   : > { %p3772_p1 = pneg %p3771_p0  ;;  %p3778_p4 = por %p3777_p3, %p3776_p2 }
 0xef0   : > { %p3779_p7 = pnand %p3778_p4, %p3772_p1 }
 0xef2   : > { %3782 = shalt.err (!%p3779_p7)
}
 0xef3   : > { %s3783_s27 = scalar_lea.hbm %s2977_s4, 128  ;;  %s3787_s0 = scalar_lea.hbm %s4761_s26, 256 }
 0xef4   : > { %p3784_p8 = scmp.ne.s32.totalorder %s2977_s4, %s3783_s27  ;;  %p3788_p11 = scmp.lt.s32.totalorder %s2977_s4, %s4761_s26 }
 0xef5   : > { %p3789_p12 = scmp.lt.s32.totalorder %s3787_s0, %s3783_s27 }
 0xef6   : > { %p3785_p9 = pnand %p3784_p8, %p4045_p5 }
 0xef7   : > { %p3790_p13 = por %p3789_p12, %p3788_p11 }
 0xef8   : > { %p3786_p10 = pneg %p3785_p9 }
 0xefa   : > { %p3791_p0 = pnand %p3790_p13, %p3786_p10 }
 0xefc   : > { %3794 = shalt.err (!%p3791_p0)
}
 0xefd   : > { %3538 = dma.vmem_to_hbm [thread:$0]  (%p4045_p5), %s2980_s8, 128, %s2977_s4, %s4653_s29  }
 0xefe   : > { %s4831_s23 = sld [smem:[#allocation28_spill]]  ;;  %s821_s9 = scalar_lea.vmem [#allocation2], %s4240_s24 }
 0xeff   : > { %s4832_s28 = sld [smem:[#allocation10_spill]]  ;;  %s2953_s0 = sshll.u32 %s821_s9, 4  ;;  %s2954_s0 = int_to_ptr.vmem [resolvable:$true] %s2953_s0 }
 0xf00   : > { %s4833_s10 = sld [smem:[#allocation29_spill]]  ;;  %s3795_s7 = scalar_lea.vmem %s2954_s0, 128 }
 0xf01   : > { %s4834_s8 = sld [smem:[#allocation30_spill]]  ;;  %p3796_p1 = scmp.ne.s32.totalorder %s2954_s0, %s3795_s7 }
 0xf02   : > { %s4835_s3 = sld [smem:[#allocation31_spill]]  ;;  %s3869_s27 = smov [#allocation2]  }
 0xf03   : > { %p3797_p2 = pnand %p3796_p1, %p4045_p5 }
 0xf04   : > { %v3243_v31 = vld [vmem:[%s4831_s23] ss:$0 sm:$0xff] }
 0xf05   : > { %s4837_s6 = sand.u32 1, %s4832_s28   ;;  %p3798_p3 = pneg %p3797_p2 }
 0xf06   : > { %v3260_v42 = vld [vmem:[%s4833_s10] ss:$0 sm:$0xff]  ;;  %s2930_s11 = scalar_lea.sflag [#allocation3], %s4837_s6  ;;  %s3799_s10 = sshll.u32 %s3869_s27, 4  ;;  %s3800_s10 = int_to_ptr.vmem [resolvable:$false] %s3799_s10 }
 0xf07   : > { %v3261_v45 = vld [vmem:[%s4834_s8] ss:$0 sm:$0xff]  ;;  %s3801_s24 = scalar_lea.vmem %s3800_s10, 256  ;;  %p3802_p4 = scmp.lt.s32.totalorder %s2954_s0, %s3800_s10 }
 0xf08   : > { %s4836_s1 = smov %s4835_s3  ;;  %s2951_s23 = scalar_lea.hbm %s4835_s3, %s4645_s17 }
 0xf09   : > { %p3803_p7 = scmp.lt.s32.totalorder %s3801_s24, %s3795_s7 }
 0xf0b   : > { %p3804_p8 = por %p3803_p7, %p3802_p4 }
 0xf0d   : > { %p3805_p9 = pnand %p3804_p8, %p3798_p3 }
 0xf9b   : > { %v3354_v29 = vpop.f32.mrf.mxu0 }
 0xf9d   : > { %v3355_v36 = vpop.f32.mrf.mxu0 }
 0xf9e   : > { %v3356_v37 = vadd.f32 %v3355_v36, %v3354_v29 }
 0xf9f   : > { %v3357_v38 = vpop.f32.mrf.mxu0 }
 0xfa0   : > { %v2903_v39 = vadd.f32 %v3356_v37, %v3243_v31 }
 0xfa1   : > { %v3358_v40 = vpop.f32.mrf.mxu0 }
 0xfa2   : > { %v2908_v41 = vmax.f32 %v2903_v39, 0.0 }
 0xfa4   : > { %v2909_v44 = vadd.f32 %v2908_v41, %v4622_v14 }
 0xfa6   : > { %v2917_v46 = vmul.f32 %v3260_v42, %v2909_v44 }
 0xfa8   : > { %v2925_v47 = vadd.f32 %v3261_v45, %v2917_v46 }
 0xfaa   : > { %2926 = vst [vmem:[%s821_s9] sm:$0xff] %v2925_v47 }
 0xfab   : > { %3808 = shalt.err (!%p3805_p9)
}
 0xfac   : > { %s3809_s29 = scalar_lea.hbm %s2951_s23, 128  ;;  %s3813_s28 = scalar_lea.hbm %s4836_s1, 256 }
 0xfad   : > { %p3810_p10 = scmp.ne.s32.totalorder %s2951_s23, %s3809_s29  ;;  %p3814_p13 = scmp.lt.s32.totalorder %s2951_s23, %s4836_s1 }
 0xfae   : > { %p3815_p0 = scmp.lt.s32.totalorder %s3813_s28, %s3809_s29 }
 0xfaf   : > { %p3811_p11 = pnand %p3810_p10, %p4045_p5 }
 0xfb0   : > { %p3816_p1 = por %p3815_p0, %p3814_p13 }
 0xfb1   : > { %p3812_p12 = pneg %p3811_p11 }
 0xfb3   : > { %p3817_p2 = pnand %p3816_p1, %p3812_p12 }
 0xfb5   : > { %3820 = shalt.err (!%p3817_p2)
}
 0xfb6   : > { %3536 = dma.vmem_to_hbm [thread:$0]  (%p4045_p5), %s2954_s0, 128, %s2951_s23, %s2930_s11  }
 0xfb7 PF: > { %s4838_s9 = sld [smem:[#allocation12_spill]] }
 0xfb8   : > { %s4839_s5 = sld [smem:[#allocation9_spill]] }
 0xfbd   : > { %p3552_p3 = scmp.ge.s32.totalorder %s4838_s9, 2 }
 0xfbe   : > { %s2991_s3 = sand.u32 1, %s4839_s5  }
 0xfbf   : > { %p3543_p4 = pnand %p3552_p3, %p4049_p6  ;;  %s2992_s7 = scalar_lea.sflag [#allocation3], %s2991_s3 }
 0xfc1   : > { %p3544_p7 = pneg %p3543_p4 }
 0xfc3   : > { %3838 = dma.done.wait (%p3544_p7), %s2992_s7, 128  }
 0xfc4   : > { %3840 = vsyncadd (%p3544_p7), %s2992_s7, 4294967168  ;;  %s4841_s27 = sadd.s32 4294967294, %s4838_s9  }
 0xfc5   : > { %s3000_s10 = sand.u32 1, %s4841_s27  }
 0xfc6   : > { %s3001_s24 = scalar_lea.sflag [#allocation5], %s3000_s10 }
 0xfc7   : > { %3842 = dma.done.wait (%p3544_p7), %s3001_s24, 256  }
 0xfc8   : > { %3844 = vsyncadd (%p3544_p7), %s3001_s24, 4294967040  ;;  %s4842_s28 = sld [smem:[#allocation13_spill]] }
 0xfc9   : > { %s4843_s27 = sld [smem:[#allocation10_spill]] }
 0xfca   : > { %s4844_s3 = sld [smem:[#allocation11_spill]] }
 0xfcb   : > { %s4845_s7 = sld [smem:[#allocation14_spill]] }
 0xfce   : > { %p40_p5 = scmp.ge.s32.totalorder %s4842_s28, 4  }
 0xfd0   :  { %42 = sbr.rel (!%p40_p5) target bundleno = 22 (0x16), region = 192 }
 0xfd5   :  { %3015 = vsyncpa [#allocation3], 1 }
 0xfd6   :  { %3017 = vsyncpa [#allocation3 + $0x1], 1 }
 0xfd7   :  { %3018 = vsyncpa [#allocation5], 1 }
 0xfd8   :  { %3020 = vsyncpa [#allocation5 + $0x1], 1 }

</bundles_post_ra>
